<compile_context>
chip_gen: v6e
topology: v6e:2x2x1
jax: 0.10.0
libtpu: 0.0.40
codegen_flags: <defaults>
</compile_context>

<pallas_src>
import functools

import jax
import jax.numpy as jnp
from jax.experimental import pallas as pl
from jax.experimental.pallas import tpu as pltpu


def _pick_rows_per_chunk(H, W, target_rows=128):
    """Rows of the image per matmul chunk so that rows*W ~ 128 and rows | H."""
    rc = max(1, min(H, target_rows // max(W, 1)))
    while H % rc:
        rc -= 1
    return max(rc, 1)


def _convlstm_cell_kernel(x_ref, h_ref, c_ref, w_ref, b_ref,
                          h_next_ref, c_next_ref, xh_s, *,
                          H, W, KH, KW, pad, input_dim, hidden_dim,
                          rows_per_chunk):
    """One batch element per grid step.

    x_ref:      (1, H, W, input_dim)
    h_ref:      (1, H, W, hidden_dim)   previous hidden state
    c_ref:      (1, H, W, hidden_dim)   previous cell state
    w_ref:      (KH*KW*Cin, 4*hidden)   conv weight, taps folded into K
    b_ref:      (1, 4*hidden)           conv bias
    h_next_ref: (1, H, W, hidden_dim)
    c_next_ref: (1, H, W, hidden_dim)
    xh_s:       (H+2p, W+2p, Cin) VMEM scratch: zero-padded concat([x, h])
    """
    Cin = input_dim + hidden_dim
    Ktot = KH * KW * Cin
    Hp, Wp = H + 2 * pad, W + 2 * pad
    hd = hidden_dim
    dt = xh_s.dtype

    # ---- 1. Assemble padded concat([x, h]) in VMEM (no HBM round trip). ----
    # The zero frame is rewritten every step: scratch is per-core, so we do
    # not rely on a program_id==0 initialisation under megacore sharding.
    if pad > 0:
        xh_s[0:pad, :, :] = jnp.zeros((pad, Wp, Cin), dt)
        xh_s[Hp - pad:Hp, :, :] = jnp.zeros((pad, Wp, Cin), dt)
        xh_s[pad:pad + H, 0:pad, :] = jnp.zeros((H, pad, Cin), dt)
        xh_s[pad:pad + H, Wp - pad:Wp, :] = jnp.zeros((H, pad, Cin), dt)
    xh_s[pad:pad + H, pad:pad + W, :] = jnp.concatenate(
        [x_ref[0], h_ref[0]], axis=-1).astype(dt)

    b = b_ref[...].astype(jnp.float32)            # (1, 4*hd)

    num_chunks = H // rows_per_chunk
    rc = rows_per_chunk
    M = rc * W
    for ci in range(num_chunks):
        r0 = ci * rc

        # ---- 2. im2col for this row chunk: fold KH*KW taps into K. -------
        parts = [xh_s[ki + r0:ki + r0 + rc, kj:kj + W, :]
                 for ki in range(KH) for kj in range(KW)]
        patch = jnp.concatenate(parts, axis=-1).reshape(M, Ktot)

        # ---- 3. Single MXU matmul (K = KH*KW*Cin) + bias. -----------------
        acc = jnp.dot(patch, w_ref[...],
                      preferred_element_type=jnp.float32) + b

        # ---- 4. Gates: one wide sigmoid (3*hd) + one tanh (hd). -----------
        # Channel order [i, f, o, g] matches torch.split on the out channels.
        s = jax.nn.sigmoid(acc[:, :3 * hd])
        g = jnp.tanh(acc[:, 3 * hd:])
        i_gate = s[:, 0 * hd:1 * hd]
        f_gate = s[:, 1 * hd:2 * hd]
        o_gate = s[:, 2 * hd:3 * hd]

        c_prev = c_ref[:, r0:r0 + rc, :, :].reshape(M, hd).astype(jnp.float32)
        c_new = f_gate * c_prev + i_gate * g
        h_new = o_gate * jnp.tanh(c_new)

        c_next_ref[:, r0:r0 + rc, :, :] = (
            c_new.reshape(1, rc, W, hd).astype(c_next_ref.dtype))
        h_next_ref[:, r0:r0 + rc, :, :] = (
            h_new.reshape(1, rc, W, hd).astype(h_next_ref.dtype))


def conv_lstm_cell(x, h_state, c_state, weight, bias, *, padding,
                   matmul_dtype=None):
    """x: (B,H,W,input_dim); h/c: (B,H,W,hidden); weight: (KH,KW,Cin,4*hidden)."""
    B, H, W, input_dim = x.shape
    hidden_dim = h_state.shape[-1]
    KH, KW, Cin, Cout = weight.shape
    assert Cin == input_dim + hidden_dim
    assert Cout == 4 * hidden_dim
    # The LSTM cell update requires a 'same'-shaped convolution.
    assert H + 2 * padding - KH + 1 == H and W + 2 * padding - KW + 1 == W

    Ktot = KH * KW * Cin
    Hp, Wp = H + 2 * padding, W + 2 * padding
    dt = matmul_dtype if matmul_dtype is not None else x.dtype

    # Taps folded into the contraction dim: row index = (ki*KW + kj)*Cin + ci,
    # matching the in-kernel im2col column order.
    w_flat = weight.reshape(Ktot, Cout).astype(dt)
    b2d = bias.reshape(1, Cout).astype(jnp.float32)

    rows_per_chunk = _pick_rows_per_chunk(H, W)

    kernel = functools.partial(
        _convlstm_cell_kernel, H=H, W=W, KH=KH, KW=KW, pad=padding,
        input_dim=input_dim, hidden_dim=hidden_dim,
        rows_per_chunk=rows_per_chunk)

    h_next, c_next = pl.pallas_call(
        kernel,
        out_shape=(jax.ShapeDtypeStruct((B, H, W, hidden_dim), h_state.dtype),
                   jax.ShapeDtypeStruct((B, H, W, hidden_dim), c_state.dtype)),
        grid_spec=pltpu.PrefetchScalarGridSpec(
            num_scalar_prefetch=0,
            grid=(B,),
            in_specs=[
                pl.BlockSpec((1, H, W, input_dim), lambda b: (b, 0, 0, 0)),
                pl.BlockSpec((1, H, W, hidden_dim), lambda b: (b, 0, 0, 0)),
                pl.BlockSpec((1, H, W, hidden_dim), lambda b: (b, 0, 0, 0)),
                pl.BlockSpec((Ktot, Cout), lambda b: (0, 0)),
                pl.BlockSpec((1, Cout), lambda b: (0, 0)),
            ],
            out_specs=[
                pl.BlockSpec((1, H, W, hidden_dim), lambda b: (b, 0, 0, 0)),
                pl.BlockSpec((1, H, W, hidden_dim), lambda b: (b, 0, 0, 0)),
            ],
            scratch_shapes=[
                pltpu.VMEM((Hp, Wp, Cin), dt),   # padded concat([x, h])
            ]),
        compiler_params=pltpu.CompilerParams(
            dimension_semantics=("parallel",)),
    )(x, h_state, c_state, w_flat, b2d)
    return h_next, c_next


def reference_conv_lstm_cell(x, h_state, c_state, weight, bias, *, padding):
    """Pure-JAX reference mirroring the PyTorch forward (NHWC layout)."""
    xh = jnp.concatenate([x, h_state], axis=-1)
    conv = jax.lax.conv_general_dilated(
        xh, weight, window_strides=(1, 1),
        padding=[(padding, padding), (padding, padding)],
        dimension_numbers=('NHWC', 'HWIO', 'NHWC')) + bias
    cc_i, cc_f, cc_o, cc_g = jnp.split(conv, 4, axis=-1)
    i = jax.nn.sigmoid(cc_i)
    f = jax.nn.sigmoid(cc_f)
    o = jax.nn.sigmoid(cc_o)
    g = jnp.tanh(cc_g)
    c_next = f * c_state + i * g
    h_next = o * jnp.tanh(c_next)
    return h_next, c_next


if __name__ == "__main__":
    # Small deterministic config: batch=2, 16x16 spatial, input_dim=4,
    # hidden_dim=32, 3x3 kernel, padding=1 (same-conv, as the module implies).
    B, H, W = 2, 16, 16
    input_dim, hidden_dim = 4, 32
    KH = KW = 3
    padding = 1
    Cin = input_dim + hidden_dim
    Cout = 4 * hidden_dim

    key = jax.random.PRNGKey(0)
    k1, k2, k3, k4, k5 = jax.random.split(key, 5)
    x = jax.random.normal(k1, (B, H, W, input_dim), jnp.float32)
    h0 = jax.random.normal(k2, (B, H, W, hidden_dim), jnp.float32)
    c0 = jax.random.normal(k3, (B, H, W, hidden_dim), jnp.float32)
    weight = 0.1 * jax.random.normal(k4, (KH, KW, Cin, Cout), jnp.float32)
    bias = 0.1 * jax.random.normal(k5, (Cout,), jnp.float32)

    h_next, c_next = conv_lstm_cell(x, h0, c0, weight, bias, padding=padding)
    jax.block_until_ready((h_next, c_next))

    h_ref, c_ref = reference_conv_lstm_cell(x, h0, c0, weight, bias,
                                            padding=padding)
    assert jnp.allclose(h_next, h_ref, atol=1e-4, rtol=1e-4)
    assert jnp.allclose(c_next, c_ref, atol=1e-4, rtol=1e-4)
    print("KERNEL_OK")
</pallas_src>

<mosaic_0001>
module attributes {stable_mosaic.version = 11 : i64} {
  func.func @_convlstm_cell_kernel(%arg0: i32, %arg1: memref<1x16x16x4xf32, #tpu.memory_space<vmem>>, %arg2: memref<1x16x16x32xf32, #tpu.memory_space<vmem>>, %arg3: memref<1x16x16x32xf32, #tpu.memory_space<vmem>>, %arg4: memref<324x128xf32, #tpu.memory_space<vmem>>, %arg5: memref<1x128xf32, #tpu.memory_space<vmem>>, %arg6: memref<1x16x16x32xf32, #tpu.memory_space<vmem>>, %arg7: memref<1x16x16x32xf32, #tpu.memory_space<vmem>>, %arg8: memref<18x18x36xf32, #tpu.memory_space<vmem>>) attributes {dimension_semantics = [#tpu.dimension_semantics<parallel>], iteration_bounds = array<i64: 2>, scalar_prefetch = 0 : i64, scratch_operands = 1 : i64, tpu.core_type = #tpu.core_type<tc>, window_params = [{transform_indices = @transform_0, window_bounds = array<i64: 1, 16, 16, 4>}, {transform_indices = @transform_1, window_bounds = array<i64: 1, 16, 16, 32>}, {transform_indices = @transform_2, window_bounds = array<i64: 1, 16, 16, 32>}, {pipeline_mode = #tpu.pipeline_mode<synchronous>, transform_indices = @transform_3, window_bounds = array<i64: 324, 128>}, {pipeline_mode = #tpu.pipeline_mode<synchronous>, transform_indices = @transform_4, window_bounds = array<i64: 1, 128>}, {transform_indices = @transform_5, window_bounds = array<i64: 1, 16, 16, 32>}, {transform_indices = @transform_6, window_bounds = array<i64: 1, 16, 16, 32>}]} {
    %cst = arith.constant 0.000000e+00 : f32
    %0 = vector.broadcast %cst : f32 to vector<1x18x36xf32>
    %c0 = arith.constant 0 : index
    %c0_0 = arith.constant 0 : index
    %c0_1 = arith.constant 0 : index
    %1 = vector.load %arg8[%c0, %c0_0, %c0_1] : memref<18x18x36xf32, #tpu.memory_space<vmem>>, vector<1x18x36xf32>
    tpu.vector_store %arg8[%c0, %c0_0, %c0_1], %0 {strides = array<i32>} : memref<18x18x36xf32, #tpu.memory_space<vmem>>, vector<1x18x36xf32>,
    %cst_2 = arith.constant 0.000000e+00 : f32
    %2 = vector.broadcast %cst_2 : f32 to vector<1x18x36xf32>
    %c17 = arith.constant 17 : index
    %c0_3 = arith.constant 0 : index
    %c0_4 = arith.constant 0 : index
    %3 = vector.load %arg8[%c17, %c0_3, %c0_4] : memref<18x18x36xf32, #tpu.memory_space<vmem>>, vector<1x18x36xf32>
    tpu.vector_store %arg8[%c17, %c0_3, %c0_4], %2 {strides = array<i32>} : memref<18x18x36xf32, #tpu.memory_space<vmem>>, vector<1x18x36xf32>,
    %cst_5 = arith.constant 0.000000e+00 : f32
    %4 = vector.broadcast %cst_5 : f32 to vector<16x1x36xf32>
    %c1 = arith.constant 1 : index
    %c0_6 = arith.constant 0 : index
    %c0_7 = arith.constant 0 : index
    %5 = vector.load %arg8[%c1, %c0_6, %c0_7] : memref<18x18x36xf32, #tpu.memory_space<vmem>>, vector<16x1x36xf32>
    tpu.vector_store %arg8[%c1, %c0_6, %c0_7], %4 {strides = array<i32>} : memref<18x18x36xf32, #tpu.memory_space<vmem>>, vector<16x1x36xf32>,
    %cst_8 = arith.constant 0.000000e+00 : f32
    %6 = vector.broadcast %cst_8 : f32 to vector<16x1x36xf32>
    %c1_9 = arith.constant 1 : index
    %c17_10 = arith.constant 17 : index
    %c0_11 = arith.constant 0 : index
    %7 = vector.load %arg8[%c1_9, %c17_10, %c0_11] : memref<18x18x36xf32, #tpu.memory_space<vmem>>, vector<16x1x36xf32>
    tpu.vector_store %arg8[%c1_9, %c17_10, %c0_11], %6 {strides = array<i32>} : memref<18x18x36xf32, #tpu.memory_space<vmem>>, vector<16x1x36xf32>,
    %c0_12 = arith.constant 0 : index
    %c0_13 = arith.constant 0 : index
    %c0_14 = arith.constant 0 : index
    %c0_15 = arith.constant 0 : index
    %8 = vector.load %arg1[%c0_12, %c0_13, %c0_14, %c0_15] : memref<1x16x16x4xf32, #tpu.memory_space<vmem>>, vector<1x16x16x4xf32>
    %9 = vector.shape_cast %8 : vector<1x16x16x4xf32> to vector<16x16x4xf32>
    %c0_16 = arith.constant 0 : index
    %c0_17 = arith.constant 0 : index
    %c0_18 = arith.constant 0 : index
    %c0_19 = arith.constant 0 : index
    %10 = vector.load %arg2[%c0_16, %c0_17, %c0_18, %c0_19] : memref<1x16x16x32xf32, #tpu.memory_space<vmem>>, vector<1x16x16x32xf32>
    %11 = vector.shape_cast %10 : vector<1x16x16x32xf32> to vector<16x16x32xf32>
    %12 = tpu.concatenate %9, %11 in 2 : vector<16x16x4xf32>, vector<16x16x32xf32> -> vector<16x16x36xf32>
    %c1_20 = arith.constant 1 : index
    %c1_21 = arith.constant 1 : index
    %c0_22 = arith.constant 0 : index
    %13 = vector.load %arg8[%c1_20, %c1_21, %c0_22] : memref<18x18x36xf32, #tpu.memory_space<vmem>>, vector<16x16x36xf32>
    tpu.vector_store %arg8[%c1_20, %c1_21, %c0_22], %12 {strides = array<i32>} : memref<18x18x36xf32, #tpu.memory_space<vmem>>, vector<16x16x36xf32>,
    %c0_23 = arith.constant 0 : index
    %c0_24 = arith.constant 0 : index
    %14 = vector.load %arg5[%c0_23, %c0_24] : memref<1x128xf32, #tpu.memory_space<vmem>>, vector<1x128xf32>
    %c0_25 = arith.constant 0 : index
    %c0_26 = arith.constant 0 : index
    %c0_27 = arith.constant 0 : index
    %15 = vector.load %arg8[%c0_25, %c0_26, %c0_27] : memref<18x18x36xf32, #tpu.memory_space<vmem>>, vector<8x16x36xf32>
    %c0_28 = arith.constant 0 : index
    %c1_29 = arith.constant 1 : index
    %c0_30 = arith.constant 0 : index
    %16 = vector.load %arg8[%c0_28, %c1_29, %c0_30] : memref<18x18x36xf32, #tpu.memory_space<vmem>>, vector<8x16x36xf32>
    %c0_31 = arith.constant 0 : index
    %c2 = arith.constant 2 : index
    %c0_32 = arith.constant 0 : index
    %17 = vector.load %arg8[%c0_31, %c2, %c0_32] : memref<18x18x36xf32, #tpu.memory_space<vmem>>, vector<8x16x36xf32>
    %c1_33 = arith.constant 1 : index
    %c0_34 = arith.constant 0 : index
    %c0_35 = arith.constant 0 : index
    %18 = vector.load %arg8[%c1_33, %c0_34, %c0_35] : memref<18x18x36xf32, #tpu.memory_space<vmem>>, vector<8x16x36xf32>
    %c1_36 = arith.constant 1 : index
    %c1_37 = arith.constant 1 : index
    %c0_38 = arith.constant 0 : index
    %19 = vector.load %arg8[%c1_36, %c1_37, %c0_38] : memref<18x18x36xf32, #tpu.memory_space<vmem>>, vector<8x16x36xf32>
    %c1_39 = arith.constant 1 : index
    %c2_40 = arith.constant 2 : index
    %c0_41 = arith.constant 0 : index
    %20 = vector.load %arg8[%c1_39, %c2_40, %c0_41] : memref<18x18x36xf32, #tpu.memory_space<vmem>>, vector<8x16x36xf32>
    %c2_42 = arith.constant 2 : index
    %c0_43 = arith.constant 0 : index
    %c0_44 = arith.constant 0 : index
    %21 = vector.load %arg8[%c2_42, %c0_43, %c0_44] : memref<18x18x36xf32, #tpu.memory_space<vmem>>, vector<8x16x36xf32>
    %c2_45 = arith.constant 2 : index
    %c1_46 = arith.constant 1 : index
    %c0_47 = arith.constant 0 : index
    %22 = vector.load %arg8[%c2_45, %c1_46, %c0_47] : memref<18x18x36xf32, #tpu.memory_space<vmem>>, vector<8x16x36xf32>
    %c2_48 = arith.constant 2 : index
    %c2_49 = arith.constant 2 : index
    %c0_50 = arith.constant 0 : index
    %23 = vector.load %arg8[%c2_48, %c2_49, %c0_50] : memref<18x18x36xf32, #tpu.memory_space<vmem>>, vector<8x16x36xf32>
    %24 = tpu.concatenate %15, %16, %17, %18, %19, %20, %21, %22, %23 in 2 : vector<8x16x36xf32>, vector<8x16x36xf32>, vector<8x16x36xf32>, vector<8x16x36xf32>, vector<8x16x36xf32>, vector<8x16x36xf32>, vector<8x16x36xf32>, vector<8x16x36xf32>, vector<8x16x36xf32> -> vector<8x16x324xf32>
    %25 = vector.shape_cast %24 : vector<8x16x324xf32> to vector<128x324xf32>
    %c0_51 = arith.constant 0 : index
    %c0_52 = arith.constant 0 : index
    %26 = vector.load %arg4[%c0_51, %c0_52] : memref<324x128xf32, #tpu.memory_space<vmem>>, vector<324x128xf32>
    %cst_53 = arith.constant dense<0.000000e+00> : vector<128x128xf32>
    %27 = tpu.matmul %25, %26, %cst_53 {dimension_numbers = #tpu.dot_dimension_numbers<[1], [0], [0], [1], [0, 0, 1, 1], [], []>} : vector<128x324xf32>, vector<324x128xf32>, vector<128x128xf32> -> vector<128x128xf32>
    %28 = vector.broadcast %14 : vector<1x128xf32> to vector<128x128xf32>
    %29 = arith.addf %27, %28 : vector<128x128xf32>
    %30 = vector.extract_strided_slice %29 {offsets = [0, 0], sizes = [128, 96], strides = [1, 1]} : vector<128x128xf32> to vector<128x96xf32>
    %31 = arith.negf %30 : vector<128x96xf32>
    %32 = math.exp %31 : vector<128x96xf32>
    %cst_54 = arith.constant 1.000000e+00 : f32
    %33 = vector.broadcast %cst_54 : f32 to vector<128x96xf32>
    %34 = arith.addf %33, %32 : vector<128x96xf32>
    %35 = arith.divf %33, %34 : vector<128x96xf32>
    %36 = vector.extract_strided_slice %29 {offsets = [0, 96], sizes = [128, 32], strides = [1, 1]} : vector<128x128xf32> to vector<128x32xf32>
    %37 = math.tanh %36 : vector<128x32xf32>
    %38 = vector.extract_strided_slice %35 {offsets = [0, 0], sizes = [128, 32], strides = [1, 1]} : vector<128x96xf32> to vector<128x32xf32>
    %39 = vector.extract_strided_slice %35 {offsets = [0, 32], sizes = [128, 32], strides = [1, 1]} : vector<128x96xf32> to vector<128x32xf32>
    %40 = vector.extract_strided_slice %35 {offsets = [0, 64], sizes = [128, 32], strides = [1, 1]} : vector<128x96xf32> to vector<128x32xf32>
    %c0_55 = arith.constant 0 : index
    %c0_56 = arith.constant 0 : index
    %c0_57 = arith.constant 0 : index
    %c0_58 = arith.constant 0 : index
    %41 = vector.load %arg3[%c0_55, %c0_56, %c0_57, %c0_58] : memref<1x16x16x32xf32, #tpu.memory_space<vmem>>, vector<1x8x16x32xf32>
    %42 = vector.shape_cast %41 : vector<1x8x16x32xf32> to vector<128x32xf32>
    %43 = arith.mulf %39, %42 : vector<128x32xf32>
    %44 = arith.mulf %38, %37 : vector<128x32xf32>
    %45 = arith.addf %43, %44 : vector<128x32xf32>
    %46 = math.tanh %45 : vector<128x32xf32>
    %47 = arith.mulf %40, %46 : vector<128x32xf32>
    %48 = vector.shape_cast %45 : vector<128x32xf32> to vector<1x8x16x32xf32>
    %c0_59 = arith.constant 0 : index
    %c0_60 = arith.constant 0 : index
    %c0_61 = arith.constant 0 : index
    %c0_62 = arith.constant 0 : index
    %49 = vector.load %arg7[%c0_59, %c0_60, %c0_61, %c0_62] : memref<1x16x16x32xf32, #tpu.memory_space<vmem>>, vector<1x8x16x32xf32>
    tpu.vector_store %arg7[%c0_59, %c0_60, %c0_61, %c0_62], %48 {strides = array<i32>} : memref<1x16x16x32xf32, #tpu.memory_space<vmem>>, vector<1x8x16x32xf32>,
    %50 = vector.shape_cast %47 : vector<128x32xf32> to vector<1x8x16x32xf32>
    %c0_63 = arith.constant 0 : index
    %c0_64 = arith.constant 0 : index
    %c0_65 = arith.constant 0 : index
    %c0_66 = arith.constant 0 : index
    %51 = vector.load %arg6[%c0_63, %c0_64, %c0_65, %c0_66] : memref<1x16x16x32xf32, #tpu.memory_space<vmem>>, vector<1x8x16x32xf32>
    tpu.vector_store %arg6[%c0_63, %c0_64, %c0_65, %c0_66], %50 {strides = array<i32>} : memref<1x16x16x32xf32, #tpu.memory_space<vmem>>, vector<1x8x16x32xf32>,
    %c8 = arith.constant 8 : index
    %c0_67 = arith.constant 0 : index
    %c0_68 = arith.constant 0 : index
    %52 = vector.load %arg8[%c8, %c0_67, %c0_68] : memref<18x18x36xf32, #tpu.memory_space<vmem>>, vector<8x16x36xf32>
    %c8_69 = arith.constant 8 : index
    %c1_70 = arith.constant 1 : index
    %c0_71 = arith.constant 0 : index
    %53 = vector.load %arg8[%c8_69, %c1_70, %c0_71] : memref<18x18x36xf32, #tpu.memory_space<vmem>>, vector<8x16x36xf32>
    %c8_72 = arith.constant 8 : index
    %c2_73 = arith.constant 2 : index
    %c0_74 = arith.constant 0 : index
    %54 = vector.load %arg8[%c8_72, %c2_73, %c0_74] : memref<18x18x36xf32, #tpu.memory_space<vmem>>, vector<8x16x36xf32>
    %c9 = arith.constant 9 : index
    %c0_75 = arith.constant 0 : index
    %c0_76 = arith.constant 0 : index
    %55 = vector.load %arg8[%c9, %c0_75, %c0_76] : memref<18x18x36xf32, #tpu.memory_space<vmem>>, vector<8x16x36xf32>
    %c9_77 = arith.constant 9 : index
    %c1_78 = arith.constant 1 : index
    %c0_79 = arith.constant 0 : index
    %56 = vector.load %arg8[%c9_77, %c1_78, %c0_79] : memref<18x18x36xf32, #tpu.memory_space<vmem>>, vector<8x16x36xf32>
    %c9_80 = arith.constant 9 : index
    %c2_81 = arith.constant 2 : index
    %c0_82 = arith.constant 0 : index
    %57 = vector.load %arg8[%c9_80, %c2_81, %c0_82] : memref<18x18x36xf32, #tpu.memory_space<vmem>>, vector<8x16x36xf32>
    %c10 = arith.constant 10 : index
    %c0_83 = arith.constant 0 : index
    %c0_84 = arith.constant 0 : index
    %58 = vector.load %arg8[%c10, %c0_83, %c0_84] : memref<18x18x36xf32, #tpu.memory_space<vmem>>, vector<8x16x36xf32>
    %c10_85 = arith.constant 10 : index
    %c1_86 = arith.constant 1 : index
    %c0_87 = arith.constant 0 : index
    %59 = vector.load %arg8[%c10_85, %c1_86, %c0_87] : memref<18x18x36xf32, #tpu.memory_space<vmem>>, vector<8x16x36xf32>
    %c10_88 = arith.constant 10 : index
    %c2_89 = arith.constant 2 : index
    %c0_90 = arith.constant 0 : index
    %60 = vector.load %arg8[%c10_88, %c2_89, %c0_90] : memref<18x18x36xf32, #tpu.memory_space<vmem>>, vector<8x16x36xf32>
    %61 = tpu.concatenate %52, %53, %54, %55, %56, %57, %58, %59, %60 in 2 : vector<8x16x36xf32>, vector<8x16x36xf32>, vector<8x16x36xf32>, vector<8x16x36xf32>, vector<8x16x36xf32>, vector<8x16x36xf32>, vector<8x16x36xf32>, vector<8x16x36xf32>, vector<8x16x36xf32> -> vector<8x16x324xf32>
    %62 = vector.shape_cast %61 : vector<8x16x324xf32> to vector<128x324xf32>
    %c0_91 = arith.constant 0 : index
    %c0_92 = arith.constant 0 : index
    %63 = vector.load %arg4[%c0_91, %c0_92] : memref<324x128xf32, #tpu.memory_space<vmem>>, vector<324x128xf32>
    %cst_93 = arith.constant dense<0.000000e+00> : vector<128x128xf32>
    %64 = tpu.matmul %62, %63, %cst_93 {dimension_numbers = #tpu.dot_dimension_numbers<[1], [0], [0], [1], [0, 0, 1, 1], [], []>} : vector<128x324xf32>, vector<324x128xf32>, vector<128x128xf32> -> vector<128x128xf32>
    %65 = vector.broadcast %14 : vector<1x128xf32> to vector<128x128xf32>
    %66 = arith.addf %64, %65 : vector<128x128xf32>
    %67 = vector.extract_strided_slice %66 {offsets = [0, 0], sizes = [128, 96], strides = [1, 1]} : vector<128x128xf32> to vector<128x96xf32>
    %68 = arith.negf %67 : vector<128x96xf32>
    %69 = math.exp %68 : vector<128x96xf32>
    %cst_94 = arith.constant 1.000000e+00 : f32
    %70 = vector.broadcast %cst_94 : f32 to vector<128x96xf32>
    %71 = arith.addf %70, %69 : vector<128x96xf32>
    %72 = arith.divf %70, %71 : vector<128x96xf32>
    %73 = vector.extract_strided_slice %66 {offsets = [0, 96], sizes = [128, 32], strides = [1, 1]} : vector<128x128xf32> to vector<128x32xf32>
    %74 = math.tanh %73 : vector<128x32xf32>
    %75 = vector.extract_strided_slice %72 {offsets = [0, 0], sizes = [128, 32], strides = [1, 1]} : vector<128x96xf32> to vector<128x32xf32>
    %76 = vector.extract_strided_slice %72 {offsets = [0, 32], sizes = [128, 32], strides = [1, 1]} : vector<128x96xf32> to vector<128x32xf32>
    %77 = vector.extract_strided_slice %72 {offsets = [0, 64], sizes = [128, 32], strides = [1, 1]} : vector<128x96xf32> to vector<128x32xf32>
    %c0_95 = arith.constant 0 : index
    %c8_96 = arith.constant 8 : index
    %c0_97 = arith.constant 0 : index
    %c0_98 = arith.constant 0 : index
    %78 = vector.load %arg3[%c0_95, %c8_96, %c0_97, %c0_98] : memref<1x16x16x32xf32, #tpu.memory_space<vmem>>, vector<1x8x16x32xf32>
    %79 = vector.shape_cast %78 : vector<1x8x16x32xf32> to vector<128x32xf32>
    %80 = arith.mulf %76, %79 : vector<128x32xf32>
    %81 = arith.mulf %75, %74 : vector<128x32xf32>
    %82 = arith.addf %80, %81 : vector<128x32xf32>
    %83 = math.tanh %82 : vector<128x32xf32>
    %84 = arith.mulf %77, %83 : vector<128x32xf32>
    %85 = vector.shape_cast %82 : vector<128x32xf32> to vector<1x8x16x32xf32>
    %c0_99 = arith.constant 0 : index
    %c8_100 = arith.constant 8 : index
    %c0_101 = arith.constant 0 : index
    %c0_102 = arith.constant 0 : index
    %86 = vector.load %arg7[%c0_99, %c8_100, %c0_101, %c0_102] : memref<1x16x16x32xf32, #tpu.memory_space<vmem>>, vector<1x8x16x32xf32>
    tpu.vector_store %arg7[%c0_99, %c8_100, %c0_101, %c0_102], %85 {strides = array<i32>} : memref<1x16x16x32xf32, #tpu.memory_space<vmem>>, vector<1x8x16x32xf32>,
    %87 = vector.shape_cast %84 : vector<128x32xf32> to vector<1x8x16x32xf32>
    %c0_103 = arith.constant 0 : index
    %c8_104 = arith.constant 8 : index
    %c0_105 = arith.constant 0 : index
    %c0_106 = arith.constant 0 : index
    %88 = vector.load %arg6[%c0_103, %c8_104, %c0_105, %c0_106] : memref<1x16x16x32xf32, #tpu.memory_space<vmem>>, vector<1x8x16x32xf32>
    tpu.vector_store %arg6[%c0_103, %c8_104, %c0_105, %c0_106], %87 {strides = array<i32>} : memref<1x16x16x32xf32, #tpu.memory_space<vmem>>, vector<1x8x16x32xf32>,
    return
  }
  func.func @transform_0(%arg0: i32) -> (i32, i32, i32, i32) {
    %c0_i32 = arith.constant 0 : i32
    %c0_i32_0 = arith.constant 0 : i32
    %c0_i32_1 = arith.constant 0 : i32
    %c0_i32_2 = arith.constant 0 : i32
    return %arg0, %c0_i32, %c0_i32_0, %c0_i32_1 : i32, i32, i32, i32
  }
  func.func @transform_1(%arg0: i32) -> (i32, i32, i32, i32) {
    %c0_i32 = arith.constant 0 : i32
    %c0_i32_0 = arith.constant 0 : i32
    %c0_i32_1 = arith.constant 0 : i32
    %c0_i32_2 = arith.constant 0 : i32
    return %arg0, %c0_i32, %c0_i32_0, %c0_i32_1 : i32, i32, i32, i32
  }
  func.func @transform_2(%arg0: i32) -> (i32, i32, i32, i32) {
    %c0_i32 = arith.constant 0 : i32
    %c0_i32_0 = arith.constant 0 : i32
    %c0_i32_1 = arith.constant 0 : i32
    %c0_i32_2 = arith.constant 0 : i32
    return %arg0, %c0_i32, %c0_i32_0, %c0_i32_1 : i32, i32, i32, i32
  }
  func.func @transform_3(%arg0: i32) -> (i32, i32) {
    %c0_i32 = arith.constant 0 : i32
    %c0_i32_0 = arith.constant 0 : i32
    %c0_i32_1 = arith.constant 0 : i32
    return %c0_i32, %c0_i32_0 : i32, i32
  }
  func.func @transform_4(%arg0: i32) -> (i32, i32) {
    %c0_i32 = arith.constant 0 : i32
    %c0_i32_0 = arith.constant 0 : i32
    %c0_i32_1 = arith.constant 0 : i32
    return %c0_i32, %c0_i32_0 : i32, i32
  }
  func.func @transform_5(%arg0: i32) -> (i32, i32, i32, i32) {
    %c0_i32 = arith.constant 0 : i32
    %c0_i32_0 = arith.constant 0 : i32
    %c0_i32_1 = arith.constant 0 : i32
    %c0_i32_2 = arith.constant 0 : i32
    return %arg0, %c0_i32, %c0_i32_0, %c0_i32_1 : i32, i32, i32, i32
  }
  func.func @transform_6(%arg0: i32) -> (i32, i32, i32, i32) {
    %c0_i32 = arith.constant 0 : i32
    %c0_i32_0 = arith.constant 0 : i32
    %c0_i32_1 = arith.constant 0 : i32
    %c0_i32_2 = arith.constant 0 : i32
    return %arg0, %c0_i32, %c0_i32_0, %c0_i32_1 : i32, i32, i32, i32
  }
}

</mosaic_0001>

<bundles_post_ra>
// kernel: tpu_custom_call.1
= control target key start
LH: loop header
LB: loop body
LE: loop exit
PB: predicated region body
PF: predicated region fallthrough
CT: control target
= control target key end

     0   :  { %12 = vsyncpa [#allocation4], 0  ;;  %s8384_s0 = inlined_call_operand.vmem [shape: f32[2,16,16,4], index: 0, kind: input, shape index: {}]   ;;  %s8385_s1 = inlined_call_operand.vmem [shape: f32[2,16,16,32], index: 1, kind: input, shape index: {}]   ;;  %s8386_s2 = inlined_call_operand.hbm [shape: f32[2,16,16,32], index: 2, kind: input, shape index: {}]   ;;  %s8387_s3 = inlined_call_operand.hbm [shape: f32[324,128], index: 3, kind: input, shape index: {}]   ;;  %s8388_s4 = inlined_call_operand.vmem [shape: f32[1,128], index: 4, kind: input, shape index: {}]   ;;  %s8389_s5 = inlined_call_operand.hbm [shape: f32[2,16,16,32], index: 5, kind: output, shape index: {0}]   ;;  %s8390_s6 = inlined_call_operand.hbm [shape: f32[2,16,16,32], index: 6, kind: output, shape index: {1}]  }
   0x1   :  { %14 = vsyncpa [#allocation4 + $0x1], 0 }
   0x2   :  { %15 = vsyncpa [#allocation7], 0 }
   0x3   :  { %16 = vsyncpa [#allocation5], 0 }
   0x4   :  { %18 = vsyncpa [#allocation5 + $0x1], 0 }
   0x5   :  { %19 = vsyncpa [#allocation10], 0 }
   0x6   :  { %21 = vsyncpa [#allocation10 + $0x1], 0  ;;  %s5892_s21 = smov 0   ;;  %s5894_s22 = smov 0  }
   0x7   :  { %s5896_s23 = smov 0   ;;  %s5898_s24 = smov 0  }
   0x8 LB: > { %s5913_s25 = sadd.s32 4294967295, %s5835_s24   ;;  %s4413_s26 = sadd.s32 4294967294, %s5835_s24   ;;  %s5835_s24 = sphi %s5898_s24, %s8465_s24   ;;  %s5831_s23 = sphi %s5896_s23, %s8464_s23   ;;  %s5827_s22 = sphi %s5894_s22, %s8463_s22   ;;  %s5823_s21 = sphi %s5892_s21, %s8462_s21  }
   0x9   : > { %p99_p0 = scmp.ne.s32.totalorder %s5827_s22, %s5823_s21  ;;  %p8391_p1 = scmp.eq.s32.totalorder %s5913_s25, 0 }
   0xa   : > { %p171_p3 = scmp.eq.s32.totalorder %s4413_s26, 1  ;;  %p4414_p5 = scmp.ge.s32.totalorder %s5835_s24, 1 }
   0xb   : > { %p5922_p4 = por %p8391_p1, %p99_p0  ;;  %p204_p7 = scmp.lt.s32.totalorder %s5835_s24, 3 }
   0xc   : > { %p5927_p6 = por %p171_p3, %p99_p0  ;;  %s5837_s30 = smov [#allocation6]  }
   0xd   : > { %s8407_s27 = scalar_select %p5922_p4, 1, 0 }
   0xe   : > { %s8408_s28 = scalar_select %p5927_p6, 1, 0 }
   0xf   : > { %p5932_p8 = pnand %p4414_p5, %p204_p7  ;;  %s216_s7 = sshll.u32 %s5837_s30, 4  ;;  %s217_s7 = int_to_ptr.vmem [resolvable:$true] %s216_s7 }
  0x10   : > { %s5946_s9 = sadd.s32 1, %s5835_s24   ;;  %s86_s10 = sadd.s32 1, %s5831_s23 }
  0x11   : > { %s8409_s29 = scalar_select %p5932_p8, 1, 0 }
  0x12   : > { %p4879_p9 = pneg %p5932_p8  ;;  %s83_s11 = ssub.s32 %s5835_s24, %s5946_s9 }
  0x13   : > { %s5694_s12 = scalar_lea.vmem %s217_s7, 5248  ;;  %p5702_p5 = scmp.lt.s32.totalorder %s217_s7, %s217_s7 }
  0x14   : > { %p5941_p11 = pnand %p4879_p9, %p8391_p1  ;;  %p5695_p13 = scmp.ne.s32.totalorder %s217_s7, %s5694_s12 }
  0x15   : > { %p5703_p7 = scmp.lt.s32.totalorder %s5694_s12, %s5694_s12 }
  0x16   : > { %p5685_p12 = pneg %p5941_p11 }
  0x17   : > { %p5704_p10 = por %p5703_p7, %p5702_p5 }
  0x18   : > { %p5697_p0 = pnand %p5695_p13, %p5685_p12 }
  0x1a   : > { %p5698_p3 = pneg %p5697_p0 }
  0x1c   : > { %p5705_p2 = pnand %p5704_p10, %p5698_p3 }
  0x1e   : > { %5708 = shalt.err (!%p5705_p2)
}
  0x1f   : > { %s8392_s13 = smov 128   ;;  %s8393_s14 = smov 8  }
  0x20   : > { %4882 = dma.hbm_to_vmem [thread:$0]  (!%p5941_p11), %s8387_s3, 5248, %s217_s7, [#allocation7], %s8392_s13, %s8392_s13, %s8393_s14  }
  0x21   : > { %p84_p2 = scmp.eq.s32.totalorder %s83_s11, 0  ;;  %p93_p9 = scmp.ne.s32.totalorder %s5831_s23, %s5827_s22 }
  0x22   : > { %p94_p10 = scmp.eq.s32.totalorder %s5835_s24, 0  ;;  %p4895_p12 = scmp.lt.s32.totalorder %s5835_s24, 2 }
  0x23   : > { %s5966_s17 = scalar_select %p84_p2, %s5831_s23, %s86_s10  }
  0x24   : > { %p95_p13 = por %p94_p10, %p93_p9  ;;  %p8411_p0 = scmp.eq.s32.totalorder %s5913_s25, 1 }
  0x25   : > { %s249_s19 = sand.u32 1, %s5831_s23   ;;  %s4552_s20 = sshll.u32 %s5835_s24, 12 }
  0x26   : > { %p5970_p3 = por %p8411_p0, %p93_p9  ;;  %s4417_s26 = sshll.u32 %s249_s19, 8 }
  0x27   : > { %s5979_s12 = scalar_lea.hbm %s8386_s2, %s4552_s20  ;;  %s253_s7 = scalar_lea.vmem [#allocation3], %s4417_s26 }
  0x28   : > { %s8412_s18 = scalar_select %p5970_p3, 1, 0 }
  0x29   : > { %s260_s10 = sshll.u32 %s253_s7, 4  ;;  %p5981_p11 = pnand %p4895_p12, %p95_p13  ;;  %s5985_s10 = int_to_ptr.vmem [resolvable:$true] %s260_s10 }
  0x2a   : > { %s5987_s15 = scalar_lea.sflag [#allocation4], %s249_s19  ;;  %s5709_s16 = scalar_lea.hbm %s5979_s12, 4096 }
  0x2b   : > { %p5710_p5 = scmp.ne.s32.totalorder %s5979_s12, %s5709_s16  ;;  %p5711_p7 = pneg %p5981_p11 }
  0x2c   : > { %s5714_s26 = scalar_lea.hbm %s8386_s2, 8192  ;;  %p5715_p10 = scmp.lt.s32.totalorder %s5979_s12, %s8386_s2 }
  0x2d   : > { %p5712_p2 = pnand %p5711_p7, %p5710_p5  ;;  %p5716_p12 = scmp.lt.s32.totalorder %s5714_s26, %s5709_s16 }
  0x2f   : > { %p5713_p9 = pneg %p5712_p2  ;;  %p5717_p13 = por %p5716_p12, %p5715_p10 }
  0x31   : > { %p5718_p0 = pnand %p5717_p13, %p5713_p9 }
  0x33   : > { %5721 = shalt.err (!%p5718_p0)
}
  0x34   : > { %s5722_s19 = scalar_lea.vmem %s5985_s10, 4096  ;;  %s5840_s13 = smov [#allocation3]  }
  0x35   : > { %p5723_p1 = scmp.ne.s32.totalorder %s5985_s10, %s5722_s19  ;;  %s5727_s14 = sshll.u32 %s5840_s13, 4  ;;  %s5728_s14 = int_to_ptr.vmem [resolvable:$false] %s5727_s14 }
  0x36   : > { %s5729_s20 = scalar_lea.vmem %s5728_s14, 8192  ;;  %p5730_p2 = scmp.lt.s32.totalorder %s5985_s10, %s5728_s14 }
  0x37   : > { %p5725_p6 = pnand %p5723_p1, %p5711_p7  ;;  %p5731_p3 = scmp.lt.s32.totalorder %s5729_s20, %s5722_s19 }
  0x39   : > { %p5726_p5 = pneg %p5725_p6  ;;  %p5732_p4 = por %p5731_p3, %p5730_p2 }
  0x3b   : > { %p5733_p8 = pnand %p5732_p4, %p5726_p5 }
  0x3d   : > { %5736 = shalt.err (!%p5733_p8)
}
  0x3e   : > { %s8414_s16 = smov 8   ;;  %s8415_s30 = smov 128  }
  0x3f   : > { %4886 = dma.hbm_to_vmem [thread:$0]  (!%p5981_p11), %s5979_s12, 4096, %s5985_s10, %s5987_s15, %s8415_s30, %s8415_s30, %s8414_s16  }
  0x40   : > { %p8416_p1 = scmp.ne.s32.totalorder %s8409_s29, 0 }
  0x42   : > { %272 = sbr.rel (%p8416_p1) target bundleno = 1414 (0x586), region = 40 }
  0x47   : > { %s6014_s13 = sand.u32 1, %s5827_s22   ;;  %p8417_p4 = scmp.ne.s32.totalorder %s8407_s27, 0 }
  0x48   : > { %s6017_s14 = sshll.u32 %s6014_s13, 8  ;;  %s275_s11 = scalar_lea.sflag [#allocation4], %s6014_s13 }
  0x49   : > { %s6021_s26 = scalar_lea.vmem [#allocation3], %s6017_s14 }
  0x4a   : > { %5806 = dma.done.wait (%p8417_p4), %s275_s11, 4096  }
  0x4b   : > { %5808 = vsyncadd (%p8417_p4), %s275_s11, 4294963200  ;;  %p8418_p6 = scmp.eq.s32.totalorder %s5913_s25, 0 }
  0x4d   : > { %5810 = dma.done.wait (%p8418_p6), [#allocation7], 5248   ;;  %p8419_p8 = pmov %p8418_p6 }
  0x4e   : > { %p326_p3 = scmp.lt.s32.totalorder %s5913_s25, 1  ;;  %vm336_vm0 = vcmask 293888   ;;  %vm339_vm1 = vcmask 287744   ;;  %vm346_vm2 = vcmask 286720   ;;  %v5841_v0 = vmov 0.0   ;;  %s5842_s8 = smov 4  }
  0x4f   : > { %5812 = vsyncadd (%p8419_p8), [#allocation7], 4294962048  ;;  %337 = vst.msk [vmem:[#allocation2] sm:$0xff] %vm336_vm0, %v5841_v0  ;;  %s5843_s7 = smov 36   ;;  %s5844_s19 = smov 72   ;;  %vm571_vm3 = vcmask 31744  }
  0x50   : > { %s6033_s29 = scalar_select %p326_p3, %s5913_s25, 1  ;;  %338 = vst.msk [vmem:[#allocation2 + $0x8] sm:$0xff] %vm336_vm0, %v5841_v0  ;;  %342 = vst.msk [vmem:[#allocation2 + $0x198] sm:$0xff] %vm336_vm0, %v5841_v0  ;;  %vm1525_vm4 = vcmask 1043456   ;;  %vm1344_vm5 = vcmask 130048   ;;  %vm1361_vm6 = vcmask 424960  }
  0x51   : > { %340 = vst.msk [vmem:[#allocation2 + $0x10] sm:$0x3] %vm339_vm1, %v5841_v0  ;;  %344 = vst.msk [vmem:[#allocation2 + $0x1a8] sm:$0x3] %vm339_vm1, %v5841_v0  ;;  %s5845_s11 = smov 108   ;;  %s5848_s12 = smov 88  }
  0x52   : > { %343 = vst.msk [vmem:[#allocation2 + $0x1a0] sm:$0xff] %vm336_vm0, %v5841_v0  ;;  %s4553_s27 = sshll.u32 %s6033_s29, 8  ;;  %s5846_s29 = smov 16   ;;  %vm1378_vm7 = vcmask 719872   ;;  %vm1395_vm8 = vcmask 1014784   ;;  %vm1310_vm9 = vcmask 588800  }
  0x53   : > { %364 = vst.msk [vmem:[#allocation2 + $0x41] sm:$0x1] %vm346_vm2, %v5841_v0  ;;  %347 = vst.msk [vmem:[#allocation2 + $0x18] sm:$0x1] %vm346_vm2, %v5841_v0  ;;  %s6077_s15 = scalar_lea.vmem %s8385_s1, %s4553_s27  ;;  %s6150_s30 = scalar_lea.vmem %s8384_s0, %s4553_s27  ;;  %vm1327_vm10 = vcmask 883712   ;;  %vm1412_vm11 = vcmask 261120  }
  0x54   : > { %348 = vst.msk [vmem:[#allocation2 + $0x30] sm:$0x1] %vm346_vm2, %v5841_v0  ;;  %349 = vst.msk [vmem:[#allocation2 + $0x48] sm:$0x1] %vm346_vm2, %v5841_v0  ;;  %v413_v1 = vld [vmem:[%s6077_s15 + $0x10] sm:$0xff]  ;;  %v411_v2 = vld [vmem:[%s6077_s15] sm:$0xff] }
  0x55   : > { %350 = vst.msk [vmem:[#allocation2 + $0x60] sm:$0x1] %vm346_vm2, %v5841_v0  ;;  %351 = vst.msk [vmem:[#allocation2 + $0x78] sm:$0x1] %vm346_vm2, %v5841_v0  ;;  %479 = vrot.lane.b32.xlu1 %v413_v1, %s5842_s8  ;;  %475 = vrot.lane.b32.xlu0 %v411_v2, %s5842_s8  ;;  %v414_v3 = vld [vmem:[%s6077_s15 + $0x18] sm:$0xff]  ;;  %v412_v4 = vld [vmem:[%s6077_s15 + $0x8] sm:$0xff] }
  0x56   : > { %352 = vst.msk [vmem:[#allocation2 + $0x90] sm:$0x1] %vm346_vm2, %v5841_v0  ;;  %353 = vst.msk [vmem:[#allocation2 + $0xa8] sm:$0x1] %vm346_vm2, %v5841_v0  ;;  %v416_v5 = vld [vmem:[%s6077_s15 + $0x28] sm:$0xff]  ;;  %v415_v6 = vld [vmem:[%s6077_s15 + $0x20] sm:$0xff] }
  0x57   : > { %354 = vst.msk [vmem:[#allocation2 + $0xc0] sm:$0x1] %vm346_vm2, %v5841_v0  ;;  %355 = vst.msk [vmem:[#allocation2 + $0xd8] sm:$0x1] %vm346_vm2, %v5841_v0  ;;  %v418_v7 = vld [vmem:[%s6077_s15 + $0x38] sm:$0xff]  ;;  %v417_v8 = vld [vmem:[%s6077_s15 + $0x30] sm:$0xff] }
  0x58   : > { %356 = vst.msk [vmem:[#allocation2 + $0xf0] sm:$0x1] %vm346_vm2, %v5841_v0  ;;  %357 = vst.msk [vmem:[#allocation2 + $0x108] sm:$0x1] %vm346_vm2, %v5841_v0  ;;  %v420_v9 = vld [vmem:[%s6077_s15 + $0x48] sm:$0xff]  ;;  %v419_v10 = vld [vmem:[%s6077_s15 + $0x40] sm:$0xff] }
  0x59   : > { %358 = vst.msk [vmem:[#allocation2 + $0x120] sm:$0x1] %vm346_vm2, %v5841_v0  ;;  %359 = vst.msk [vmem:[#allocation2 + $0x138] sm:$0x1] %vm346_vm2, %v5841_v0  ;;  %481 = vrot.lane.b32.xlu1 %v414_v3, %s5842_s8  ;;  %477 = vrot.lane.b32.xlu0 %v412_v4, %s5842_s8  ;;  %v422_v11 = vld [vmem:[%s6077_s15 + $0x58] sm:$0xff]  ;;  %v421_v12 = vld [vmem:[%s6077_s15 + $0x50] sm:$0xff] }
  0x5a   : > { %360 = vst.msk [vmem:[#allocation2 + $0x150] sm:$0x1] %vm346_vm2, %v5841_v0  ;;  %361 = vst.msk [vmem:[#allocation2 + $0x168] sm:$0x1] %vm346_vm2, %v5841_v0  ;;  %v424_v13 = vld [vmem:[%s6077_s15 + $0x68] sm:$0xff]  ;;  %v423_v14 = vld [vmem:[%s6077_s15 + $0x60] sm:$0xff] }
  0x5b   : > { %362 = vst.msk [vmem:[#allocation2 + $0x180] sm:$0x1] %vm346_vm2, %v5841_v0  ;;  %363 = vst.msk [vmem:[#allocation2 + $0x29] sm:$0x1] %vm346_vm2, %v5841_v0  ;;  %v426_v15 = vld [vmem:[%s6077_s15 + $0x78] sm:$0xff]  ;;  %v425_v16 = vld [vmem:[%s6077_s15 + $0x70] sm:$0xff] }
  0x5c   : > { %365 = vst.msk [vmem:[#allocation2 + $0x59] sm:$0x1] %vm346_vm2, %v5841_v0  ;;  %366 = vst.msk [vmem:[#allocation2 + $0x71] sm:$0x1] %vm346_vm2, %v5841_v0  ;;  %v427_v17 = vld [vmem:[%s6077_s15 + $0x80] sm:$0xff]  ;;  %v428_v18 = vld [vmem:[%s6077_s15 + $0x88] sm:$0xff] }
  0x5d   : > { %367 = vst.msk [vmem:[#allocation2 + $0x89] sm:$0x1] %vm346_vm2, %v5841_v0  ;;  %368 = vst.msk [vmem:[#allocation2 + $0xa1] sm:$0x1] %vm346_vm2, %v5841_v0  ;;  %485 = vrot.lane.b32.xlu1 %v416_v5, %s5842_s8  ;;  %483 = vrot.lane.b32.xlu0 %v415_v6, %s5842_s8  ;;  %v429_v19 = vld [vmem:[%s6077_s15 + $0x90] sm:$0xff]  ;;  %v430_v20 = vld [vmem:[%s6077_s15 + $0x98] sm:$0xff] }
  0x5e   : > { %369 = vst.msk [vmem:[#allocation2 + $0xb9] sm:$0x1] %vm346_vm2, %v5841_v0  ;;  %370 = vst.msk [vmem:[#allocation2 + $0xd1] sm:$0x1] %vm346_vm2, %v5841_v0  ;;  %v431_v21 = vld [vmem:[%s6077_s15 + $0xa0] sm:$0xff]  ;;  %v432_v22 = vld [vmem:[%s6077_s15 + $0xa8] sm:$0xff] }
  0x5f   : > { %371 = vst.msk [vmem:[#allocation2 + $0xe9] sm:$0x1] %vm346_vm2, %v5841_v0  ;;  %372 = vst.msk [vmem:[#allocation2 + $0x101] sm:$0x1] %vm346_vm2, %v5841_v0  ;;  %v433_v23 = vld [vmem:[%s6077_s15 + $0xb0] sm:$0xff]  ;;  %v434_v24 = vld [vmem:[%s6077_s15 + $0xb8] sm:$0xff] }
  0x60   : > { %373 = vst.msk [vmem:[#allocation2 + $0x119] sm:$0x1] %vm346_vm2, %v5841_v0  ;;  %374 = vst.msk [vmem:[#allocation2 + $0x131] sm:$0x1] %vm346_vm2, %v5841_v0  ;;  %v435_v25 = vld [vmem:[%s6077_s15 + $0xc0] sm:$0xff]  ;;  %v436_v26 = vld [vmem:[%s6077_s15 + $0xc8] sm:$0xff] }
  0x61   : > { %375 = vst.msk [vmem:[#allocation2 + $0x149] sm:$0x1] %vm346_vm2, %v5841_v0  ;;  %376 = vst.msk [vmem:[#allocation2 + $0x161] sm:$0x1] %vm346_vm2, %v5841_v0  ;;  %489 = vrot.lane.b32.xlu1 %v418_v7, %s5842_s8  ;;  %487 = vrot.lane.b32.xlu0 %v417_v8, %s5842_s8  ;;  %v437_v27 = vld [vmem:[%s6077_s15 + $0xd0] sm:$0xff]  ;;  %v438_v28 = vld [vmem:[%s6077_s15 + $0xd8] sm:$0xff] }
  0x62   : > { %377 = vst.msk [vmem:[#allocation2 + $0x179] sm:$0x1] %vm346_vm2, %v5841_v0  ;;  %378 = vst.msk [vmem:[#allocation2 + $0x191] sm:$0x1] %vm346_vm2, %v5841_v0  ;;  %v439_v29 = vld [vmem:[%s6077_s15 + $0xe0] sm:$0xff]  ;;  %v440_v30 = vld [vmem:[%s6077_s15 + $0xe8] sm:$0xff] }
  0x63   : > { %v653_v31 = vld [vmem:[#allocation2 + $0x1] sm:$0xff]  ;;  %v441_v32 = vld [vmem:[%s6077_s15 + $0xf0] sm:$0xff]  ;;  %v442_v34 = vld [vmem:[%s6077_s15 + $0xf8] sm:$0xff]  ;;  %s5847_s27 = smov 52   ;;  %s5849_s10 = smov 124   ;;  %vm1476_vm12 = vcmask 556032  }
  0x64   : > { %v654_v33 = vld [vmem:[#allocation2 + $0x9] sm:$0xff]  ;;  %v379_v40 = vld [vmem:[%s6150_s30] sm:$0xff]  ;;  %v382_v45 = vld [vmem:[%s6150_s30 + $0x18] sm:$0xff]  ;;  %s5850_s15 = smov 32   ;;  %s5852_s20 = smov 64  }
  0x65   : > { %493 = vrot.lane.b32.xlu1 %v420_v9, %s5842_s8  ;;  %491 = vrot.lane.b32.xlu0 %v419_v10, %s5842_s8  ;;  %v4947_v35 = vpack.i.bf16 %v654_v33, %v653_v31  ;;  %v669_v36 = vld [vmem:[#allocation2 + $0x2] sm:$0xff]  ;;  %v670_v37 = vld [vmem:[#allocation2 + $0xa] sm:$0xff]  ;;  %v386_v57 = vld [vmem:[%s6150_s30 + $0x38] sm:$0xff]  ;;  %s8406_s16 = sshll.u32 %s5913_s25, 12  ;;  %p8458_p7 = scmp.ne.s32.totalorder %s8412_s18, 0 }
  0x66   : > { %v4952_v38 = vpack.i.bf16 %v670_v37, %v669_v36  ;;  %v381_v39 = vld [vmem:[%s6150_s30 + $0x10] sm:$0xff]  ;;  %v380_v46 = vld [vmem:[%s6150_s30 + $0x8] sm:$0xff]  ;;  %v383_v52 = vld [vmem:[%s6150_s30 + $0x20] sm:$0xff] }
  0x67   : > { %v384_v51 = vld [vmem:[%s6150_s30 + $0x28] sm:$0xff]  ;;  %v385_v58 = vld [vmem:[%s6150_s30 + $0x30] sm:$0xff]  ;;  %v387_v4 = vld [vmem:[%s6150_s30 + $0x40] sm:$0xff] }
  0x68   : > { %v388_v3 = vld [vmem:[%s6150_s30 + $0x48] sm:$0xff]  ;;  %v393_v33 = vld [vmem:[%s6150_s30 + $0x70] sm:$0xff] }
  0x69   : > { %497 = vrot.lane.b32.xlu1 %v422_v11, %s5842_s8  ;;  %495 = vrot.lane.b32.xlu0 %v421_v12, %s5842_s8 }
  0x6d   : > { %501 = vrot.lane.b32.xlu1 %v424_v13, %s5842_s8  ;;  %499 = vrot.lane.b32.xlu0 %v423_v14, %s5842_s8  ;;  %v390_v13 = vld [vmem:[%s6150_s30 + $0x58] sm:$0xff]  ;;  %v389_v14 = vld [vmem:[%s6150_s30 + $0x50] sm:$0xff] }
  0x71   : > { %505 = vrot.lane.b32.xlu1 %v426_v15, %s5842_s8  ;;  %503 = vrot.lane.b32.xlu0 %v425_v16, %s5842_s8 }
  0x75   : > { %507 = vrot.lane.b32.xlu0 %v427_v17, %s5842_s8  ;;  %509 = vrot.lane.b32.xlu1 %v428_v18, %s5842_s8 }
  0x79   : > { %511 = vrot.lane.b32.xlu0 %v429_v19, %s5842_s8  ;;  %513 = vrot.lane.b32.xlu1 %v430_v20, %s5842_s8 }
  0x7d   : > { %515 = vrot.lane.b32.xlu0 %v431_v21, %s5842_s8  ;;  %517 = vrot.lane.b32.xlu1 %v432_v22, %s5842_s8  ;;  %v392_v22 = vld [vmem:[%s6150_s30 + $0x68] sm:$0xff] }
  0x81   : > { %519 = vrot.lane.b32.xlu0 %v433_v23, %s5842_s8  ;;  %521 = vrot.lane.b32.xlu1 %v434_v24, %s5842_s8  ;;  %v391_v23 = vld [vmem:[%s6150_s30 + $0x60] sm:$0xff] }
  0x85   : > { %523 = vrot.lane.b32.xlu0 %v435_v25, %s5842_s8  ;;  %525 = vrot.lane.b32.xlu1 %v436_v26, %s5842_s8 }
  0x89   : > { %527 = vrot.lane.b32.xlu0 %v437_v27, %s5842_s8  ;;  %529 = vrot.lane.b32.xlu1 %v438_v28, %s5842_s8 }
  0x8d   : > { %531 = vrot.lane.b32.xlu0 %v439_v29, %s5842_s8  ;;  %533 = vrot.lane.b32.xlu1 %v440_v30, %s5842_s8 }
  0x91   : > { %535 = vrot.lane.b32.xlu0 %v441_v32, %s5842_s8  ;;  %537 = vrot.lane.b32.xlu1 %v442_v34, %s5842_s8  ;;  %v394_v32 = vld [vmem:[%s6150_s30 + $0x78] sm:$0xff] }
  0x95   : > { %4948 = vrot.lane.b32.xlu0 %v4947_v35, %s5843_s7 }
  0x99   : > { %4953 = vrot.lane.b32.xlu0 %v4952_v38, %s5844_s19 }
  0xc7   : > { %v480_v41 = vpop.permute.xlu1 %479  ;;  %v476_v42 = vpop.permute.xlu0 %475 }
  0xc8   : > { %v574_v43 = vsel %vm571_vm3, %v381_v39, %v480_v41  ;;  %v572_v44 = vsel %vm571_vm3, %v379_v40, %v476_v42  ;;  %v395_v41 = vld [vmem:[%s6150_s30 + $0x80] sm:$0xff]  ;;  %v396_v42 = vld [vmem:[%s6150_s30 + $0x88] sm:$0xff] }
  0xc9   : > { %606 = vst.msk [vmem:[#allocation2 + $0x31] sm:$0xff] %vm336_vm0, %v574_v43  ;;  %604 = vst.msk [vmem:[#allocation2 + $0x19] sm:$0xff] %vm336_vm0, %v572_v44 }
  0xcb   : > { %v482_v47 = vpop.permute.xlu1 %481  ;;  %v478_v48 = vpop.permute.xlu0 %477 }
  0xcc   : > { %v575_v49 = vsel %vm571_vm3, %v382_v45, %v482_v47  ;;  %v573_v50 = vsel %vm571_vm3, %v380_v46, %v478_v48 }
  0xcd   : > { %607 = vst.msk [vmem:[#allocation2 + $0x39] sm:$0xff] %vm336_vm0, %v575_v49  ;;  %605 = vst.msk [vmem:[#allocation2 + $0x21] sm:$0xff] %vm336_vm0, %v573_v50 }
  0xcf   : > { %v486_v53 = vpop.permute.xlu1 %485  ;;  %v484_v54 = vpop.permute.xlu0 %483 }
  0xd0   : > { %v577_v55 = vsel %vm571_vm3, %v384_v51, %v486_v53  ;;  %v576_v56 = vsel %vm571_vm3, %v383_v52, %v484_v54  ;;  %v655_v61 = vld [vmem:[#allocation2 + $0x19] sm:$0xff]  ;;  %v6174_v1 = vld [vmem:[#allocation2 + $0x31] sm:$0xff] }
  0xd1   : > { %609 = vst.msk [vmem:[#allocation2 + $0x51] sm:$0xff] %vm336_vm0, %v577_v55  ;;  %608 = vst.msk [vmem:[#allocation2 + $0x49] sm:$0xff] %vm336_vm0, %v576_v56  ;;  %v397_v54 = vld [vmem:[%s6150_s30 + $0x90] sm:$0xff]  ;;  %v398_v55 = vld [vmem:[%s6150_s30 + $0x98] sm:$0xff] }
  0xd3   : > { %v490_v59 = vpop.permute.xlu1 %489  ;;  %v488_v60 = vpop.permute.xlu0 %487 }
  0xd4   : > { %v579_v62 = vsel %vm571_vm3, %v386_v57, %v490_v59  ;;  %v578_v63 = vsel %vm571_vm3, %v385_v58, %v488_v60  ;;  %v656_v0 = vld [vmem:[#allocation2 + $0x21] sm:$0xff]  ;;  %v6176_v2 = vld [vmem:[#allocation2 + $0x39] sm:$0xff] }
  0xd5   : > { %611 = vst.msk [vmem:[#allocation2 + $0x69] sm:$0xff] %vm336_vm0, %v579_v62  ;;  %610 = vst.msk [vmem:[#allocation2 + $0x61] sm:$0xff] %vm336_vm0, %v578_v63  ;;  %v6182_v5 = vpack.i.bf16 %v656_v0, %v655_v61  ;;  %v6186_v6 = vpack.i.bf16 %v6176_v2, %v6174_v1  ;;  %v6254_v43 = vld [vmem:[#allocation2 + $0x32] sm:$0xff]  ;;  %v6256_v44 = vld [vmem:[#allocation2 + $0x3a] sm:$0xff] }
  0xd6   : > { %v6272_v52 = vpack.i.bf16 %v6256_v44, %v6254_v43  ;;  %v671_v53 = vld [vmem:[#allocation2 + $0x1a] sm:$0xff]  ;;  %v672_v56 = vld [vmem:[#allocation2 + $0x22] sm:$0xff] }
  0xd7   : > { %v494_v7 = vpop.permute.xlu1 %493  ;;  %v492_v8 = vpop.permute.xlu0 %491  ;;  %4958 = vrot.lane.b32.xlu1 %v6182_v5, %s5843_s7  ;;  %4963 = vrot.lane.b32.xlu0 %v6186_v6, %s5843_s7  ;;  %v6288_v63 = vpack.i.bf16 %v672_v56, %v671_v53 }
  0xd8   : > { %v581_v9 = vsel %vm571_vm3, %v388_v3, %v494_v7  ;;  %v580_v10 = vsel %vm571_vm3, %v387_v4, %v492_v8  ;;  %v6194_v11 = vld [vmem:[#allocation2 + $0x49] sm:$0xff]  ;;  %v6196_v12 = vld [vmem:[#allocation2 + $0x51] sm:$0xff]  ;;  %v399_v4 = vld [vmem:[%s6150_s30 + $0xa0] sm:$0xff] }
  0xd9   : > { %613 = vst.msk [vmem:[#allocation2 + $0x81] sm:$0xff] %vm336_vm0, %v581_v9  ;;  %612 = vst.msk [vmem:[#allocation2 + $0x79] sm:$0xff] %vm336_vm0, %v580_v10  ;;  %v6204_v15 = vpack.i.bf16 %v6196_v12, %v6194_v11  ;;  %v6294_v3 = vld [vmem:[#allocation2 + $0x4a] sm:$0xff]  ;;  %v6300_v8 = vld [vmem:[#allocation2 + $0x52] sm:$0xff] }
  0xda   : > { %v400_v7 = vld [vmem:[%s6150_s30 + $0xa8] sm:$0xff] }
  0xdb   : > { %v498_v16 = vpop.permute.xlu1 %497  ;;  %v496_v17 = vpop.permute.xlu0 %495  ;;  %4968 = vrot.lane.b32.xlu1 %v6204_v15, %s5843_s7 }
  0xdc   : > { %v583_v18 = vsel %vm571_vm3, %v390_v13, %v498_v16  ;;  %v582_v19 = vsel %vm571_vm3, %v389_v14, %v496_v17  ;;  %v6210_v20 = vld [vmem:[#allocation2 + $0x61] sm:$0xff]  ;;  %v6212_v21 = vld [vmem:[#allocation2 + $0x69] sm:$0xff] }
  0xdd   : > { %615 = vst.msk [vmem:[#allocation2 + $0x99] sm:$0xff] %vm336_vm0, %v583_v18  ;;  %614 = vst.msk [vmem:[#allocation2 + $0x91] sm:$0xff] %vm336_vm0, %v582_v19  ;;  %v6220_v24 = vpack.i.bf16 %v6212_v21, %v6210_v20  ;;  %v6278_v57 = vld [vmem:[#allocation2 + $0x62] sm:$0xff]  ;;  %v6280_v58 = vld [vmem:[#allocation2 + $0x6a] sm:$0xff]  ;;  %v6314_v18 = vpack.i.bf16 %v6300_v8, %v6294_v3 }
  0xde   : > { %v6292_v0 = vpack.i.bf16 %v6280_v58, %v6278_v57 }
  0xdf   : > { %v502_v25 = vpop.permute.xlu1 %501  ;;  %v500_v26 = vpop.permute.xlu0 %499  ;;  %4973 = vrot.lane.b32.xlu0 %v6220_v24, %s5843_s7 }
  0xe0   : > { %v585_v27 = vsel %vm571_vm3, %v392_v22, %v502_v25  ;;  %v584_v28 = vsel %vm571_vm3, %v391_v23, %v500_v26  ;;  %v6226_v29 = vld [vmem:[#allocation2 + $0x79] sm:$0xff]  ;;  %v6228_v30 = vld [vmem:[#allocation2 + $0x81] sm:$0xff]  ;;  %v401_v22 = vld [vmem:[%s6150_s30 + $0xb0] sm:$0xff] }
  0xe1   : > { %617 = vst.msk [vmem:[#allocation2 + $0xb1] sm:$0xff] %vm336_vm0, %v585_v27  ;;  %616 = vst.msk [vmem:[#allocation2 + $0xa9] sm:$0xff] %vm336_vm0, %v584_v28  ;;  %v6234_v31 = vpack.i.bf16 %v6228_v30, %v6226_v29  ;;  %v402_v23 = vld [vmem:[%s6150_s30 + $0xb8] sm:$0xff]  ;;  %v6326_v26 = vld [vmem:[#allocation2 + $0x82] sm:$0xff] }
  0xe2   : > { %v6324_v25 = vld [vmem:[#allocation2 + $0x7a] sm:$0xff] }
  0xe3   : > { %4978 = vrot.lane.b32.xlu1 %v6234_v31, %s5843_s7  ;;  %v506_v34 = vpop.permute.xlu1 %505  ;;  %v504_v35 = vpop.permute.xlu0 %503  ;;  %v686_v27 = vld [vmem:[#allocation2 + $0x20] sm:$0xff] }
  0xe4   : > { %v6240_v36 = vld [vmem:[#allocation2 + $0x91] sm:$0xff]  ;;  %v6242_v37 = vld [vmem:[#allocation2 + $0x99] sm:$0xff]  ;;  %v587_v38 = vsel %vm571_vm3, %v394_v32, %v506_v34  ;;  %v586_v39 = vsel %vm571_vm3, %v393_v33, %v504_v35 }
  0xe5   : > { %v6248_v40 = vpack.i.bf16 %v6242_v37, %v6240_v36  ;;  %619 = vst.msk [vmem:[#allocation2 + $0xc9] sm:$0xff] %vm336_vm0, %v587_v38  ;;  %618 = vst.msk [vmem:[#allocation2 + $0xc1] sm:$0xff] %vm336_vm0, %v586_v39  ;;  %v6302_v9 = vld [vmem:[#allocation2 + $0x92] sm:$0xff]  ;;  %v6304_v10 = vld [vmem:[#allocation2 + $0x9a] sm:$0xff]  ;;  %v6336_v38 = vpack.i.bf16 %v6326_v26, %v6324_v25 }
  0xe6   : > { %v6318_v19 = vpack.i.bf16 %v6304_v10, %v6302_v9  ;;  %v685_v33 = vld [vmem:[#allocation2 + $0x18] sm:$0xff] }
  0xe7   : > { %4983 = vrot.lane.b32.xlu0 %v6248_v40, %s5843_s7  ;;  %v508_v45 = vpop.permute.xlu0 %507  ;;  %v510_v46 = vpop.permute.xlu1 %509  ;;  %v5027_v39 = vpack.i.bf16 %v686_v27, %v685_v33  ;;  %v407_v33 = vld [vmem:[%s6150_s30 + $0xe0] sm:$0xff] }
  0xe8   : > { %v6260_v47 = vld [vmem:[#allocation2 + $0xa9] sm:$0xff]  ;;  %v6262_v48 = vld [vmem:[#allocation2 + $0xb1] sm:$0xff]  ;;  %v588_v49 = vsel %vm571_vm3, %v395_v41, %v508_v45  ;;  %v589_v50 = vsel %vm571_vm3, %v396_v42, %v510_v46  ;;  %v403_v42 = vld [vmem:[%s6150_s30 + $0xc0] sm:$0xff] }
  0xe9   : > { %v6268_v51 = vpack.i.bf16 %v6262_v48, %v6260_v47  ;;  %620 = vst.msk [vmem:[#allocation2 + $0xd9] sm:$0xff] %vm336_vm0, %v588_v49  ;;  %621 = vst.msk [vmem:[#allocation2 + $0xe1] sm:$0xff] %vm336_vm0, %v589_v50  ;;  %v689_v41 = vld [vmem:[#allocation2 + $0x48] sm:$0xff]  ;;  %v6344_v49 = vld [vmem:[#allocation2 + $0xb2] sm:$0xff] }
  0xea   : > { %v404_v45 = vld [vmem:[%s6150_s30 + $0xc8] sm:$0xff]  ;;  %v690_v50 = vld [vmem:[#allocation2 + $0x50] sm:$0xff] }
  0xeb   : > { %4988 = vrot.lane.b32.xlu1 %v6268_v51, %s5843_s7  ;;  %4998 = vrot.lane.b32.xlu0 %v6272_v52, %s5844_s19  ;;  %v512_v59 = vpop.permute.xlu0 %511  ;;  %v514_v60 = vpop.permute.xlu1 %513  ;;  %v6342_v46 = vld [vmem:[#allocation2 + $0xaa] sm:$0xff] }
  0xec   : > { %v590_v61 = vsel %vm571_vm3, %v397_v54, %v512_v59  ;;  %v591_v62 = vsel %vm571_vm3, %v398_v55, %v514_v60  ;;  %v6353_v59 = vpack.i.bf16 %v6344_v49, %v6342_v46  ;;  %v6355_v60 = vpack.i.bf16 %v690_v50, %v689_v41  ;;  %v698_v41 = vld [vmem:[#allocation2 + $0xb0] sm:$0xff] }
  0xed   : > { %622 = vst.msk [vmem:[#allocation2 + $0xf1] sm:$0xff] %vm336_vm0, %v590_v61  ;;  %623 = vst.msk [vmem:[#allocation2 + $0xf9] sm:$0xff] %vm336_vm0, %v591_v62  ;;  %v405_v61 = vld [vmem:[%s6150_s30 + $0xd0] sm:$0xff]  ;;  %v406_v62 = vld [vmem:[%s6150_s30 + $0xd8] sm:$0xff] }
  0xef   : > { %4993 = vrot.lane.b32.xlu1 %v6288_v63, %s5844_s19  ;;  %5008 = vrot.lane.b32.xlu0 %v6292_v0, %s5844_s19  ;;  %v516_v13 = vpop.permute.xlu0 %515  ;;  %v518_v14 = vpop.permute.xlu1 %517 }
  0xf0   : > { %v592_v16 = vsel %vm571_vm3, %v399_v4, %v516_v13  ;;  %v593_v17 = vsel %vm571_vm3, %v400_v7, %v518_v14  ;;  %v688_v4 = vld [vmem:[#allocation2 + $0x38] sm:$0xff]  ;;  %v694_v13 = vld [vmem:[#allocation2 + $0x80] sm:$0xff] }
  0xf1   : > { %624 = vst.msk [vmem:[#allocation2 + $0x109] sm:$0xff] %vm336_vm0, %v592_v16  ;;  %625 = vst.msk [vmem:[#allocation2 + $0x111] sm:$0xff] %vm336_vm0, %v593_v17  ;;  %v693_v7 = vld [vmem:[#allocation2 + $0x78] sm:$0xff]  ;;  %v687_v17 = vld [vmem:[#allocation2 + $0x30] sm:$0xff] }
  0xf2   : > { %v6367_v27 = vpack.i.bf16 %v688_v4, %v687_v17  ;;  %v696_v4 = vld [vmem:[#allocation2 + $0x98] sm:$0xff] }
  0xf3   : > { %5003 = vrot.lane.b32.xlu1 %v6314_v18, %s5844_s19  ;;  %5018 = vrot.lane.b32.xlu0 %v6318_v19, %s5844_s19  ;;  %v520_v28 = vpop.permute.xlu0 %519  ;;  %v522_v32 = vpop.permute.xlu1 %521 }
  0xf4   : > { %v594_v34 = vsel %vm571_vm3, %v401_v22, %v520_v28  ;;  %v595_v35 = vsel %vm571_vm3, %v402_v23, %v522_v32  ;;  %v6369_v28 = vpack.i.bf16 %v694_v13, %v693_v7  ;;  %v691_v32 = vld [vmem:[#allocation2 + $0x60] sm:$0xff] }
  0xf5   : > { %626 = vst.msk [vmem:[#allocation2 + $0x121] sm:$0xff] %vm336_vm0, %v594_v34  ;;  %627 = vst.msk [vmem:[#allocation2 + $0x129] sm:$0xff] %vm336_vm0, %v595_v35  ;;  %v408_v34 = vld [vmem:[%s6150_s30 + $0xe8] sm:$0xff] }
  0xf6   : > { %v692_v35 = vld [vmem:[#allocation2 + $0x68] sm:$0xff] }
  0xf7   : > { %5013 = vrot.lane.b32.xlu1 %v6336_v38, %s5844_s19  ;;  %5028 = vrot.lane.b32.xlu0 %v5027_v39, %s5845_s11  ;;  %v524_v53 = vpop.permute.xlu0 %523  ;;  %v526_v54 = vpop.permute.xlu1 %525  ;;  %v697_v39 = vld [vmem:[#allocation2 + $0xa8] sm:$0xff] }
  0xf8   : > { %v596_v55 = vsel %vm571_vm3, %v403_v42, %v524_v53  ;;  %v597_v56 = vsel %vm571_vm3, %v404_v45, %v526_v54  ;;  %v6381_v54 = vpack.i.bf16 %v692_v35, %v691_v32  ;;  %v1459_v35 = vld [vmem:[#allocation6 + $0xf0] sm:$0xff] }
  0xf9   : > { %628 = vst.msk [vmem:[#allocation2 + $0x139] sm:$0xff] %vm336_vm0, %v596_v55  ;;  %629 = vst.msk [vmem:[#allocation2 + $0x141] sm:$0xff] %vm336_vm0, %v597_v56  ;;  %v6383_v55 = vpack.i.bf16 %v698_v41, %v697_v39  ;;  %v409_v56 = vld [vmem:[%s6150_s30 + $0xf0] sm:$0xff]  ;;  %v1458_v39 = vld [vmem:[#allocation6 + $0xe8] sm:$0xff] }
  0xfa   : > { %v1442_v41 = vld [vmem:[#allocation6 + $0x68] sm:$0xff] }
  0xfb   : > { %5023 = vrot.lane.b32.xlu1 %v6353_v59, %s5844_s19  ;;  %5038 = vrot.lane.b32.xlu0 %v6355_v60, %s5845_s11  ;;  %v528_v14 = vpop.permute.xlu0 %527  ;;  %v530_v16 = vpop.permute.xlu1 %529 }
  0xfc   : > { %v598_v22 = vsel %vm571_vm3, %v405_v61, %v528_v14  ;;  %v599_v23 = vsel %vm571_vm3, %v406_v62, %v530_v16  ;;  %v410_v61 = vld [vmem:[%s6150_s30 + $0xf8] sm:$0xff]  ;;  %v695_v62 = vld [vmem:[#allocation2 + $0x90] sm:$0xff]  ;;  %v699_v14 = vld [vmem:[#allocation2 + $0xc0] sm:$0xff] }
  0xfd   : > { %630 = vst.msk [vmem:[#allocation2 + $0x151] sm:$0xff] %vm336_vm0, %v598_v22  ;;  %631 = vst.msk [vmem:[#allocation2 + $0x159] sm:$0xff] %vm336_vm0, %v599_v23  ;;  %v700_v16 = vld [vmem:[#allocation2 + $0xc8] sm:$0xff]  ;;  %v6395_v23 = vpack.i.bf16 %v696_v4, %v695_v62 }
  0xfe   : > { %v6403_v32 = vpack.i.bf16 %v700_v16, %v699_v14  ;;  %v1452_v62 = vld [vmem:[#allocation6 + $0xb8] sm:$0xff]  ;;  %v1433_v16 = vld [vmem:[#allocation6 + $0x20] sm:$0xff] }
  0xff   : > { %5033 = vrot.lane.b32.xlu1 %v6367_v27, %s5845_s11  ;;  %5048 = vrot.lane.b32.xlu0 %v6369_v28, %s5845_s11  ;;  %v532_v42 = vpop.permute.xlu0 %531  ;;  %v534_v45 = vpop.permute.xlu1 %533  ;;  %v1436_v4 = vld [vmem:[#allocation6 + $0x38] sm:$0xff] }
 0x100   : > { %v600_v50 = vsel %vm571_vm3, %v407_v33, %v532_v42  ;;  %v601_v53 = vsel %vm571_vm3, %v408_v34, %v534_v45  ;;  %v1460_v33 = vld [vmem:[#allocation6 + $0xf8] sm:$0xff]  ;;  %v1457_v42 = vld [vmem:[#allocation6 + $0xe0] sm:$0xff] }
 0x101   : > { %632 = vst.msk [vmem:[#allocation2 + $0x169] sm:$0xff] %vm336_vm0, %v600_v50  ;;  %633 = vst.msk [vmem:[#allocation2 + $0x171] sm:$0xff] %vm336_vm0, %v601_v53  ;;  %4557 = vmatprep.subr.mxu0 %v1460_v33  ;;  %v1444_v34 = vld [vmem:[#allocation6 + $0x78] sm:$0xff]  ;;  %v1439_v53 = vld [vmem:[#allocation6 + $0x50] sm:$0xff] }
 0x102   : > { %4558 = vmatpush3.msra.mxu0 %v1444_v34  ;;  %v6417_v45 = vld [vmem:[#allocation2 + $0xc1] sm:$0xff]  ;;  %v6443_v14 = vld [vmem:[#allocation2 + $0xca] sm:$0xff]  ;;  %v1446_v33 = vld [vmem:[#allocation6 + $0x88] sm:$0xff] }
 0x103   : > { %5043 = vrot.lane.b32.xlu1 %v6381_v54, %s5845_s11  ;;  %5058 = vrot.lane.b32.xlu0 %v6383_v55, %s5845_s11  ;;  %v536_v7 = vpop.permute.xlu0 %535  ;;  %v538_v13 = vpop.permute.xlu1 %537  ;;  %v1440_v50 = vld [vmem:[#allocation6 + $0x58] sm:$0xff]  ;;  %v1430_v34 = vld [vmem:[#allocation6 + $0x8] sm:$0xff] }
 0x104   : > { %v602_v17 = vsel %vm571_vm3, %v409_v56, %v536_v7  ;;  %v603_v22 = vsel %vm571_vm3, %v410_v61, %v538_v13  ;;  %4559 = vmatprep.subr.mxu0 %v1459_v35  ;;  %v1454_v56 = vld [vmem:[#allocation6 + $0xc8] sm:$0xff]  ;;  %v1437_v61 = vld [vmem:[#allocation6 + $0x40] sm:$0xff]  ;;  %v1451_v7 = vld [vmem:[#allocation6 + $0xb0] sm:$0xff] }
 0x105   : > { %634 = vst.msk [vmem:[#allocation2 + $0x181] sm:$0xff] %vm336_vm0, %v602_v17  ;;  %635 = vst.msk [vmem:[#allocation2 + $0x189] sm:$0xff] %vm336_vm0, %v603_v22  ;;  %v1450_v13 = vld [vmem:[#allocation6 + $0xa8] sm:$0xff]  ;;  %v1448_v17 = vld [vmem:[#allocation6 + $0x98] sm:$0xff] }
 0x106   : > { %v1431_v22 = vld [vmem:[#allocation6 + $0x10] sm:$0xff]  ;;  %v1445_v35 = vld [vmem:[#allocation6 + $0x80] sm:$0xff] }
 0x107   : > { %5053 = vrot.lane.b32.xlu1 %v6395_v23, %s5845_s11  ;;  %5068 = vrot.lane.b32.xlu0 %v6182_v5, %s5846_s29  ;;  %v1443_v5 = vld [vmem:[#allocation6 + $0x70] sm:$0xff] }
 0x108   : > { %4560 = vmatpush3.msra.mxu0 %v1443_v5  ;;  %v748_v5 = vld [vmem:[#allocation2 + $0xd8] sm:$0xff] }
 0x109   : > { %4561 = vmatprep.subr.mxu0 %v1458_v39  ;;  %v749_v39 = vld [vmem:[#allocation2 + $0xe0] sm:$0xff] }
 0x10a   : > { %4562 = vmatpush3.msra.mxu0 %v1442_v41  ;;  %v1461_v41 = vld [vmem:[#allocation6 + $0x100] sm:$0xff] }
 0x10b   : > { %5063 = vrot.lane.b32.xlu1 %v6403_v32, %s5845_s11  ;;  %5078 = vrot.lane.b32.xlu0 %v6204_v15, %s5846_s29  ;;  %v1441_v15 = vld [vmem:[#allocation6 + $0x60] sm:$0xff] }
 0x10c   : > { %4563 = vmatprep.subr.mxu0 %v1457_v42 }
 0x10d   : > { %4564 = vmatpush3.msra.mxu0 %v1441_v15  ;;  %v6523_v15 = vld [vmem:[#allocation2 + $0xe1] sm:$0xff] }
 0x10f   : > { %5073 = vrot.lane.b32.xlu1 %v6186_v6, %s5846_s29  ;;  %5088 = vrot.lane.b32.xlu0 %v6234_v31, %s5846_s29  ;;  %v1456_v6 = vld [vmem:[#allocation6 + $0xd8] sm:$0xff] }
 0x110   : > { %v6419_v31 = vld [vmem:[#allocation2 + $0xc9] sm:$0xff]  ;;  %4565 = vmatprep.subr.mxu0 %v1456_v6 }
 0x111   : > { %4566 = vmatpush3.msra.mxu0 %v1440_v50 }
 0x113   : > { %5083 = vrot.lane.b32.xlu1 %v6220_v24, %s5846_s29  ;;  %5098 = vrot.lane.b32.xlu0 %v6268_v51, %s5846_s29  ;;  %v1455_v24 = vld [vmem:[#allocation6 + $0xd0] sm:$0xff]  ;;  %v6427_v51 = vpack.i.bf16 %v6419_v31, %v6417_v45 }
 0x114   : > { %4567 = vmatprep.subr.mxu0 %v1455_v24 }
 0x115   : > { %4568 = vmatpush3.msra.mxu0 %v1439_v53  ;;  %v1933_v53 = vld [vmem:[%s6021_s26 + $0x10] sm:$0xff] }
 0x116   : > { %4569 = vmatprep.subr.mxu0 %v1454_v56 }
 0x117   : > { %5093 = vrot.lane.b32.xlu1 %v6248_v40, %s5846_s29  ;;  %5108 = vrot.lane.b32.xlu0 %v6288_v63, %s5847_s27  ;;  %v1438_v40 = vld [vmem:[#allocation6 + $0x48] sm:$0xff]  ;;  %v1453_v63 = vld [vmem:[#allocation6 + $0xc0] sm:$0xff] }
 0x118   : > { %4570 = vmatpush3.msra.mxu0 %v1438_v40 }
 0x119   : > { %4571 = vmatprep.subr.mxu0 %v1453_v63  ;;  %v1932_v63 = vld [vmem:[%s6021_s26 + $0x8] sm:$0xff] }
 0x11a   : > { %4572 = vmatpush3.msra.mxu0 %v1437_v61  ;;  %v1935_v61 = vld [vmem:[%s6021_s26 + $0x20] sm:$0xff] }
 0x11b   : > { %5103 = vrot.lane.b32.xlu1 %v6427_v51, %s5846_s29  ;;  %5118 = vrot.lane.b32.xlu0 %v6314_v18, %s5847_s27  ;;  %v1435_v18 = vld [vmem:[#allocation6 + $0x30] sm:$0xff] }
 0x11c   : > { %4573 = vmatprep.subr.mxu0 %v1452_v62 }
 0x11d   : > { %4574 = vmatpush3.msra.mxu0 %v1436_v4 }
 0x11e   : > { %4575 = vmatprep.subr.mxu0 %v1451_v7  ;;  %v3261_v7 = vld [vmem:[#allocation6 + $0xf8] sm:$0xff] }
 0x11f   : > { %5113 = vrot.lane.b32.xlu1 %v6272_v52, %s5847_s27  ;;  %5128 = vrot.lane.b32.xlu0 %v6336_v38, %s5847_s27  ;;  %v6441_v52 = vld [vmem:[#allocation2 + $0xc2] sm:$0xff]  ;;  %v1434_v38 = vld [vmem:[#allocation6 + $0x28] sm:$0xff] }
 0x120   : > { %4576 = vmatpush3.msra.mxu0 %v1435_v18  ;;  %v1934_v18 = vld [vmem:[%s6021_s26 + $0x18] sm:$0xff] }
 0x121   : > { %4577 = vmatprep.subr.mxu0 %v1450_v13  ;;  %v1937_v13 = vld [vmem:[%s6021_s26 + $0x30] sm:$0xff] }
 0x122   : > { %4578 = vmatpush3.msra.mxu0 %v1434_v38  ;;  %v1936_v38 = vld [vmem:[%s6021_s26 + $0x28] sm:$0xff] }
 0x123   : > { %5123 = vrot.lane.b32.xlu1 %v6292_v0, %s5847_s27  ;;  %5138 = vrot.lane.b32.xlu0 %v6353_v59, %s5847_s27  ;;  %v1449_v0 = vld [vmem:[#allocation6 + $0xa0] sm:$0xff]  ;;  %v6451_v59 = vpack.i.bf16 %v6443_v14, %v6441_v52 }
 0x124   : > { %4579 = vmatprep.subr.mxu0 %v1449_v0  ;;  %v1939_v0 = vld [vmem:[%s6021_s26 + $0x40] sm:$0xff] }
 0x125   : > { %4580 = vmatpush3.msra.mxu0 %v1433_v16 }
 0x126   : > { %4581 = vmatprep.subr.mxu0 %v1448_v17 }
 0x127   : > { %5133 = vrot.lane.b32.xlu1 %v6318_v19, %s5847_s27  ;;  %5148 = vrot.lane.b32.xlu0 %v6367_v27, %s5848_s12  ;;  %v1432_v19 = vld [vmem:[#allocation6 + $0x18] sm:$0xff]  ;;  %v1447_v27 = vld [vmem:[#allocation6 + $0x90] sm:$0xff] }
 0x128   : > { %4582 = vmatpush3.msra.mxu0 %v1432_v19  ;;  %v1938_v19 = vld [vmem:[%s6021_s26 + $0x38] sm:$0xff] }
 0x129   : > { %4583 = vmatprep.subr.mxu0 %v1447_v27  ;;  %v1941_v27 = vld [vmem:[%s6021_s26 + $0x50] sm:$0xff] }
 0x12a   : > { %4584 = vmatpush3.msra.mxu0 %v1431_v22 }
 0x12b   : > { %5143 = vrot.lane.b32.xlu1 %v6451_v59, %s5847_s27  ;;  %5158 = vrot.lane.b32.xlu0 %v6381_v54, %s5848_s12  ;;  %v1429_v54 = vld [vmem:[#allocation6] sm:$0xff] }
 0x12c   : > { %4585 = vmatprep.subr.mxu0 %v1446_v33 }
 0x12d   : > { %4586 = vmatpush3.msra.mxu0 %v1430_v34  ;;  %v1940_v34 = vld [vmem:[%s6021_s26 + $0x48] sm:$0xff] }
 0x12e   : > { %4587 = vmatprep.subr.mxu0 %v1445_v35  ;;  %v1943_v35 = vld [vmem:[%s6021_s26 + $0x60] sm:$0xff] }
 0x12f   : > { %5153 = vrot.lane.b32.xlu1 %v6355_v60, %s5848_s12  ;;  %5168 = vrot.lane.b32.xlu0 %v6395_v23, %s5848_s12  ;;  %v6469_v60 = vpack.i.bf16 %v749_v39, %v748_v5  ;;  %v1942_v39 = vld [vmem:[%s6021_s26 + $0x58] sm:$0xff] }
 0x130   : > { %4588 = vmatpush3.msra.mxu0 %v1429_v54 }
 0x133   : > { %5163 = vrot.lane.b32.xlu1 %v6369_v28, %s5848_s12  ;;  %5178 = vrot.lane.b32.xlu0 %v6403_v32, %s5848_s12  ;;  %v1469_v28 = vld [vmem:[#allocation6 + $0x140] sm:$0xf] }
 0x134   : > { %4767 = vmatprep.subr.msk.mxu1 %vm1525_vm4, %v1469_v28 }
 0x135   : > { %4768 = vmatpush3.msk.msra.mxu1 %vm1525_vm4, %v1469_v28  ;;  %v1945_v28 = vld [vmem:[%s6021_s26 + $0x70] sm:$0xff] }
 0x137   : > { %5173 = vrot.lane.b32.xlu1 %v6383_v55, %s5848_s12  ;;  %1182 = vrot.lane.b32.xlu0 %v6174_v1, %s5849_s10  ;;  %v1468_v55 = vld [vmem:[#allocation6 + $0x138] sm:$0xff]  ;;  %v6485_v1 = vpop.permute.xlu0 %4948 }
 0x138   : > { %4769 = vmatprep.subr.mxu1 %v1468_v55 }
 0x139   : > { %4770 = vmatpush3.msra.mxu1 %v1468_v55 }
 0x13b   : > { %5183 = vrot.lane.b32.xlu1 %v6469_v60, %s5848_s12  ;;  %1186 = vrot.lane.b32.xlu0 %v6194_v11, %s5849_s10  ;;  %v1466_v11 = vld [vmem:[#allocation6 + $0x128] sm:$0xff] }
 0x13f   : > { %1184 = vrot.lane.b32.xlu1 %v6176_v2, %s5849_s10  ;;  %1190 = vrot.lane.b32.xlu0 %v6210_v20, %s5849_s10  ;;  %v1467_v2 = vld [vmem:[#allocation6 + $0x130] sm:$0xff]  ;;  %v6491_v20 = vpop.permute.xlu0 %4953 }
 0x140   : > { %4771 = vmatprep.subr.mxu1 %v1467_v2 }
 0x141   : > { %4772 = vmatpush3.msra.mxu1 %v1467_v2 }
 0x142   : > { %4773 = vmatprep.subr.mxu1 %v1466_v11 }
 0x143   : > { %1188 = vrot.lane.b32.xlu1 %v6196_v12, %s5849_s10  ;;  %1194 = vrot.lane.b32.xlu0 %v6226_v29, %s5849_s10  ;;  %v1465_v12 = vld [vmem:[#allocation6 + $0x120] sm:$0xff]  ;;  %v1464_v29 = vld [vmem:[#allocation6 + $0x118] sm:$0xff] }
 0x144   : > { %4774 = vmatpush3.msra.mxu1 %v1466_v11  ;;  %v1944_v11 = vld [vmem:[%s6021_s26 + $0x68] sm:$0xff] }
 0x145   : > { %4775 = vmatprep.subr.mxu1 %v1465_v12 }
 0x146   : > { %4776 = vmatpush3.msra.mxu1 %v1465_v12 }
 0x147   : > { %1192 = vrot.lane.b32.xlu1 %v6212_v21, %s5849_s10  ;;  %1198 = vrot.lane.b32.xlu0 %v6240_v36, %s5849_s10  ;;  %v1463_v36 = vld [vmem:[#allocation6 + $0x110] sm:$0xff] }
 0x148   : > { %4777 = vmatprep.subr.mxu1 %v1464_v29 }
 0x149   : > { %v6497_v21 = vpop.permute.xlu1 %4958  ;;  %v6503_v23 = vpop.permute.xlu0 %4963  ;;  %4778 = vmatpush3.msra.mxu1 %v1464_v29 }
 0x14a   : > { %4779 = vmatprep.subr.mxu1 %v1463_v36 }
 0x14b   : > { %1196 = vrot.lane.b32.xlu1 %v6228_v30, %s5849_s10  ;;  %1202 = vrot.lane.b32.xlu0 %v6260_v47, %s5849_s10  ;;  %v6505_v30 = vld [vmem:[#allocation2 + $0xd9] sm:$0xff] }
 0x14c   : > { %v1462_v47 = vld [vmem:[#allocation6 + $0x108] sm:$0xff]  ;;  %4780 = vmatpush3.msra.mxu1 %v1463_v36  ;;  %v5192_v36 = vpack.i.bf16 %v6523_v15, %v6505_v30 }
 0x14d   : > { %4781 = vmatprep.subr.mxu1 %v1462_v47 }
 0x14e   : > { %4782 = vmatpush3.msra.mxu1 %v1462_v47  ;;  %v1946_v47 = vld [vmem:[%s6021_s26 + $0x78] sm:$0xff] }
 0x14f   : > { %1200 = vrot.lane.b32.xlu1 %v6242_v37, %s5849_s10  ;;  %1206 = vrot.lane.b32.xlu0 %v6417_v45, %s5849_s10  ;;  %v6511_v37 = vpop.permute.xlu1 %4968 }
 0x150   : > { %4783 = vmatprep.subr.mxu1 %v1461_v41 }
 0x151   : > { %v6513_v32 = vpop.permute.xlu0 %4973  ;;  %4784 = vmatpush3.msra.mxu1 %v1461_v41 }
 0x152   : > { %4662 = vmatprep.subr.mxu1 %v3261_v7  ;;  %v2542_v7 = vld [vmem:[#allocation2 + $0xf0] sm:$0xff] }
 0x153   : > { %1204 = vrot.lane.b32.xlu1 %v6262_v48, %s5849_s10  ;;  %1210 = vrot.lane.b32.xlu0 %v6505_v30, %s5849_s10 }
 0x155   : > { %v6519_v48 = vpop.permute.xlu1 %4978 }
 0x157   : > { %1208 = vrot.lane.b32.xlu1 %v6419_v31, %s5849_s10  ;;  %1246 = vrot.lane.b32.xlu0 %v6254_v43, %s5850_s15 }
 0x159   : > { %v6521_v42 = vpop.permute.xlu0 %4983 }
 0x15b   : > { %1212 = vrot.lane.b32.xlu1 %v6523_v15, %s5849_s10  ;;  %1250 = vrot.lane.b32.xlu0 %v6294_v3, %s5850_s15 }
 0x15d   : > { %v6529_v6 = vpop.permute.xlu1 %4988  ;;  %v6531_v45 = vpop.permute.xlu0 %4998 }
 0x15e   : > { %8420 = vst [vmem:[#allocation15_spill] sm:$0xff] %v6529_v6 }
 0x15f   : > { %1248 = vrot.lane.b32.xlu1 %v6256_v44, %s5850_s15  ;;  %1254 = vrot.lane.b32.xlu0 %v6278_v57, %s5850_s15 }
 0x161   : > { %v6537_v43 = vpop.permute.xlu1 %4993  ;;  %v6539_v31 = vpop.permute.xlu0 %5008 }
 0x163   : > { %1252 = vrot.lane.b32.xlu1 %v6300_v8, %s5850_s15  ;;  %1258 = vrot.lane.b32.xlu0 %v6324_v25, %s5850_s15 }
 0x165   : > { %v6545_v3 = vpop.permute.xlu1 %5003  ;;  %v6547_v50 = vpop.permute.xlu0 %5018 }
 0x166   : > { %8421 = vst [vmem:[#allocation16_spill] sm:$0xff] %v6547_v50 }
 0x167   : > { %1256 = vrot.lane.b32.xlu1 %v6280_v58, %s5850_s15  ;;  %1262 = vrot.lane.b32.xlu0 %v6302_v9, %s5850_s15 }
 0x169   : > { %v6553_v44 = vpop.permute.xlu1 %5013  ;;  %v6555_v57 = vpop.permute.xlu0 %5028 }
 0x16b   : > { %1260 = vrot.lane.b32.xlu1 %v6326_v26, %s5850_s15  ;;  %1266 = vrot.lane.b32.xlu0 %v6342_v46, %s5850_s15  ;;  %v6573_v26 = vld [vmem:[#allocation2 + $0xda] sm:$0xff]  ;;  %v1931_v46 = vld [vmem:[%s6021_s26] sm:$0xff] }
 0x16d   : > { %v6561_v8 = vpop.permute.xlu1 %5023  ;;  %v6563_v25 = vpop.permute.xlu0 %5038 }
 0x16e   : > { %8422 = vst [vmem:[#allocation17_spill] sm:$0xff] %v6561_v8 }
 0x16f   : > { %1264 = vrot.lane.b32.xlu1 %v6304_v10, %s5850_s15  ;;  %1270 = vrot.lane.b32.xlu0 %v6441_v52, %s5850_s15 }
 0x171   : > { %v6569_v58 = vpop.permute.xlu1 %5033  ;;  %v6571_v9 = vpop.permute.xlu0 %5048 }
 0x173   : > { %1268 = vrot.lane.b32.xlu1 %v6344_v49, %s5850_s15  ;;  %1274 = vrot.lane.b32.xlu0 %v6573_v26, %s5850_s15  ;;  %v781_v49 = vld [vmem:[#allocation2 + $0xe2] sm:$0xff] }
 0x175   : > { %v6580_v24 = vpop.permute.xlu1 %5043  ;;  %v6582_v10 = vpop.permute.xlu0 %5058 }
 0x177   : > { %1272 = vrot.lane.b32.xlu1 %v6443_v14, %s5850_s15  ;;  %1963 = vrot.lane.b32.xlu0 %v1931_v46, %s5850_s15 }
 0x179   : > { %v6588_v56 = vpop.permute.xlu1 %5053  ;;  %v6590_v40 = vpop.permute.xlu0 %5068 }
 0x17a   : > { %v5071_v6 = vunpack.i.h.bf16 %v6590_v40 }
 0x17b   : > { %1276 = vrot.lane.b32.xlu1 %v781_v49, %s5850_s15  ;;  %1967 = vrot.lane.b32.xlu0 %v1933_v53, %s5850_s15 }
 0x17d   : > { %v6596_v62 = vpop.permute.xlu1 %5063  ;;  %v6598_v4 = vpop.permute.xlu0 %5078 }
 0x17e   : > { %8423 = vst [vmem:[#allocation18_spill] sm:$0xff] %v6596_v62 }
 0x17f   : > { %1965 = vrot.lane.b32.xlu1 %v1932_v63, %s5850_s15  ;;  %1971 = vrot.lane.b32.xlu0 %v1935_v61, %s5850_s15  ;;  %v5197_v61 = vpack.i.bf16 %v781_v49, %v6573_v26 }
 0x181   : > { %v6604_v52 = vpop.permute.xlu1 %5073  ;;  %v6606_v14 = vpop.permute.xlu0 %5088 }
 0x183   : > { %1969 = vrot.lane.b32.xlu1 %v1934_v18, %s5850_s15  ;;  %1975 = vrot.lane.b32.xlu0 %v1937_v13, %s5850_s15  ;;  %v2543_v18 = vld [vmem:[#allocation2 + $0xf8] sm:$0xff] }
 0x184   : > { %v2559_v13 = vld [vmem:[#allocation2 + $0xf9] sm:$0xff] }
 0x185   : > { %v6612_v16 = vpop.permute.xlu1 %5083  ;;  %v6614_v17 = vpop.permute.xlu0 %5098 }
 0x187   : > { %1973 = vrot.lane.b32.xlu1 %v1936_v38, %s5850_s15  ;;  %1979 = vrot.lane.b32.xlu0 %v1939_v0, %s5850_s15  ;;  %v5070_v38 = vunpack.i.l.bf16 %v6590_v40  ;;  %v5207_v0 = vpack.i.bf16 %v2543_v18, %v2542_v7 }
 0x189   : > { %v6620_v22 = vpop.permute.xlu1 %5093  ;;  %v6622_v33 = vpop.permute.xlu0 %5108 }
 0x18b   : > { %1977 = vrot.lane.b32.xlu1 %v1938_v19, %s5850_s15  ;;  %1983 = vrot.lane.b32.xlu0 %v1941_v27, %s5850_s15  ;;  %v5030_v19 = vunpack.i.l.bf16 %v6555_v57 }
 0x18d   : > { %v6628_v54 = vpop.permute.xlu1 %5103  ;;  %v6630_v5 = vpop.permute.xlu0 %5118 }
 0x18e   : > { %8424 = vst [vmem:[#allocation19_spill] sm:$0xff] %v6628_v54 }
 0x18f   : > { %1981 = vrot.lane.b32.xlu1 %v1940_v34, %s5850_s15  ;;  %1987 = vrot.lane.b32.xlu0 %v1943_v35, %s5850_s15  ;;  %v637_v35 = vld [vmem:[#allocation2] sm:$0xff] }
 0x191   : > { %v6636_v55 = vpop.permute.xlu1 %5113  ;;  %v6638_v2 = vpop.permute.xlu0 %5128 }
 0x193   : > { %1985 = vrot.lane.b32.xlu1 %v1942_v39, %s5850_s15  ;;  %1991 = vrot.lane.b32.xlu0 %v1945_v28, %s5850_s15  ;;  %v4955_v39 = vunpack.i.l.bf16 %v6491_v20  ;;  %v1345_v28 = vsel %vm1344_vm5, %v5030_v19, %v5070_v38 }
 0x195   : > { %v6643_v12 = vpop.permute.xlu1 %5123  ;;  %v6645_v29 = vpop.permute.xlu0 %5138 }
 0x197   : > { %1989 = vrot.lane.b32.xlu1 %v1944_v11, %s5850_s15  ;;  %5193 = vrot.lane.b32.xlu0 %v5192_v36, %s5846_s29 }
 0x199   : > { %v6652_v41 = vpop.permute.xlu1 %5133  ;;  %v6654_v46 = vpop.permute.xlu0 %5148 }
 0x19a   : > { %v5150_v26 = vunpack.i.l.bf16 %v6654_v46 }
 0x19b   : > { %1993 = vrot.lane.b32.xlu1 %v1946_v47, %s5850_s15  ;;  %5203 = vrot.lane.b32.xlu0 %v6427_v51, %s5843_s7  ;;  %v2511_v51 = vld [vmem:[#allocation2 + $0xf1] sm:$0xff] }
 0x19c   : > { %v6683_v34 = vpack.i.bf16 %v2559_v13, %v2511_v51 }
 0x19d   : > { %v6659_v53 = vpop.permute.xlu1 %5143  ;;  %v6661_v63 = vpop.permute.xlu0 %5158 }
 0x19e   : > { %8425 = vst [vmem:[#allocation20_spill] sm:$0xff] %v6659_v53  ;;  %v4995_v53 = vunpack.i.l.bf16 %v6537_v43 }
 0x19f   : > { %5188 = vrot.lane.b32.xlu1 %v6469_v60, %s5845_s11  ;;  %5213 = vrot.lane.b32.xlu0 %v6451_v59, %s5844_s19  ;;  %v4950_v60 = vunpack.i.l.bf16 %v6485_v1  ;;  %v5110_v59 = vunpack.i.l.bf16 %v6622_v33 }
 0x1a1   : > { %v6667_v30 = vpop.permute.xlu1 %5153  ;;  %v6669_v15 = vpop.permute.xlu0 %5168  ;;  %v1362_v11 = vsel %vm1361_vm6, %v1345_v28, %v5110_v59  ;;  %v1294_v47 = vsel %vm336_vm0, %v637_v35, %v4950_v60  ;;  %v4951_v60 = vunpack.i.h.bf16 %v6485_v1  ;;  %v5111_v59 = vunpack.i.h.bf16 %v6622_v33  ;;  %v6715_v1 = vld [vmem:[#allocation2 + $0xfa] sm:$0xff] }
 0x1a2   : > { %v1311_v38 = vsel %vm1310_vm9, %v1294_v47, %v4955_v39  ;;  %v5151_v28 = vunpack.i.h.bf16 %v6654_v46  ;;  %v6713_v39 = vld [vmem:[#allocation2 + $0xf2] sm:$0xff]  ;;  %8428 = vst [vmem:[#allocation23_spill] sm:$0xff] %v6715_v1  ;;  %v5035_v46 = vunpack.i.l.bf16 %v6569_v58 }
 0x1a3   : > { %5198 = vrot.lane.b32.xlu1 %v5197_v61, %s5847_s27  ;;  %2992 = vrot.lane.b32.xlu0 %v2559_v13, %s5849_s10  ;;  %v1379_v13 = vsel %vm1378_vm7, %v1362_v11, %v5150_v26  ;;  %v1328_v35 = vsel %vm1327_vm10, %v1311_v38, %v5030_v19  ;;  %v5031_v26 = vunpack.i.h.bf16 %v6555_v57  ;;  %8427 = vst [vmem:[#allocation22_spill] sm:$0xff] %v6713_v39  ;;  %v5115_v57 = vunpack.i.l.bf16 %v6636_v55 }
 0x1a4   : > { %v5155_v19 = vunpack.i.l.bf16 %v6667_v30 }
 0x1a5   : > { %v6679_v49 = vpop.permute.xlu1 %5163  ;;  %v6681_v27 = vpop.permute.xlu0 %5178  ;;  %v1346_v33 = vsel %vm1344_vm5, %v5031_v26, %v5071_v6  ;;  %v2561_v6 = vld [vmem:[#allocation2 + $0x111] sm:$0xff] }
 0x1a6   : > { %v1363_v47 = vsel %vm1361_vm6, %v1346_v33, %v5111_v59  ;;  %v2544_v59 = vld [vmem:[#allocation2 + $0x108] sm:$0xff] }
 0x1a7   : > { %5208 = vrot.lane.b32.xlu1 %v5207_v0, %s5848_s12  ;;  %5223 = vrot.lane.b32.xlu0 %v6683_v34, %s5846_s29  ;;  %v2513_v33 = vld [vmem:[#allocation2 + $0x109] sm:$0xff] }
 0x1a9   : > { %v6692_v7 = vpop.permute.xlu1 %5173  ;;  %v6694_v18 = vpop.permute.xlu0 %1182 }
 0x1aa   : > { %v1396_v8 = vsel %vm1395_vm8, %v1379_v13, %v6694_v18 }
 0x1ab   : > { %2990 = vrot.lane.b32.xlu1 %v2511_v51, %s5849_s10  ;;  %5233 = vrot.lane.b32.xlu0 %v5192_v36, %s5843_s7  ;;  %v638_v51 = vld [vmem:[#allocation2 + $0x8] sm:$0xff]  ;;  %v5075_v36 = vunpack.i.l.bf16 %v6604_v52 }
 0x1ac   : > { %1593 = vmatprep.mubr.f32.mxu0 %v1396_v8  ;;  %v4956_v8 = vunpack.i.h.bf16 %v6491_v20  ;;  %v1295_v13 = vsel %vm336_vm0, %v638_v51, %v4951_v60  ;;  %v6732_v20 = vpack.i.bf16 %v6715_v1, %v6713_v39  ;;  %v2545_v51 = vld [vmem:[#allocation2 + $0x110] sm:$0xff]  ;;  %v5116_v1 = vunpack.i.h.bf16 %v6636_v55 }
 0x1ad   : > { %1594 = vmatmul.mubr.f32.vlgmr.msra.gmra.mxu0 %v1328_v35  ;;  %v6708_v11 = vpop.permute.xlu1 %5183  ;;  %v6710_v40 = vpop.permute.xlu0 %1186  ;;  %v1347_v62 = vsel %vm1344_vm5, %v5035_v46, %v5075_v36  ;;  %v5036_v36 = vunpack.i.h.bf16 %v6569_v58  ;;  %v4961_v58 = vunpack.i.h.bf16 %v6497_v21 }
 0x1ae   : > { %8426 = vst [vmem:[#allocation21_spill] sm:$0xff] %v6708_v11  ;;  %v5076_v11 = vunpack.i.h.bf16 %v6604_v52  ;;  %v1364_v52 = vsel %vm1361_vm6, %v1347_v62, %v5115_v57  ;;  %v639_v62 = vld [vmem:[#allocation2 + $0x18] sm:$0xff] }
 0x1af   : > { %5218 = vrot.lane.b32.xlu1 %v5207_v0, %s5845_s11  ;;  %5243 = vrot.lane.b32.xlu0 %v5197_v61, %s5844_s19  ;;  %v1380_v0 = vsel %vm1378_vm7, %v1363_v47, %v5151_v28  ;;  %v4960_v61 = vunpack.i.l.bf16 %v6497_v21  ;;  %v1312_v28 = vsel %vm1310_vm9, %v1295_v13, %v4956_v8  ;;  %v5156_v47 = vunpack.i.h.bf16 %v6667_v30 }
 0x1b0   : > { %v1381_v39 = vsel %vm1378_vm7, %v1364_v52, %v5155_v19  ;;  %v5237_v8 = vpack.i.bf16 %v2545_v51, %v2544_v59  ;;  %v6757_v13 = vpack.i.bf16 %v2561_v6, %v2513_v33  ;;  %v5080_v30 = vunpack.i.l.bf16 %v6598_v4 }
 0x1b1   : > { %v6726_v38 = vpop.permute.xlu1 %1184  ;;  %v6728_v35 = vpop.permute.xlu0 %1190  ;;  %v1398_v50 = vsel %vm1395_vm8, %v1381_v39, %v6710_v40  ;;  %v1296_v57 = vsel %vm336_vm0, %v639_v62, %v4960_v61  ;;  %v4996_v19 = vunpack.i.h.bf16 %v6537_v43 }
 0x1b2   : > { %v1397_v60 = vsel %vm1395_vm8, %v1380_v0, %v6726_v38  ;;  %v1329_v0 = vsel %vm1327_vm10, %v1312_v28, %v5031_v26  ;;  %v1348_v26 = vsel %vm1344_vm5, %v5036_v36, %v5076_v11  ;;  %v1313_v39 = vsel %vm1310_vm9, %v1296_v57, %v4995_v53  ;;  %v640_v28 = vld [vmem:[#allocation2 + $0x20] sm:$0xff] }
 0x1b3   : > { %5228 = vrot.lane.b32.xlu1 %v6732_v20, %s5847_s27  ;;  %2996 = vrot.lane.b32.xlu0 %v2561_v6, %s5849_s10  ;;  %v1365_v21 = vsel %vm1361_vm6, %v1348_v26, %v5116_v1  ;;  %v5040_v6 = vunpack.i.l.bf16 %v6563_v25  ;;  %v5160_v11 = vunpack.i.l.bf16 %v6661_v63  ;;  %v4965_v53 = vunpack.i.l.bf16 %v6503_v23 }
 0x1b4   : > { %1598 = vmatprep.mubr.f32.mxu0 %v1397_v60  ;;  %v5120_v60 = vunpack.i.l.bf16 %v6630_v5  ;;  %v1382_v61 = vsel %vm1378_vm7, %v1365_v21, %v5156_v47  ;;  %v5081_v1 = vunpack.i.h.bf16 %v6598_v4  ;;  %v5000_v47 = vunpack.i.l.bf16 %v6531_v45  ;;  %v6807_v21 = vld [vmem:[#allocation2 + $0x112] sm:$0xff] }
 0x1b5   : > { %1599 = vmatmul.mubr.f32.gmra.mxu0 %v1329_v0  ;;  %v6751_v55 = vpop.permute.xlu1 %1188  ;;  %v6753_v54 = vpop.permute.xlu0 %1194  ;;  %v1349_v52 = vsel %vm1344_vm5, %v5040_v6, %v5080_v30  ;;  %v5121_v0 = vunpack.i.h.bf16 %v6630_v5  ;;  %v5041_v4 = vunpack.i.h.bf16 %v6563_v25  ;;  %v5161_v30 = vunpack.i.h.bf16 %v6661_v63 }
 0x1b6   : > { %1603 = vmatprep.mubr.f32.mxu0 %v1398_v50  ;;  %v1330_v50 = vsel %vm1327_vm10, %v1313_v39, %v5035_v46  ;;  %v1399_v51 = vsel %vm1395_vm8, %v1382_v61, %v6751_v55  ;;  %v1297_v46 = vsel %vm336_vm0, %v640_v28, %v4961_v58  ;;  %v1366_v26 = vsel %vm1361_vm6, %v1349_v52, %v5120_v60 }
 0x1b7   : > { %5238 = vrot.lane.b32.xlu1 %v5237_v8, %s5848_s12  ;;  %5253 = vrot.lane.b32.xlu0 %v6757_v13, %s5846_s29  ;;  %v1314_v62 = vsel %vm1310_vm9, %v1297_v46, %v4996_v19  ;;  %v1383_v58 = vsel %vm1378_vm7, %v1366_v26, %v5160_v11  ;;  %v4966_v19 = vunpack.i.h.bf16 %v6503_v23  ;;  %v1350_v60 = vsel %vm1344_vm5, %v5041_v4, %v5081_v1  ;;  %v6809_v11 = vld [vmem:[#allocation6 + $0x140] sm:$0xf] }
 0x1b8   : > { %v1331_v57 = vsel %vm1327_vm10, %v1314_v62, %v5036_v36  ;;  %v5085_v25 = vunpack.i.l.bf16 %v6612_v16  ;;  %v6805_v36 = vld [vmem:[#allocation2 + $0x10a] sm:$0xff]  ;;  %v5125_v61 = vunpack.i.l.bf16 %v6643_v12  ;;  %v5045_v28 = vunpack.i.l.bf16 %v6580_v24  ;;  %4809 = vmatprep.subr.msk.mxu0 %vm1525_vm4, %v6809_v11 }
 0x1b9   : > { %1604 = vmatmul.mubr.f32.gmra.mxu0 %v1330_v50  ;;  %v6774_v43 = vpop.permute.xlu1 %1192  ;;  %v6776_v59 = vpop.permute.xlu0 %1198  ;;  %v5001_v50 = vunpack.i.h.bf16 %v6531_v45  ;;  %v6832_v46 = vpack.i.bf16 %v6807_v21, %v6805_v36  ;;  %v5086_v62 = vunpack.i.h.bf16 %v6612_v16 }
 0x1ba   : > { %1608 = vmatprep.mubr.f32.mxu0 %v1399_v51  ;;  %v1367_v51 = vsel %vm1361_vm6, %v1350_v60, %v5121_v0  ;;  %v642_v0 = vld [vmem:[#allocation2 + $0x38] sm:$0xff]  ;;  %v1351_v26 = vsel %vm1344_vm5, %v5045_v28, %v5085_v25  ;;  %4810 = vmatpush3.msk.msra.mxu0 %vm1525_vm4, %v6809_v11  ;;  %v5126_v60 = vunpack.i.h.bf16 %v6643_v12 }
 0x1bb   : > { %2994 = vrot.lane.b32.xlu1 %v2513_v33, %s5849_s10  ;;  %5263 = vrot.lane.b32.xlu0 %v6683_v34, %s5843_s7  ;;  %v1400_v34 = vsel %vm1395_vm8, %v1383_v58, %v6728_v35  ;;  %v641_v33 = vld [vmem:[#allocation2 + $0x30] sm:$0xff]  ;;  %v1384_v52 = vsel %vm1378_vm7, %v1367_v51, %v5161_v30  ;;  %v1299_v30 = vsel %vm336_vm0, %v642_v0, %v4966_v19  ;;  %v2547_v58 = vld [vmem:[#allocation2 + $0x128] sm:$0xff]  ;;  %v5046_v19 = vunpack.i.h.bf16 %v6580_v24 }
 0x1bc   : > { %v1298_v63 = vsel %vm336_vm0, %v641_v33, %v4965_v53  ;;  %v5165_v53 = vunpack.i.l.bf16 %v6679_v49  ;;  %v5005_v33 = vunpack.i.l.bf16 %v6545_v3  ;;  %v1316_v16 = vsel %vm1310_vm9, %v1299_v30, %v5001_v50  ;;  %v643_v24 = vld [vmem:[#allocation2 + $0x48] sm:$0xff] }
 0x1bd   : > { %1609 = vmatmul.mubr.f32.gmra.mxu0 %v1331_v57  ;;  %v6795_v39 = vpop.permute.xlu1 %1196  ;;  %v6797_v5 = vpop.permute.xlu0 %1202  ;;  %v1315_v23 = vsel %vm1310_vm9, %v1298_v63, %v5000_v47  ;;  %v2563_v47 = vld [vmem:[#allocation2 + $0x129] sm:$0xff]  ;;  %v2546_v57 = vld [vmem:[#allocation2 + $0x120] sm:$0xff]  ;;  %v1368_v25 = vsel %vm1361_vm6, %v1351_v26, %v5125_v61  ;;  %v5166_v63 = vunpack.i.h.bf16 %v6679_v49  ;;  %v5090_v49 = vunpack.i.l.bf16 %v6606_v14 }
 0x1be   : > { %1613 = vmatprep.mubr.f32.mxu0 %v1400_v34  ;;  %v1332_v1 = vsel %vm1327_vm10, %v1315_v23, %v5040_v6  ;;  %v4970_v6 = vunpack.i.l.bf16 %v6511_v37  ;;  %v2515_v34 = vld [vmem:[#allocation2 + $0x121] sm:$0xff]  ;;  %v1333_v23 = vsel %vm1327_vm10, %v1316_v16, %v5041_v4  ;;  %v1385_v51 = vsel %vm1378_vm7, %v1368_v25, %v5165_v53 }
 0x1bf   : > { %5248 = vrot.lane.b32.xlu1 %v5237_v8, %s5845_s11  ;;  %5273 = vrot.lane.b32.xlu0 %v6732_v20, %s5844_s19  ;;  %v1401_v20 = vsel %vm1395_vm8, %v1384_v52, %v6774_v43  ;;  %v1402_v50 = vsel %vm1395_vm8, %v1385_v51, %v6753_v54  ;;  %v6858_v61 = vpack.i.bf16 %v2563_v47, %v2515_v34  ;;  %v5006_v0 = vunpack.i.h.bf16 %v6545_v3  ;;  %v644_v3 = vld [vmem:[#allocation2 + $0x50] sm:$0xff] }
 0x1c0   : > { %v1352_v4 = vsel %vm1344_vm5, %v5046_v19, %v5086_v62  ;;  %v1300_v53 = vsel %vm336_vm0, %v643_v24, %v4970_v6  ;;  %v5130_v26 = vunpack.i.l.bf16 %v6638_v2  ;;  %v5050_v62 = vunpack.i.l.bf16 %v6571_v9 }
 0x1c1   : > { %1614 = vmatmul.mubr.f32.gmra.mxu0 %v1332_v1  ;;  %v6824_v45 = vpop.permute.xlu1 %1200  ;;  %v6826_v8 = vpop.permute.xlu0 %1206  ;;  %v4971_v1 = vunpack.i.h.bf16 %v6511_v37  ;;  %v6863_v37 = vld [vmem:[#allocation6 + $0x138] sm:$0xff]  ;;  %v1369_v30 = vsel %vm1361_vm6, %v1352_v4, %v5126_v60  ;;  %v5170_v6 = vunpack.i.l.bf16 %v6669_v15  ;;  %v5091_v51 = vunpack.i.h.bf16 %v6606_v14 }
 0x1c2   : > { %1618 = vmatprep.mubr.f32.mxu0 %v1401_v20  ;;  %v5267_v20 = vpack.i.bf16 %v2547_v58, %v2546_v57  ;;  %v1386_v58 = vsel %vm1378_vm7, %v1369_v30, %v5166_v63  ;;  %4811 = vmatprep.subr.mxu0 %v6863_v37  ;;  %v5131_v24 = vunpack.i.h.bf16 %v6638_v2  ;;  %v5171_v4 = vunpack.i.h.bf16 %v6669_v15  ;;  %v6900_v2 = vld [vmem:[#allocation2 + $0x122] sm:$0xff] }
 0x1c3   : > { %5258 = vrot.lane.b32.xlu1 %v6832_v46, %s5847_s27  ;;  %3000 = vrot.lane.b32.xlu0 %v2563_v47, %s5849_s10  ;;  %v1317_v47 = vsel %vm1310_vm9, %v1300_v53, %v5005_v33  ;;  %v1403_v33 = vsel %vm1395_vm8, %v1386_v58, %v6795_v39  ;;  %v1301_v60 = vsel %vm336_vm0, %v644_v3, %v4971_v1  ;;  %v645_v15 = vld [vmem:[#allocation2 + $0x60] sm:$0xff]  ;;  %v5095_v30 = vunpack.i.l.bf16 %v6620_v22 }
 0x1c4   : > { %v1334_v57 = vsel %vm1327_vm10, %v1317_v47, %v5045_v28  ;;  %v1353_v28 = vsel %vm1344_vm5, %v5050_v62, %v5090_v49  ;;  %4812 = vmatpush3.msra.mxu0 %v6863_v37  ;;  %v1318_v1 = vsel %vm1310_vm9, %v1301_v60, %v5006_v0  ;;  %v5051_v49 = vunpack.i.h.bf16 %v6571_v9  ;;  %v2549_v58 = vld [vmem:[#allocation2 + $0x140] sm:$0xff] }
 0x1c5   : > { %1619 = vmatmul.mubr.f32.gmra.mxu0 %v1333_v23  ;;  %v6852_v12 = vpop.permute.xlu1 %1204  ;;  %v6854_v52 = vpop.permute.xlu0 %1210  ;;  %v4975_v23 = vunpack.i.l.bf16 %v6513_v32  ;;  %v1370_v14 = vsel %vm1361_vm6, %v1353_v28, %v5130_v26  ;;  %v5011_v47 = vunpack.i.h.bf16 %v6539_v31  ;;  %v5135_v3 = vunpack.i.l.bf16 %v6652_v41 }
 0x1c6   : > { %1623 = vmatprep.mubr.f32.mxu0 %v1402_v50  ;;  %v5010_v50 = vunpack.i.l.bf16 %v6539_v31  ;;  %v1387_v53 = vsel %vm1378_vm7, %v1370_v14, %v5170_v6  ;;  %v5055_v60 = vunpack.i.l.bf16 %v6588_v56 }
 0x1c7   : > { %5268 = vrot.lane.b32.xlu1 %v5267_v20, %s5848_s12  ;;  %5283 = vrot.lane.b32.xlu0 %v6858_v61, %s5846_s29  ;;  %v1404_v9 = vsel %vm1395_vm8, %v1387_v53, %v6776_v59  ;;  %v1302_v6 = vsel %vm336_vm0, %v645_v15, %v4975_v23  ;;  %v5175_v23 = vunpack.i.l.bf16 %v6692_v7  ;;  %v2565_v53 = vld [vmem:[#allocation2 + $0x141] sm:$0xff]  ;;  %v2517_v15 = vld [vmem:[#allocation2 + $0x139] sm:$0xff] }
 0x1c8   : > { %v1319_v31 = vsel %vm1310_vm9, %v1302_v6, %v5010_v50  ;;  %v5056_v6 = vunpack.i.h.bf16 %v6588_v56 }
 0x1c9   : > { %1624 = vmatmul.mubr.f32.gmra.mxu0 %v1334_v57  ;;  %v6877_v16 = vpop.permute.xlu1 %1208  ;;  %v1247_v25 = vpop.permute.xlu0 %1246  ;;  %v2548_v57 = vld [vmem:[#allocation2 + $0x138] sm:$0xff] }
 0x1ca   : > { %1628 = vmatprep.mubr.f32.mxu0 %v1403_v33  ;;  %v1413_v63 = vsel %vm1412_vm11, %v6694_v18, %v1247_v25  ;;  %v1335_v18 = vsel %vm1327_vm10, %v1318_v1, %v5046_v19  ;;  %v1354_v19 = vsel %vm1344_vm5, %v5051_v49, %v5091_v51  ;;  %v1336_v51 = vsel %vm1327_vm10, %v1319_v31, %v5050_v62 }
 0x1cb   : > { %2998 = vrot.lane.b32.xlu1 %v2515_v34, %s5849_s10  ;;  %5293 = vrot.lane.b32.xlu0 %v6757_v13, %s5843_s7  ;;  %v6902_v34 = vld [vmem:[#allocation2 + $0x12a] sm:$0xff]  ;;  %v4976_v13 = vunpack.i.h.bf16 %v6513_v32  ;;  %v6913_v32 = vld [vmem:[#allocation6 + $0x130] sm:$0xff]  ;;  %v1371_v25 = vsel %vm1361_vm6, %v1354_v19, %v5131_v24  ;;  %v6934_v14 = vpack.i.bf16 %v2549_v58, %v2548_v57  ;;  %v1355_v62 = vsel %vm1344_vm5, %v5055_v60, %v5095_v30  ;;  %v647_v58 = vld [vmem:[#allocation2 + $0x78] sm:$0xff] }
 0x1cc   : > { %4785 = vmatprep.mubr.msk.f32.mxu1 %vm1476_vm12, %v1413_v63  ;;  %v6923_v33 = vpack.i.bf16 %v6902_v34, %v6900_v2  ;;  %v1388_v28 = vsel %vm1378_vm7, %v1371_v25, %v5171_v4  ;;  %4813 = vmatprep.subr.mxu0 %v6913_v32  ;;  %v5015_v19 = vunpack.i.l.bf16 %v6553_v44  ;;  %v3245_v30 = vld [vmem:[#allocation6 + $0x78] sm:$0xff]  ;;  %v4981_v31 = vunpack.i.h.bf16 %v6519_v48 }
 0x1cd   : > { %1629 = vmatmul.mubr.f32.gmra.mxu0 %v1335_v18  ;;  %v6905_v0 = vpop.permute.xlu1 %1212  ;;  %v1251_v26 = vpop.permute.xlu0 %1250  ;;  %v1405_v24 = vsel %vm1395_vm8, %v1388_v28, %v6824_v45  ;;  %v5096_v18 = vunpack.i.h.bf16 %v6620_v22  ;;  %v6959_v25 = vpack.i.bf16 %v2565_v53, %v2517_v15  ;;  %v5060_v28 = vunpack.i.l.bf16 %v6582_v10 }
 0x1ce   : > { %1633 = vmatprep.mubr.f32.mxu0 %v1404_v9  ;;  %4814 = vmatpush3.msra.mxu0 %v6913_v32  ;;  %v1415_v57 = vsel %vm1412_vm11, %v6710_v40, %v1251_v26  ;;  %v3260_v40 = vld [vmem:[#allocation6 + $0xf0] sm:$0xff]  ;;  %v5016_v26 = vunpack.i.h.bf16 %v6553_v44 }
 0x1cf   : > { %5278 = vrot.lane.b32.xlu1 %v5267_v20, %s5845_s11  ;;  %5303 = vrot.lane.b32.xlu0 %v6832_v46, %s5844_s19  ;;  %v646_v20 = vld [vmem:[#allocation2 + $0x68] sm:$0xff]  ;;  %v4980_v46 = vunpack.i.l.bf16 %v6519_v48 }
 0x1d0   : > { %v1303_v1 = vsel %vm336_vm0, %v646_v20, %v4976_v13  ;;  %v5136_v13 = vunpack.i.h.bf16 %v6652_v41  ;;  %v5140_v20 = vunpack.i.l.bf16 %v6645_v29 }
 0x1d1   : > { %1634 = vmatmul.mubr.f32.gmra.mxu0 %v1336_v51  ;;  %v1249_v63 = vpop.permute.xlu1 %1248  ;;  %v1255_v50 = vpop.permute.xlu0 %1254  ;;  %v1320_v9 = vsel %vm1310_vm9, %v1303_v1, %v5011_v47  ;;  %v5176_v47 = vunpack.i.h.bf16 %v6692_v7  ;;  %v1304_v7 = vsel %vm336_vm0, %v647_v58, %v4980_v46  ;;  %v1356_v51 = vsel %vm1344_vm5, %v5056_v6, %v5096_v18  ;;  %v3243_v58 = vld [vmem:[#allocation6 + $0x68] sm:$0xff] }
 0x1d2   : > { %v1414_v4 = vsel %vm1412_vm11, %v6726_v38, %v1249_v63  ;;  %1638 = vmatprep.mubr.f32.mxu0 %v1405_v24  ;;  %v1337_v22 = vsel %vm1327_vm10, %v1320_v9, %v5051_v49  ;;  %v1372_v38 = vsel %vm1361_vm6, %v1355_v62, %v5135_v3  ;;  %v1321_v44 = vsel %vm1310_vm9, %v1304_v7, %v5015_v19  ;;  %v3244_v63 = vld [vmem:[#allocation6 + $0x70] sm:$0xff] }
 0x1d3   : > { %5288 = vrot.lane.b32.xlu1 %v6923_v33, %s5847_s27  ;;  %3004 = vrot.lane.b32.xlu0 %v2565_v53, %s5849_s10  ;;  %v1389_v41 = vsel %vm1378_vm7, %v1372_v38, %v5175_v23  ;;  %v5100_v23 = vunpack.i.l.bf16 %v6614_v17  ;;  %v1373_v46 = vsel %vm1361_vm6, %v1356_v51, %v5136_v13  ;;  %v5180_v24 = vunpack.i.l.bf16 %v6681_v27  ;;  %v648_v62 = vld [vmem:[#allocation2 + $0x80] sm:$0xff] }
 0x1d4   : > { %4786 = vmatmul.mubr.msk.f32.vlgmr.msra.gmra.mxu1 %vm1476_vm12, %v1414_v4  ;;  %v1406_v56 = vsel %vm1395_vm8, %v1389_v41, %v6797_v5  ;;  %v1338_v1 = vsel %vm1327_vm10, %v1321_v44, %v5055_v60  ;;  %v1390_v18 = vsel %vm1378_vm7, %v1373_v46, %v5176_v47  ;;  %v4985_v4 = vunpack.i.l.bf16 %v6521_v42  ;;  %v8429_v13 = vld [vmem:[#allocation16_spill] sm:$0xff] }
 0x1d5   : > { %1639 = vmatmul.mubr.f32.gmra.mxu0 %v1337_v22  ;;  %4788 = vmatprep.mubr.msk.f32.mxu1 %vm1476_vm12, %v1415_v57  ;;  %v1253_v49 = vpop.permute.xlu1 %1252  ;;  %v1259_v3 = vpop.permute.xlu0 %1258  ;;  %v1407_v19 = vsel %vm1395_vm8, %v1390_v18, %v6852_v12  ;;  %v5020_v22 = vunpack.i.l.bf16 %v8429_v13  ;;  %v5101_v60 = vunpack.i.h.bf16 %v6614_v17  ;;  %v1357_v38 = vsel %vm1344_vm5, %v5060_v28, %v5100_v23  ;;  %v8431_v44 = vld [vmem:[#allocation20_spill] sm:$0xff]  ;;  %v8433_v18 = vld [vmem:[#allocation21_spill] sm:$0xff] }
 0x1d6   : > { %v1416_v48 = vsel %vm1412_vm11, %v6751_v55, %v1253_v49  ;;  %1643 = vmatprep.mubr.f32.mxu0 %v1406_v56  ;;  %4663 = vmatpush3.msra.mxu1 %v3245_v30  ;;  %v1417_v55 = vsel %vm1412_vm11, %v6728_v35, %v1255_v50  ;;  %v1305_v35 = vsel %vm336_vm0, %v648_v62, %v4981_v31  ;;  %v3259_v50 = vld [vmem:[#allocation6 + $0xe8] sm:$0xff]  ;;  %v5061_v47 = vunpack.i.h.bf16 %v6582_v10 }
 0x1d7   : > { %5298 = vrot.lane.b32.xlu1 %v6934_v14, %s5848_s12  ;;  %5313 = vrot.lane.b32.xlu0 %v6959_v25, %s5846_s29  ;;  %v5141_v57 = vunpack.i.h.bf16 %v6645_v29  ;;  %v1322_v17 = vsel %vm1310_vm9, %v1305_v35, %v5016_v26  ;;  %v1374_v41 = vsel %vm1361_vm6, %v1357_v38, %v5140_v20  ;;  %v5181_v31 = vunpack.i.h.bf16 %v6681_v27  ;;  %v8430_v26 = vld [vmem:[#allocation19_spill] sm:$0xff]  ;;  %v7021_v20 = vld [vmem:[#allocation2 + $0x142] sm:$0xff] }
 0x1d8   : > { %4789 = vmatmul.mubr.msk.f32.gmra.mxu1 %vm1476_vm12, %v1416_v48  ;;  %4664 = vmatprep.subr.mxu1 %v3260_v40  ;;  %v1339_v49 = vsel %vm1327_vm10, %v1322_v17, %v5056_v6  ;;  %v1391_v29 = vsel %vm1378_vm7, %v1374_v41, %v5180_v24  ;;  %v5021_v56 = vunpack.i.h.bf16 %v8429_v13  ;;  %v3258_v40 = vld [vmem:[#allocation6 + $0xe0] sm:$0xff]  ;;  %v1358_v6 = vsel %vm1344_vm5, %v5061_v47, %v5101_v60  ;;  %v7019_v48 = vld [vmem:[#allocation2 + $0x13a] sm:$0xff] }
 0x1d9   : > { %1644 = vmatmul.mubr.f32.gmra.mxu0 %v1338_v1  ;;  %4791 = vmatprep.mubr.msk.f32.mxu1 %vm1476_vm12, %v1417_v55  ;;  %v1257_v53 = vpop.permute.xlu1 %1256  ;;  %v1263_v9 = vpop.permute.xlu0 %1262  ;;  %v5105_v23 = vunpack.i.l.bf16 %v8430_v26  ;;  %v5145_v46 = vunpack.i.l.bf16 %v8431_v44  ;;  %v3242_v24 = vld [vmem:[#allocation6 + $0x60] sm:$0xff]  ;;  %v5185_v62 = vunpack.i.l.bf16 %v8433_v18  ;;  %v7044_v13 = vpack.i.bf16 %v7021_v20, %v7019_v48  ;;  %v2551_v41 = vld [vmem:[#allocation2 + $0x158] sm:$0xff] }
 0x1da   : > { %v1418_v30 = vsel %vm1412_vm11, %v6774_v43, %v1257_v53  ;;  %1648 = vmatprep.mubr.f32.mxu0 %v1407_v19  ;;  %4665 = vmatpush3.msra.mxu1 %v3244_v63  ;;  %v1419_v43 = vsel %vm1412_vm11, %v6753_v54, %v1259_v3  ;;  %v1408_v54 = vsel %vm1395_vm8, %v1391_v29, %v6826_v8  ;;  %v8432_v55 = vld [vmem:[#allocation18_spill] sm:$0xff]  ;;  %v650_v53 = vld [vmem:[#allocation2 + $0x98] sm:$0xff]  ;;  %v5106_v60 = vunpack.i.h.bf16 %v8430_v26  ;;  %v651_v26 = vld [vmem:[#allocation2 + $0xa8] sm:$0xff] }
 0x1db   : > { %3002 = vrot.lane.b32.xlu1 %v2517_v15, %s5849_s10  ;;  %5323 = vrot.lane.b32.xlu0 %v6858_v61, %s5843_s7  ;;  %v649_v15 = vld [vmem:[#allocation2 + $0x90] sm:$0xff]  ;;  %v4986_v61 = vunpack.i.h.bf16 %v6521_v42  ;;  %v1375_v63 = vsel %vm1361_vm6, %v1358_v6, %v5141_v57  ;;  %v5065_v1 = vunpack.i.l.bf16 %v8432_v55 }
 0x1dc   : > { %4792 = vmatmul.mubr.msk.f32.gmra.mxu1 %vm1476_vm12, %v1418_v30  ;;  %4666 = vmatprep.subr.mxu1 %v3259_v50  ;;  %v1306_v3 = vsel %vm336_vm0, %v649_v15, %v4985_v4  ;;  %v1421_v4 = vsel %vm1412_vm11, %v6776_v59, %v1263_v9  ;;  %v2567_v59 = vld [vmem:[#allocation2 + $0x159] sm:$0xff]  ;;  %v2550_v17 = vld [vmem:[#allocation2 + $0x150] sm:$0xff]  ;;  %v3241_v15 = vld [vmem:[#allocation6 + $0x58] sm:$0xff] }
 0x1dd   : > { %1649 = vmatmul.mubr.f32.gmra.mxu0 %v1339_v49  ;;  %4794 = vmatprep.mubr.msk.f32.mxu1 %vm1476_vm12, %v1419_v43  ;;  %v1261_v7 = vpop.permute.xlu1 %1260  ;;  %v1267_v27 = vpop.permute.xlu0 %1266  ;;  %v1323_v51 = vsel %vm1310_vm9, %v1306_v3, %v5020_v22  ;;  %v1307_v9 = vsel %vm336_vm0, %v650_v53, %v4986_v61  ;;  %v3257_v22 = vld [vmem:[#allocation6 + $0xd8] sm:$0xff]  ;;  %v1359_v38 = vsel %vm1344_vm5, %v5065_v1, %v5105_v23  ;;  %v5146_v49 = vunpack.i.h.bf16 %v8431_v44  ;;  %v3256_v23 = vld [vmem:[#allocation6 + $0xd0] sm:$0xff]  ;;  %v652_v53 = vld [vmem:[#allocation2 + $0xb0] sm:$0xff] }
 0x1de   : > { %v1420_v42 = vsel %vm1412_vm11, %v6795_v39, %v1261_v7  ;;  %1653 = vmatprep.mubr.f32.mxu0 %v1408_v54  ;;  %4667 = vmatpush3.msra.mxu1 %v3243_v58  ;;  %v1340_v39 = vsel %vm1327_vm10, %v1323_v51, %v5060_v28  ;;  %v1324_v57 = vsel %vm1310_vm9, %v1307_v9, %v5021_v56  ;;  %v2519_v58 = vld [vmem:[#allocation2 + $0x151] sm:$0xff]  ;;  %v5066_v61 = vunpack.i.h.bf16 %v8432_v55 }
 0x1df   : > { %5308 = vrot.lane.b32.xlu1 %v6934_v14, %s5845_s11  ;;  %5333 = vrot.lane.b32.xlu0 %v6923_v33, %s5844_s19  ;;  %v1392_v14 = vsel %vm1378_vm7, %v1375_v63, %v5181_v31  ;;  %v8434_v33 = vld [vmem:[#allocation15_spill] sm:$0xff]  ;;  %v8435_v31 = vld [vmem:[#allocation17_spill] sm:$0xff]  ;;  %v1376_v29 = vsel %vm1361_vm6, %v1359_v38, %v5145_v46  ;;  %v5186_v56 = vunpack.i.h.bf16 %v8433_v18  ;;  %v1423_v7 = vsel %vm1412_vm11, %v6797_v5, %v1267_v27  ;;  %v3240_v63 = vld [vmem:[#allocation6 + $0x50] sm:$0xff] }
 0x1e0   : > { %4795 = vmatmul.mubr.msk.f32.gmra.mxu1 %vm1476_vm12, %v1420_v42  ;;  %4668 = vmatprep.subr.mxu1 %v3258_v40  ;;  %v4990_v19 = vunpack.i.l.bf16 %v8434_v33  ;;  %v1409_v50 = vsel %vm1395_vm8, %v1392_v14, %v6877_v16  ;;  %v5025_v43 = vunpack.i.l.bf16 %v8435_v31  ;;  %v1393_v54 = vsel %vm1378_vm7, %v1376_v29, %v5185_v62  ;;  %v3253_v38 = vld [vmem:[#allocation6 + $0xb8] sm:$0xff] }
 0x1e1   : > { %1654 = vmatmul.mubr.f32.gmra.mxu0 %v1340_v39  ;;  %4797 = vmatprep.mubr.msk.f32.mxu1 %vm1476_vm12, %v1421_v4  ;;  %v1265_v28 = vpop.permute.xlu1 %1264  ;;  %v1271_v35 = vpop.permute.xlu0 %1270  ;;  %v1410_v3 = vsel %vm1395_vm8, %v1393_v54, %v6854_v52  ;;  %v5327_v40 = vpack.i.bf16 %v2551_v41, %v2550_v17  ;;  %v7072_v6 = vpack.i.bf16 %v2567_v59, %v2519_v58  ;;  %v4991_v5 = vunpack.i.h.bf16 %v8434_v33  ;;  %v2552_v41 = vld [vmem:[#allocation2 + $0x168] sm:$0xff]  ;;  %v2569_v54 = vld [vmem:[#allocation2 + $0x171] sm:$0xff] }
 0x1e2   : > { %v1422_v30 = vsel %vm1412_vm11, %v6824_v45, %v1265_v28  ;;  %1658 = vmatprep.mubr.f32.mxu0 %v1409_v50  ;;  %4669 = vmatpush3.msra.mxu1 %v3242_v24  ;;  %v1341_v45 = vsel %vm1327_vm10, %v1324_v57, %v5061_v47  ;;  %v1360_v27 = vsel %vm1344_vm5, %v5066_v61, %v5106_v60  ;;  %v5026_v44 = vunpack.i.h.bf16 %v8435_v31  ;;  %v7104_v28 = vld [vmem:[#allocation6 + $0x128] sm:$0xff]  ;;  %v3252_v31 = vld [vmem:[#allocation6 + $0xb0] sm:$0xff] }
 0x1e3   : > { %5318 = vrot.lane.b32.xlu1 %v7044_v13, %s5847_s27  ;;  %3008 = vrot.lane.b32.xlu0 %v2567_v59, %s5849_s10  ;;  %v1308_v51 = vsel %vm336_vm0, %v651_v26, %v4990_v19  ;;  %v1377_v39 = vsel %vm1361_vm6, %v1360_v27, %v5146_v49  ;;  %v1425_v24 = vsel %vm1412_vm11, %v6826_v8, %v1271_v35  ;;  %v3255_v8 = vld [vmem:[#allocation6 + $0xc8] sm:$0xff]  ;;  %v8436_v49 = vld [vmem:[#allocation22_spill] sm:$0xff]  ;;  %v3249_v27 = vld [vmem:[#allocation6 + $0x98] sm:$0xff] }
 0x1e4   : > { %4798 = vmatmul.mubr.msk.f32.gmra.mxu1 %vm1476_vm12, %v1422_v30  ;;  %4670 = vmatprep.subr.mxu1 %v3257_v22  ;;  %v1325_v46 = vsel %vm1310_vm9, %v1308_v51, %v5025_v43  ;;  %v1394_v18 = vsel %vm1378_vm7, %v1377_v39, %v5186_v56  ;;  %v1309_v55 = vsel %vm336_vm0, %v652_v53, %v4991_v5  ;;  %v3239_v19 = vld [vmem:[#allocation6 + $0x48] sm:$0xff]  ;;  %v7123_v30 = vld [vmem:[#allocation6 + $0x120] sm:$0xff]  ;;  %v7136_v43 = vld [vmem:[#allocation6 + $0x118] sm:$0xff] }
 0x1e5   : > { %1659 = vmatmul.mubr.f32.gmra.mxu0 %v1341_v45  ;;  %4800 = vmatprep.mubr.msk.f32.mxu1 %vm1476_vm12, %v1423_v7  ;;  %v1269_v10 = vpop.permute.xlu1 %1268  ;;  %v1275_v47 = vpop.permute.xlu0 %1274  ;;  %v1411_v14 = vsel %vm1395_vm8, %v1394_v18, %v6905_v0  ;;  %v7115_v22 = vld [vmem:[#allocation2 + $0x152] sm:$0xff]  ;;  %v7117_v60 = vld [vmem:[#allocation2 + $0x15a] sm:$0xff]  ;;  %v2568_v5 = vld [vmem:[#allocation2 + $0x169] sm:$0xff] }
 0x1e6   : > { %v1424_v42 = vsel %vm1412_vm11, %v6852_v12, %v1269_v10  ;;  %1663 = vmatprep.mubr.f32.mxu0 %v1410_v3  ;;  %4671 = vmatpush3.msra.mxu1 %v3241_v15  ;;  %v1342_v12 = vsel %vm1327_vm10, %v1325_v46, %v5065_v1  ;;  %v1326_v1 = vsel %vm1310_vm9, %v1309_v55, %v5026_v44  ;;  %v3236_v45 = vld [vmem:[#allocation6 + $0x30] sm:$0xff]  ;;  %v3251_v56 = vld [vmem:[#allocation6 + $0xa8] sm:$0xff]  ;;  %v3233_v51 = vld [vmem:[#allocation6 + $0x18] sm:$0xff] }
 0x1e7   : > { %5328 = vrot.lane.b32.xlu1 %v5327_v40, %s5848_s12  ;;  %5343 = vrot.lane.b32.xlu0 %v7072_v6, %s5846_s29  ;;  %v1427_v35 = vsel %vm1412_vm11, %v6854_v52, %v1275_v47  ;;  %v3238_v52 = vld [vmem:[#allocation6 + $0x40] sm:$0xff]  ;;  %v7132_v17 = vpack.i.bf16 %v7117_v60, %v7115_v22  ;;  %v7148_v7 = vld [vmem:[#allocation6 + $0x110] sm:$0xff]  ;;  %v3235_v10 = vld [vmem:[#allocation6 + $0x28] sm:$0xff]  ;;  %v5372_v55 = vpack.i.bf16 %v2569_v54, %v2568_v5 }
 0x1e8   : > { %4801 = vmatmul.mubr.msk.f32.gmra.mxu1 %vm1476_vm12, %v1424_v42  ;;  %4672 = vmatprep.subr.mxu1 %v3256_v23  ;;  %v3250_v47 = vld [vmem:[#allocation6 + $0xa0] sm:$0xff]  ;;  %v7153_v3 = vld [vmem:[#allocation6 + $0x108] sm:$0xff]  ;;  %v3248_v39 = vld [vmem:[#allocation6 + $0x90] sm:$0xff] }
 0x1e9   : > { %1664 = vmatmul.mubr.f32.gmra.mxu0 %v1342_v12  ;;  %4803 = vmatprep.mubr.msk.f32.mxu1 %vm1476_vm12, %v1425_v24  ;;  %v1273_v62 = vpop.permute.xlu1 %1272  ;;  %v7093_v4 = vpop.permute.xlu0 %1963  ;;  %v3234_v23 = vld [vmem:[#allocation6 + $0x20] sm:$0xff]  ;;  %v8437_v24 = vld [vmem:[#allocation23_spill] sm:$0xff] }
 0x1ea   : > { %v1426_v33 = vsel %vm1412_vm11, %v6877_v16, %v1273_v62  ;;  %1668 = vmatprep.mubr.f32.mxu0 %v1411_v14  ;;  %4673 = vmatpush3.msra.mxu1 %v3240_v63  ;;  %v1343_v16 = vsel %vm1327_vm10, %v1326_v1, %v5066_v61  ;;  %v7162_v42 = vld [vmem:[#allocation6 + $0x100] sm:$0xff]  ;;  %v3232_v63 = vld [vmem:[#allocation6 + $0x10] sm:$0xff]  ;;  %v3247_v12 = vld [vmem:[#allocation6 + $0x88] sm:$0xff] }
 0x1eb   : > { %3006 = vrot.lane.b32.xlu1 %v2519_v58, %s5849_s10  ;;  %5353 = vrot.lane.b32.xlu0 %v6959_v25, %s5843_s7  ;;  %v3254_v25 = vld [vmem:[#allocation6 + $0xc0] sm:$0xff]  ;;  %v3237_v58 = vld [vmem:[#allocation6 + $0x38] sm:$0xff]  ;;  %v3231_v14 = vld [vmem:[#allocation6 + $0x8] sm:$0xff] }
 0x1ec   : > { %4804 = vmatmul.mubr.msk.f32.gmra.mxu1 %vm1476_vm12, %v1426_v33  ;;  %4674 = vmatprep.subr.mxu1 %v3255_v8  ;;  %v3246_v53 = vld [vmem:[#allocation6 + $0x80] sm:$0xff] }
 0x1ed   : > { %1669 = vmatmul.mubr.f32.gmra.mxu0 %v1343_v16  ;;  %4806 = vmatprep.mubr.msk.f32.mxu1 %vm1476_vm12, %v1427_v35  ;;  %v1277_v50 = vpop.permute.xlu1 %1276  ;;  %v7111_v59 = vpop.permute.xlu0 %1967  ;;  %v3230_v8 = vld [vmem:[#allocation6] sm:$0xff]  ;;  %v2554_v16 = vld [vmem:[#allocation2 + $0x180] sm:$0xff] }
 0x1ee   : > { %v1428_v9 = vsel %vm1412_vm11, %v6905_v0, %v1277_v50  ;;  %4675 = vmatpush3.msra.mxu1 %v3239_v19  ;;  %4815 = vmatprep.subr.mxu0 %v7104_v28  ;;  %v7189_v1 = vld [vmem:[#allocation2 + $0x16a] sm:$0xff]  ;;  %v7191_v19 = vld [vmem:[#allocation2 + $0x172] sm:$0xff] }
 0x1ef   : > { %5338 = vrot.lane.b32.xlu1 %v5327_v40, %s5845_s11  ;;  %5363 = vrot.lane.b32.xlu0 %v7044_v13, %s5844_s19  ;;  %v2553_v13 = vld [vmem:[#allocation2 + $0x170] sm:$0xff]  ;;  %v5377_v35 = vpack.i.bf16 %v7191_v19, %v7189_v1  ;;  %v2555_v50 = vld [vmem:[#allocation2 + $0x188] sm:$0xff] }
 0x1f0   : > { %4807 = vmatmul.mubr.msk.f32.gmra.mxu1 %vm1476_vm12, %v1428_v9  ;;  %4676 = vmatprep.subr.mxu1 %v3254_v25  ;;  %v5357_v61 = vpack.i.bf16 %v2553_v13, %v2552_v41 }
 0x1f1   : > { %v7126_v0 = vpop.permute.xlu1 %1965  ;;  %v7128_v57 = vpop.permute.xlu0 %1971  ;;  %4677 = vmatpush3.msra.mxu1 %v3238_v52  ;;  %4816 = vmatpush3.msra.mxu0 %v7104_v28  ;;  %v5387_v52 = vpack.i.bf16 %v2555_v50, %v2554_v16 }
 0x1f2   : > { %4678 = vmatprep.subr.mxu1 %v3253_v38  ;;  %4817 = vmatprep.subr.mxu0 %v7123_v30  ;;  %v2571_v38 = vld [vmem:[#allocation2 + $0x189] sm:$0xff] }
 0x1f3   : > { %5348 = vrot.lane.b32.xlu1 %v7132_v17, %s5847_s27  ;;  %3054 = vrot.lane.b32.xlu0 %v8436_v49, %s5850_s15 }
 0x1f4   : > { %4679 = vmatpush3.msra.mxu1 %v3237_v58  ;;  %4818 = vmatpush3.msra.mxu0 %v7123_v30  ;;  %v2570_v58 = vld [vmem:[#allocation2 + $0x181] sm:$0xff] }
 0x1f5   : > { %v7143_v29 = vpop.permute.xlu1 %1969  ;;  %v7145_v15 = vpop.permute.xlu0 %1975  ;;  %4680 = vmatprep.subr.mxu1 %v3252_v31  ;;  %4819 = vmatprep.subr.mxu0 %v7136_v43  ;;  %v5402_v16 = vpack.i.bf16 %v2571_v38, %v2570_v58 }
 0x1f6   : > { %4681 = vmatpush3.msra.mxu1 %v3236_v45  ;;  %4820 = vmatpush3.msra.mxu0 %v7136_v43 }
 0x1f7   : > { %5358 = vrot.lane.b32.xlu1 %v5357_v61, %s5848_s12  ;;  %3012 = vrot.lane.b32.xlu0 %v2569_v54, %s5849_s10 }
 0x1f8   : > { %4682 = vmatprep.subr.mxu1 %v3251_v56  ;;  %4821 = vmatprep.subr.mxu0 %v7148_v7 }
 0x1f9   : > { %v7156_v40 = vpop.permute.xlu1 %1973  ;;  %v7158_v26 = vpop.permute.xlu0 %1979  ;;  %4683 = vmatpush3.msra.mxu1 %v3235_v10  ;;  %4822 = vmatpush3.msra.mxu0 %v7148_v7 }
 0x1fa   : > { %4684 = vmatprep.subr.mxu1 %v3250_v47  ;;  %4823 = vmatprep.subr.mxu0 %v7153_v3 }
 0x1fb   : > { %3010 = vrot.lane.b32.xlu1 %v2568_v5, %s5849_s10  ;;  %5368 = vrot.lane.b32.xlu0 %v5357_v61, %s5845_s11 }
 0x1fc   : > { %4685 = vmatpush3.msra.mxu1 %v3234_v23  ;;  %4824 = vmatpush3.msra.mxu0 %v7153_v3 }
 0x1fd   : > { %v7167_v44 = vpop.permute.xlu1 %1977  ;;  %v7169_v46 = vpop.permute.xlu0 %1983  ;;  %4686 = vmatprep.subr.mxu1 %v3249_v27  ;;  %4825 = vmatprep.subr.mxu0 %v7162_v42 }
 0x1fe   : > { %4687 = vmatpush3.msra.mxu1 %v3233_v51  ;;  %4826 = vmatpush3.msra.mxu0 %v7162_v42 }
 0x1ff   : > { %3056 = vrot.lane.b32.xlu1 %v8437_v24, %s5850_s15  ;;  %3060 = vrot.lane.b32.xlu0 %v6807_v21, %s5850_s15 }
 0x200   : > { %4688 = vmatprep.subr.mxu1 %v3248_v39 }
 0x201   : > { %v7177_v18 = vpop.permute.xlu1 %1981  ;;  %v7179_v62 = vpop.permute.xlu0 %1987  ;;  %4689 = vmatpush3.msra.mxu1 %v3232_v63  ;;  %v2444_v63 = vld [vmem:[#allocation2 + $0xc0] sm:$0xff] }
 0x202   : > { %4690 = vmatprep.subr.mxu1 %v3247_v12 }
 0x203   : > { %3058 = vrot.lane.b32.xlu1 %v6805_v36, %s5850_s15  ;;  %5383 = vrot.lane.b32.xlu0 %v7072_v6, %s5843_s7 }
 0x204   : > { %4691 = vmatpush3.msra.mxu1 %v3231_v14 }
 0x205   : > { %v7185_v33 = vpop.permute.xlu1 %1985  ;;  %v7187_v21 = vpop.permute.xlu0 %1991  ;;  %4692 = vmatprep.subr.mxu1 %v3246_v53 }
 0x206   : > { %4693 = vmatpush3.msra.mxu1 %v3230_v8 }
 0x207   : > { %5373 = vrot.lane.b32.xlu1 %v5372_v55, %s5846_s29  ;;  %5393 = vrot.lane.b32.xlu0 %v7132_v17, %s5844_s19 }
 0x208   : > { %4851 = vmatprep.subr.msk.mxu1 %vm1525_vm4, %v6809_v11 }
 0x209   : > { %v7198_v36 = vpop.permute.xlu1 %1989  ;;  %v5194_v6 = vpop.permute.xlu0 %5193 }
 0x20a   : > { %v5195_v45 = vunpack.i.l.bf16 %v5194_v6  ;;  %v5196_v5 = vunpack.i.h.bf16 %v5194_v6 }
 0x20b   : > { %5378 = vrot.lane.b32.xlu1 %v5377_v35, %s5847_s27  ;;  %3062 = vrot.lane.b32.xlu0 %v6900_v2, %s5850_s15 }
 0x20d   : > { %v7205_v25 = vpop.permute.xlu1 %1993  ;;  %v5204_v9 = vpop.permute.xlu0 %5203 }
 0x20e   : > { %8438 = vst [vmem:[#allocation16_spill] sm:$0xff] %v7205_v25  ;;  %v5205_v61 = vunpack.i.l.bf16 %v5204_v9 }
 0x20f   : > { %5388 = vrot.lane.b32.xlu1 %v5387_v52, %s5848_s12  ;;  %3016 = vrot.lane.b32.xlu0 %v2571_v38, %s5849_s10 }
 0x210   : > { %v3102_v24 = vsel %vm336_vm0, %v2444_v63, %v5205_v61 }
 0x211   : > { %v5189_v17 = vpop.permute.xlu1 %5188  ;;  %v5214_v41 = vpop.permute.xlu0 %5213 }
 0x212   : > { %v5190_v2 = vunpack.i.l.bf16 %v5189_v17  ;;  %v5191_v56 = vunpack.i.h.bf16 %v5189_v17  ;;  %v5215_v54 = vunpack.i.l.bf16 %v5214_v41  ;;  %v5216_v53 = vunpack.i.h.bf16 %v5214_v41  ;;  %v7238_v17 = vld [vmem:[#allocation2 + $0x18a] sm:$0xff] }
 0x213   : > { %3014 = vrot.lane.b32.xlu1 %v2570_v58, %s5849_s10  ;;  %5398 = vrot.lane.b32.xlu0 %v5387_v52, %s5845_s11  ;;  %v7236_v52 = vld [vmem:[#allocation2 + $0x182] sm:$0xff] }
 0x214   : > { %v3150_v27 = vsel %vm1344_vm5, %v5190_v2, %v5195_v45  ;;  %v3151_v12 = vsel %vm1344_vm5, %v5191_v56, %v5196_v5  ;;  %v3118_v50 = vsel %vm1310_vm9, %v3102_v24, %v5215_v54  ;;  %v2445_v41 = vld [vmem:[#allocation2 + $0xc8] sm:$0xff] }
 0x215   : > { %v5199_v13 = vpop.permute.xlu1 %5198  ;;  %v7211_v31 = vpop.permute.xlu0 %2992  ;;  %v3134_v38 = vsel %vm1327_vm10, %v3118_v50, %v5190_v2  ;;  %v2573_v5 = vld [vmem:[#allocation2 + $0x1a1] sm:$0xff] }
 0x216   : > { %v5200_v49 = vunpack.i.l.bf16 %v5199_v13  ;;  %v5201_v10 = vunpack.i.h.bf16 %v5199_v13  ;;  %v2556_v13 = vld [vmem:[#allocation2 + $0x198] sm:$0xff] }
 0x217   : > { %3064 = vrot.lane.b32.xlu1 %v6902_v34, %s5850_s15  ;;  %3068 = vrot.lane.b32.xlu0 %v7021_v20, %s5850_s15  ;;  %v5206_v20 = vunpack.i.h.bf16 %v5204_v9 }
 0x218   : > { %v3166_v34 = vsel %vm1361_vm6, %v3150_v27, %v5200_v49  ;;  %v2557_v49 = vld [vmem:[#allocation2 + $0x1a0] sm:$0xff] }
 0x219   : > { %v5209_v47 = vpop.permute.xlu1 %5208  ;;  %v7217_v23 = vpop.permute.xlu0 %5223  ;;  %v3103_v58 = vsel %vm336_vm0, %v2445_v41, %v5206_v20  ;;  %v5417_v2 = vpack.i.bf16 %v2557_v49, %v2556_v13  ;;  %v2588_v41 = vld [vmem:[#allocation2 + $0x19a] sm:$0xff] }
 0x21a   : > { %v5211_v51 = vunpack.i.h.bf16 %v5209_v47  ;;  %v5210_v39 = vunpack.i.l.bf16 %v5209_v47 }
 0x21b   : > { %3066 = vrot.lane.b32.xlu1 %v7019_v48, %s5850_s15  ;;  %5413 = vrot.lane.b32.xlu0 %v5372_v55, %s5843_s7  ;;  %v3167_v48 = vsel %vm1361_vm6, %v3151_v12, %v5201_v10  ;;  %v5407_v10 = vpack.i.bf16 %v7238_v17, %v7236_v52  ;;  %s5851_s7 = smov 96  }
 0x21c   : > { %v3182_v14 = vsel %vm1378_vm7, %v3166_v34, %v5210_v39  ;;  %v3183_v9 = vsel %vm1378_vm7, %v3167_v48, %v5211_v51  ;;  %v2572_v34 = vld [vmem:[#allocation2 + $0x199] sm:$0xff] }
 0x21d   : > { %v7227_v8 = vpop.permute.xlu1 %2990  ;;  %v7229_v6 = vpop.permute.xlu0 %5233  ;;  %v3199_v54 = vsel %vm1395_vm8, %v3183_v9, %v7211_v31 }
 0x21e   : > { %v3198_v55 = vsel %vm1395_vm8, %v3182_v14, %v7227_v8  ;;  %v5236_v9 = vunpack.i.h.bf16 %v7229_v6 }
 0x21f   : > { %5403 = vrot.lane.b32.xlu1 %v5402_v16, %s5846_s29  ;;  %5423 = vrot.lane.b32.xlu0 %v5377_v35, %s5844_s19  ;;  %v3119_v35 = vsel %vm1310_vm9, %v3103_v58, %v5216_v53  ;;  %s8088_s19 = scalar_lea.vmem [#allocation9], %s6017_s14  ;;  %s8225_s29 = scalar_lea.hbm %s8390_s6, %s8406_s16 }
 0x220   : > { %3386 = vmatprep.mubr.f32.mxu1 %v3198_v55  ;;  %v3135_v47 = vsel %vm1327_vm10, %v3119_v35, %v5191_v56  ;;  %v5235_v56 = vunpack.i.l.bf16 %v7229_v6  ;;  %v2446_v55 = vld [vmem:[#allocation2 + $0xd8] sm:$0xff] }
 0x221   : > { %3387 = vmatmul.mubr.f32.vlgmr.msra.gmra.mxu1 %v3134_v38  ;;  %v7244_v45 = vpop.permute.xlu1 %5218  ;;  %v7246_v61 = vpop.permute.xlu0 %5243 }
 0x222   : > { %3391 = vmatprep.mubr.f32.mxu1 %v3199_v54  ;;  %4860 = vmatpush3.msk.msra.mxu1 %vm1525_vm4, %v6809_v11  ;;  %v5220_v39 = vunpack.i.l.bf16 %v7244_v45  ;;  %v5221_v63 = vunpack.i.h.bf16 %v7244_v45  ;;  %v5245_v20 = vunpack.i.l.bf16 %v7246_v61  ;;  %v3104_v38 = vsel %vm336_vm0, %v2446_v55, %v5235_v56 }
 0x223   : > { %5408 = vrot.lane.b32.xlu1 %v5407_v10, %s5847_s27  ;;  %3070 = vrot.lane.b32.xlu0 %v7115_v22, %s5850_s15  ;;  %v5225_v22 = vunpack.i.l.bf16 %v7217_v23  ;;  %v5246_v58 = vunpack.i.h.bf16 %v7246_v61  ;;  %v2589_v10 = vld [vmem:[#allocation2 + $0x1a2] sm:$0xff]  ;;  %s4274_s27 = sshll.u32 %s8088_s19, 4  ;;  %s8229_s27 = int_to_ptr.vmem [resolvable:$true] %s4274_s27 }
 0x224   : > { %4852 = vmatprep.subr.mxu1 %v6863_v37 }
 0x225   : > { %3392 = vmatmul.mubr.f32.gmra.mxu1 %v3135_v47  ;;  %v5229_v27 = vpop.permute.xlu1 %5228  ;;  %v7260_v51 = vpop.permute.xlu0 %2996  ;;  %v3152_v53 = vsel %vm1344_vm5, %v5220_v39, %v5225_v22 }
 0x226   : > { %4861 = vmatpush3.msra.mxu1 %v6863_v37  ;;  %v5230_v11 = vunpack.i.l.bf16 %v5229_v27  ;;  %v5231_v24 = vunpack.i.h.bf16 %v5229_v27  ;;  %v5226_v37 = vunpack.i.h.bf16 %v7217_v23  ;;  %v4497_v27 = vld [vmem:[%s6021_s26 + $0x88] sm:$0xff] }
 0x227   : > { %5418 = vrot.lane.b32.xlu1 %v5417_v2, %s5848_s12  ;;  %3020 = vrot.lane.b32.xlu0 %v2573_v5, %s5849_s10  ;;  %s4245_s12 = scalar_lea.sflag [#allocation10], %s6014_s13 }
 0x228   : > { %4853 = vmatprep.subr.mxu1 %v6913_v32  ;;  %v3168_v48 = vsel %vm1361_vm6, %v3152_v53, %v5230_v11 }
 0x229   : > { %v5239_v12 = vpop.permute.xlu1 %5238  ;;  %v7271_v14 = vpop.permute.xlu0 %5253  ;;  %4862 = vmatpush3.msra.mxu1 %v6913_v32  ;;  %v3153_v32 = vsel %vm1344_vm5, %v5221_v63, %v5226_v37 }
 0x22a   : > { %v5241_v16 = vunpack.i.h.bf16 %v5239_v12  ;;  %v5240_v50 = vunpack.i.l.bf16 %v5239_v12  ;;  %4854 = vmatprep.subr.mxu1 %v7104_v28  ;;  %v3169_v45 = vsel %vm1361_vm6, %v3153_v32, %v5231_v24  ;;  %v4499_v24 = vld [vmem:[%s6021_s26 + $0x98] sm:$0xff]  ;;  %v5256_v12 = vunpack.i.h.bf16 %v7271_v14 }
 0x22b   : > { %3018 = vrot.lane.b32.xlu1 %v2572_v34, %s5849_s10  ;;  %3076 = vrot.lane.b32.xlu0 %v7191_v19, %s5850_s15  ;;  %v3120_v19 = vsel %vm1310_vm9, %v3104_v38, %v5245_v20  ;;  %v4496_v38 = vld [vmem:[%s6021_s26 + $0x80] sm:$0xff]  ;;  %s5737_s10 = scalar_lea.vmem %s8229_s27, 4096 }
 0x22c   : > { %v3184_v23 = vsel %vm1378_vm7, %v3168_v48, %v5240_v50  ;;  %4863 = vmatpush3.msra.mxu1 %v7104_v28  ;;  %v3185_v54 = vsel %vm1378_vm7, %v3169_v45, %v5241_v16  ;;  %v2447_v28 = vld [vmem:[#allocation2 + $0xe0] sm:$0xff]  ;;  %v3136_v61 = vsel %vm1327_vm10, %v3120_v19, %v5220_v39  ;;  %v2448_v50 = vld [vmem:[#allocation2 + $0xf0] sm:$0xff]  ;;  %v4501_v19 = vld [vmem:[%s6021_s26 + $0xa8] sm:$0xff]  ;;  %p5738_p11 = scmp.ne.s32.totalorder %s8229_s27, %s5737_s10 }
 0x22d   : > { %v7287_v13 = vpop.permute.xlu1 %2994  ;;  %v7289_v49 = vpop.permute.xlu0 %5263  ;;  %4855 = vmatprep.subr.mxu1 %v7123_v30  ;;  %v3105_v35 = vsel %vm336_vm0, %v2447_v28, %v5236_v9 }
 0x22e   : > { %v3200_v6 = vsel %vm1395_vm8, %v3184_v23, %v7287_v13  ;;  %4864 = vmatpush3.msra.mxu1 %v7123_v30  ;;  %v3201_v30 = vsel %vm1395_vm8, %v3185_v54, %v7260_v51  ;;  %v5266_v48 = vunpack.i.h.bf16 %v7289_v49  ;;  %p5739_p9 = pnand %p5738_p11, %p8458_p7 }
 0x22f   : > { %3072 = vrot.lane.b32.xlu1 %v7117_v60, %s5850_s15  ;;  %3082 = vrot.lane.b32.xlu0 %v2588_v41, %s5850_s15  ;;  %v3121_v60 = vsel %vm1310_vm9, %v3105_v35, %v5246_v58 }
 0x230   : > { %3396 = vmatprep.mubr.f32.mxu1 %v3200_v6  ;;  %4856 = vmatprep.subr.mxu1 %v7136_v43  ;;  %v3137_v5 = vsel %vm1327_vm10, %v3121_v60, %v5221_v63  ;;  %v5255_v63 = vunpack.i.l.bf16 %v7271_v14  ;;  %v2449_v6 = vld [vmem:[#allocation2 + $0xf8] sm:$0xff]  ;;  %v4500_v60 = vld [vmem:[%s6021_s26 + $0xa0] sm:$0xff]  ;;  %p5740_p10 = pneg %p5739_p9 }
 0x231   : > { %3397 = vmatmul.mubr.f32.gmra.mxu1 %v3136_v61  ;;  %v7304_v2 = vpop.permute.xlu1 %5248  ;;  %v5274_v47 = vpop.permute.xlu0 %5273  ;;  %v3107_v28 = vsel %vm336_vm0, %v2449_v6, %v5266_v48  ;;  %v2450_v48 = vld [vmem:[#allocation2 + $0x108] sm:$0xff] }
 0x232   : > { %3401 = vmatprep.mubr.f32.mxu1 %v3201_v30  ;;  %4865 = vmatpush3.msra.mxu1 %v7136_v43  ;;  %v5250_v22 = vunpack.i.l.bf16 %v7304_v2  ;;  %v5265_v43 = vunpack.i.l.bf16 %v7289_v49  ;;  %v5275_v34 = vunpack.i.l.bf16 %v5274_v47  ;;  %v5276_v9 = vunpack.i.h.bf16 %v5274_v47  ;;  %v4503_v47 = vld [vmem:[%s6021_s26 + $0xb8] sm:$0xff] }
 0x233   : > { %3074 = vrot.lane.b32.xlu1 %v7189_v1, %s5850_s15  ;;  %3084 = vrot.lane.b32.xlu0 %v2589_v10, %s5850_s15  ;;  %v5251_v1 = vunpack.i.h.bf16 %v7304_v2  ;;  %v4498_v10 = vld [vmem:[%s6021_s26 + $0x90] sm:$0xff] }
 0x234   : > { %4857 = vmatprep.subr.mxu1 %v7148_v7  ;;  %v3154_v53 = vsel %vm1344_vm5, %v5250_v22, %v5255_v63  ;;  %v3123_v61 = vsel %vm1310_vm9, %v3107_v28, %v5276_v9  ;;  %v4509_v28 = vld [vmem:[%s6021_s26 + $0xe8] sm:$0xff] }
 0x235   : > { %3402 = vmatmul.mubr.f32.gmra.mxu1 %v3137_v5  ;;  %v5259_v39 = vpop.permute.xlu1 %5258  ;;  %v7316_v11 = vpop.permute.xlu0 %3000  ;;  %v3155_v55 = vsel %vm1344_vm5, %v5251_v1, %v5256_v12  ;;  %v3139_v30 = vsel %vm1327_vm10, %v3123_v61, %v5251_v1 }
 0x236   : > { %4866 = vmatpush3.msra.mxu1 %v7148_v7  ;;  %v5260_v56 = vunpack.i.l.bf16 %v5259_v39  ;;  %v5261_v20 = vunpack.i.h.bf16 %v5259_v39 }
 0x237   : > { %3078 = vrot.lane.b32.xlu1 %v7236_v52, %s5850_s15  ;;  %3759 = vrot.lane.b32.xlu0 %v4497_v27, %s5850_s15 }
 0x238   : > { %4858 = vmatprep.subr.mxu1 %v7153_v3  ;;  %v3170_v14 = vsel %vm1361_vm6, %v3154_v53, %v5260_v56  ;;  %v3171_v23 = vsel %vm1361_vm6, %v3155_v55, %v5261_v20  ;;  %v4507_v55 = vld [vmem:[%s6021_s26 + $0xd8] sm:$0xff] }
 0x239   : > { %v5269_v7 = vpop.permute.xlu1 %5268  ;;  %v7329_v37 = vpop.permute.xlu0 %5283  ;;  %4867 = vmatpush3.msra.mxu1 %v7153_v3  ;;  %v3106_v3 = vsel %vm336_vm0, %v2448_v50, %v5265_v43 }
 0x23a   : > { %v5271_v52 = vunpack.i.h.bf16 %v5269_v7  ;;  %v5270_v16 = vunpack.i.l.bf16 %v5269_v7  ;;  %4859 = vmatprep.subr.mxu1 %v7162_v42  ;;  %v3122_v41 = vsel %vm1310_vm9, %v3106_v3, %v5275_v34  ;;  %v5285_v1 = vunpack.i.l.bf16 %v7329_v37 }
 0x23b   : > { %3080 = vrot.lane.b32.xlu1 %v7238_v17, %s5850_s15  ;;  %3763 = vrot.lane.b32.xlu0 %v4499_v24, %s5850_s15  ;;  %v3138_v54 = vsel %vm1327_vm10, %v3122_v41, %v5250_v22  ;;  %v4505_v22 = vld [vmem:[%s6021_s26 + $0xc8] sm:$0xff]  ;;  %v4502_v24 = vld [vmem:[%s6021_s26 + $0xb0] sm:$0xff]  ;;  %v5286_v12 = vunpack.i.h.bf16 %v7329_v37 }
 0x23c   : > { %v3186_v32 = vsel %vm1378_vm7, %v3170_v14, %v5270_v16  ;;  %4868 = vmatpush3.msra.mxu1 %v7162_v42  ;;  %v3187_v49 = vsel %vm1378_vm7, %v3171_v23, %v5271_v52 }
 0x23d   : > { %v7346_v58 = vpop.permute.xlu1 %2998  ;;  %v7348_v17 = vpop.permute.xlu0 %5293  ;;  %v3203_v42 = vsel %vm1395_vm8, %v3187_v49, %v7316_v11  ;;  %v4504_v49 = vld [vmem:[%s6021_s26 + $0xc0] sm:$0xff] }
 0x23e   : > { %v3202_v45 = vsel %vm1395_vm8, %v3186_v32, %v7346_v58  ;;  %v5295_v43 = vunpack.i.l.bf16 %v7348_v17  ;;  %v5296_v14 = vunpack.i.h.bf16 %v7348_v17 }
 0x23f   : > { %3406 = vmatprep.mubr.f32.mxu1 %v3202_v45  ;;  %3757 = vrot.lane.b32.xlu1 %v4496_v38, %s5850_s15 }
 0x240   : > { %3407 = vmatmul.mubr.f32.gmra.mxu1 %v3138_v54  ;;  %3767 = vrot.lane.b32.xlu0 %v4501_v19, %s5850_s15  ;;  %v3108_v37 = vsel %vm336_vm0, %v2450_v48, %v5295_v43  ;;  %v2451_v54 = vld [vmem:[#allocation2 + $0x110] sm:$0xff] }
 0x241   : > { %v5279_v35 = vpop.permute.xlu1 %5278  ;;  %v5304_v2 = vpop.permute.xlu0 %5303  ;;  %3411 = vmatprep.mubr.f32.mxu1 %v3203_v42  ;;  %v3109_v61 = vsel %vm336_vm0, %v2451_v54, %v5296_v14 }
 0x242   : > { %v5280_v39 = vunpack.i.l.bf16 %v5279_v35  ;;  %v5281_v56 = vunpack.i.h.bf16 %v5279_v35  ;;  %v5305_v34 = vunpack.i.l.bf16 %v5304_v2  ;;  %v5306_v32 = vunpack.i.h.bf16 %v5304_v2  ;;  %v4506_v2 = vld [vmem:[%s6021_s26 + $0xd0] sm:$0xff] }
 0x243   : > { %3761 = vrot.lane.b32.xlu1 %v4498_v10, %s5850_s15 }
 0x244   : > { %3412 = vmatmul.mubr.f32.gmra.mxu1 %v3139_v30  ;;  %3771 = vrot.lane.b32.xlu0 %v4503_v47, %s5850_s15  ;;  %v3156_v52 = vsel %vm1344_vm5, %v5280_v39, %v5285_v1  ;;  %v3157_v3 = vsel %vm1344_vm5, %v5281_v56, %v5286_v12  ;;  %v3124_v23 = vsel %vm1310_vm9, %v3108_v37, %v5305_v34 }
 0x245   : > { %v5289_v5 = vpop.permute.xlu1 %5288  ;;  %v7366_v27 = vpop.permute.xlu0 %3004  ;;  %v3140_v42 = vsel %vm1327_vm10, %v3124_v23, %v5280_v39  ;;  %v3125_v35 = vsel %vm1310_vm9, %v3109_v61, %v5306_v32  ;;  %v4508_v39 = vld [vmem:[%s6021_s26 + $0xe0] sm:$0xff] }
 0x246   : > { %v5290_v63 = vunpack.i.l.bf16 %v5289_v5  ;;  %v5291_v20 = vunpack.i.h.bf16 %v5289_v5  ;;  %v3141_v5 = vsel %vm1327_vm10, %v3125_v35, %v5281_v56  ;;  %v4510_v56 = vld [vmem:[%s6021_s26 + $0xf0] sm:$0xff] }
 0x247   : > { %3765 = vrot.lane.b32.xlu1 %v4500_v60, %s5850_s15  ;;  %v4511_v60 = vld [vmem:[%s6021_s26 + $0xf8] sm:$0xff] }
 0x248   : > { %3775 = vrot.lane.b32.xlu0 %v4505_v22, %s5850_s15  ;;  %v3172_v9 = vsel %vm1361_vm6, %v3156_v52, %v5290_v63  ;;  %v3173_v38 = vsel %vm1361_vm6, %v3157_v3, %v5291_v20  ;;  %v2452_v3 = vld [vmem:[#allocation2 + $0x120] sm:$0xff] }
 0x249   : > { %v5299_v7 = vpop.permute.xlu1 %5298  ;;  %v7375_v53 = vpop.permute.xlu0 %5313 }
 0x24a   : > { %v5301_v16 = vunpack.i.h.bf16 %v5299_v7  ;;  %v5300_v50 = vunpack.i.l.bf16 %v5299_v7  ;;  %v5316_v52 = vunpack.i.h.bf16 %v7375_v53 }
 0x24b   : > { %3769 = vrot.lane.b32.xlu1 %v4502_v24, %s5850_s15  ;;  %v5315_v24 = vunpack.i.l.bf16 %v7375_v53 }
 0x24c   : > { %v3188_v41 = vsel %vm1378_vm7, %v3172_v9, %v5300_v50  ;;  %v3189_v45 = vsel %vm1378_vm7, %v3173_v38, %v5301_v16  ;;  %3779 = vrot.lane.b32.xlu0 %v4507_v55, %s5850_s15 }
 0x24d   : > { %v7389_v19 = vpop.permute.xlu1 %3002  ;;  %v5324_v17 = vpop.permute.xlu0 %5323  ;;  %v3205_v10 = vsel %vm1395_vm8, %v3189_v45, %v7366_v27 }
 0x24e   : > { %v3204_v6 = vsel %vm1395_vm8, %v3188_v41, %v7389_v19  ;;  %v5325_v1 = vunpack.i.l.bf16 %v5324_v17  ;;  %v5326_v9 = vunpack.i.h.bf16 %v5324_v17 }
 0x24f   : > { %3416 = vmatprep.mubr.f32.mxu1 %v3204_v6  ;;  %3773 = vrot.lane.b32.xlu1 %v4504_v49, %s5850_s15 }
 0x250   : > { %3417 = vmatmul.mubr.f32.gmra.mxu1 %v3140_v42  ;;  %3783 = vrot.lane.b32.xlu0 %v4509_v28, %s5850_s15  ;;  %v3110_v41 = vsel %vm336_vm0, %v2452_v3, %v5325_v1  ;;  %v2453_v28 = vld [vmem:[#allocation2 + $0x128] sm:$0xff] }
 0x251   : > { %v5309_v47 = vpop.permute.xlu1 %5308  ;;  %v5334_v30 = vpop.permute.xlu0 %5333  ;;  %3421 = vmatprep.mubr.f32.mxu1 %v3205_v10  ;;  %v3111_v61 = vsel %vm336_vm0, %v2453_v28, %v5326_v9 }
 0x252   : > { %v5310_v63 = vunpack.i.l.bf16 %v5309_v47  ;;  %v5311_v34 = vunpack.i.h.bf16 %v5309_v47  ;;  %v5335_v12 = vunpack.i.l.bf16 %v5334_v30  ;;  %v5336_v23 = vunpack.i.h.bf16 %v5334_v30 }
 0x253   : > { %3777 = vrot.lane.b32.xlu1 %v4506_v2, %s5850_s15 }
 0x254   : > { %3422 = vmatmul.mubr.f32.gmra.mxu1 %v3141_v5  ;;  %3787 = vrot.lane.b32.xlu0 %v4511_v60, %s5850_s15  ;;  %v3158_v48 = vsel %vm1344_vm5, %v5310_v63, %v5315_v24  ;;  %v3159_v37 = vsel %vm1344_vm5, %v5311_v34, %v5316_v52  ;;  %v3126_v53 = vsel %vm1310_vm9, %v3110_v41, %v5335_v12 }
 0x255   : > { %v5319_v22 = vpop.permute.xlu1 %5318  ;;  %v7408_v43 = vpop.permute.xlu0 %3008  ;;  %v3142_v42 = vsel %vm1327_vm10, %v3126_v53, %v5310_v63  ;;  %v3127_v35 = vsel %vm1310_vm9, %v3111_v61, %v5336_v23 }
 0x256   : > { %v5320_v20 = vunpack.i.l.bf16 %v5319_v22  ;;  %v5321_v7 = vunpack.i.h.bf16 %v5319_v22  ;;  %v3143_v30 = vsel %vm1327_vm10, %v3127_v35, %v5311_v34 }
 0x257   : > { %3781 = vrot.lane.b32.xlu1 %v4508_v39, %s5850_s15 }
 0x258   : > { %v3174_v32 = vsel %vm1361_vm6, %v3158_v48, %v5320_v20  ;;  %v3175_v49 = vsel %vm1361_vm6, %v3159_v37, %v5321_v7 }
 0x259   : > { %v5329_v16 = vpop.permute.xlu1 %5328  ;;  %v5344_v50 = vpop.permute.xlu0 %5343 }
 0x25a   : > { %v5331_v55 = vunpack.i.h.bf16 %v5329_v16  ;;  %v5330_v14 = vunpack.i.l.bf16 %v5329_v16  ;;  %v5345_v24 = vunpack.i.l.bf16 %v5344_v50 }
 0x25b   : > { %3785 = vrot.lane.b32.xlu1 %v4510_v56, %s5850_s15  ;;  %v5346_v56 = vunpack.i.h.bf16 %v5344_v50 }
 0x25c   : > { %v3190_v38 = vsel %vm1378_vm7, %v3174_v32, %v5330_v14  ;;  %v3191_v17 = vsel %vm1378_vm7, %v3175_v49, %v5331_v55  ;;  %v2454_v14 = vld [vmem:[#allocation2 + $0x138] sm:$0xff] }
 0x25d   : > { %v7423_v45 = vpop.permute.xlu1 %3006  ;;  %v5354_v6 = vpop.permute.xlu0 %5353  ;;  %v3207_v10 = vsel %vm1395_vm8, %v3191_v17, %v7408_v43  ;;  %v2455_v17 = vld [vmem:[#allocation2 + $0x140] sm:$0xff] }
 0x25e   : > { %v3206_v54 = vsel %vm1395_vm8, %v3190_v38, %v7423_v45  ;;  %v5355_v63 = vunpack.i.l.bf16 %v5354_v6  ;;  %v5356_v3 = vunpack.i.h.bf16 %v5354_v6 }
 0x25f   : > { %3426 = vmatprep.mubr.f32.mxu1 %v3206_v54 }
 0x260   : > { %3427 = vmatmul.mubr.f32.gmra.mxu1 %v3142_v42  ;;  %v3112_v37 = vsel %vm336_vm0, %v2454_v14, %v5355_v63  ;;  %v3113_v42 = vsel %vm336_vm0, %v2455_v17, %v5356_v3 }
 0x261   : > { %v5339_v2 = vpop.permute.xlu1 %5338  ;;  %v5364_v47 = vpop.permute.xlu0 %5363  ;;  %3431 = vmatprep.mubr.f32.mxu1 %v3207_v10 }
 0x262   : > { %v5340_v39 = vunpack.i.l.bf16 %v5339_v2  ;;  %v5341_v1 = vunpack.i.h.bf16 %v5339_v2  ;;  %v5365_v12 = vunpack.i.l.bf16 %v5364_v47  ;;  %v5366_v32 = vunpack.i.h.bf16 %v5364_v47 }
 0x264   : > { %3432 = vmatmul.mubr.f32.gmra.mxu1 %v3143_v30  ;;  %v3160_v34 = vsel %vm1344_vm5, %v5340_v39, %v5345_v24  ;;  %v3128_v50 = vsel %vm1310_vm9, %v3112_v37, %v5365_v12  ;;  %v3129_v10 = vsel %vm1310_vm9, %v3113_v42, %v5366_v32 }
 0x265   : > { %v5349_v60 = vpop.permute.xlu1 %5348  ;;  %v3055_v5 = vpop.permute.xlu0 %3054  ;;  %v3144_v28 = vsel %vm1327_vm10, %v3128_v50, %v5340_v39 }
 0x266   : > { %v3214_v22 = vsel %vm1412_vm11, %v7227_v8, %v3055_v5  ;;  %v5350_v20 = vunpack.i.l.bf16 %v5349_v60  ;;  %v5351_v7 = vunpack.i.h.bf16 %v5349_v60  ;;  %v3161_v8 = vsel %vm1344_vm5, %v5341_v1, %v5346_v56 }
 0x267   : > { %4827 = vmatprep.mubr.msk.f32.mxu0 %vm1476_vm12, %v3214_v22  ;;  %v3145_v60 = vsel %vm1327_vm10, %v3129_v10, %v5341_v1 }
 0x268   : > { %v3176_v9 = vsel %vm1361_vm6, %v3160_v34, %v5350_v20  ;;  %v3177_v23 = vsel %vm1361_vm6, %v3161_v8, %v5351_v7 }
 0x269   : > { %v5359_v52 = vpop.permute.xlu1 %5358  ;;  %v7437_v16 = vpop.permute.xlu0 %3012 }
 0x26a   : > { %v5361_v48 = vunpack.i.h.bf16 %v5359_v52  ;;  %v5360_v55 = vunpack.i.l.bf16 %v5359_v52 }
 0x26c   : > { %v3192_v41 = vsel %vm1378_vm7, %v3176_v9, %v5360_v55  ;;  %v3193_v53 = vsel %vm1378_vm7, %v3177_v23, %v5361_v48 }
 0x26d   : > { %v7446_v38 = vpop.permute.xlu1 %3010  ;;  %v7449_v49 = vpop.permute.xlu0 %5368  ;;  %v3209_v61 = vsel %vm1395_vm8, %v3193_v53, %v7437_v16 }
 0x26e   : > { %v3208_v6 = vsel %vm1395_vm8, %v3192_v41, %v7446_v38  ;;  %v7453_v54 = vpop.f32.mrf.mxu0  ;;  %v5370_v8 = vunpack.i.l.bf16 %v7449_v49  ;;  %v5371_v32 = vunpack.i.h.bf16 %v7449_v49 }
 0x26f   : > { %3436 = vmatprep.mubr.f32.mxu1 %v3208_v6 }
 0x270   : > { %3437 = vmatmul.mubr.f32.gmra.mxu1 %v3144_v28  ;;  %v7462_v30 = vpop.f32.mrf.mxu0  ;;  %v2456_v28 = vld [vmem:[#allocation2 + $0x150] sm:$0xff] }
 0x271   : > { %v3057_v35 = vpop.permute.xlu1 %3056  ;;  %3441 = vmatprep.mubr.f32.mxu1 %v3209_v61  ;;  %v3061_v47 = vpop.permute.xlu0 %3060 }
 0x272   : > { %v3215_v2 = vsel %vm1412_vm11, %v7211_v31, %v3057_v35  ;;  %v3217_v20 = vsel %vm1412_vm11, %v7260_v51, %v3061_v47 }
 0x273   : > { %4828 = vmatmul.mubr.msk.f32.vlgmr.msra.gmra.mxu0 %vm1476_vm12, %v3215_v2 }
 0x274   : > { %3442 = vmatmul.mubr.f32.gmra.mxu1 %v3145_v60 }
 0x275   : > { %v7466_v5 = vpop.f32.mrf.mxu0  ;;  %v3059_v39 = vpop.permute.xlu1 %3058 }
 0x276   : > { %v3216_v22 = vsel %vm1412_vm11, %v7287_v13, %v3059_v39  ;;  %v5384_v63 = vpop.permute.xlu0 %5383 }
 0x277   : > { %v7472_v24 = vpop.f32.mrf.mxu0  ;;  %4830 = vmatprep.mubr.msk.f32.mxu0 %vm1476_vm12, %v3216_v22  ;;  %v5385_v48 = vunpack.i.l.bf16 %v5384_v63 }
 0x278   : > { %4831 = vmatmul.mubr.msk.f32.gmra.mxu0 %vm1476_vm12, %v3217_v20 }
 0x279   : > { %v7476_v31 = vpop.f32.mrf.mxu0  ;;  %v5374_v1 = vpop.permute.xlu1 %5373  ;;  %v3114_v35 = vsel %vm336_vm0, %v2456_v28, %v5385_v48 }
 0x27a   : > { %v5394_v12 = vpop.permute.xlu0 %5393  ;;  %v5375_v13 = vunpack.i.l.bf16 %v5374_v1  ;;  %v5376_v55 = vunpack.i.h.bf16 %v5374_v1 }
 0x27b   : > { %v7478_v7 = vpop.f32.mrf.mxu0  ;;  %v5395_v9 = vunpack.i.l.bf16 %v5394_v12  ;;  %v5396_v2 = vunpack.i.h.bf16 %v5394_v12 }
 0x27c   : > { %v3162_v23 = vsel %vm1344_vm5, %v5370_v8, %v5375_v13  ;;  %v3163_v42 = vsel %vm1344_vm5, %v5371_v32, %v5376_v55 }
 0x27d   : > { %v7480_v56 = vpop.f32.mrf.mxu0  ;;  %v5379_v52 = vpop.permute.xlu1 %5378  ;;  %v3130_v47 = vsel %vm1310_vm9, %v3114_v35, %v5395_v9 }
 0x27e   : > { %v3063_v34 = vpop.permute.xlu0 %3062  ;;  %v5380_v51 = vunpack.i.l.bf16 %v5379_v52  ;;  %v5381_v37 = vunpack.i.h.bf16 %v5379_v52  ;;  %v2457_v52 = vld [vmem:[#allocation2 + $0x158] sm:$0xff]  ;;  %v3146_v12 = vsel %vm1327_vm10, %v3130_v47, %v5370_v8 }
 0x27f   : > { %v3218_v14 = vsel %vm1412_vm11, %v7346_v58, %v3063_v34  ;;  %v4599_v3 = vpop.f32.mrf.mxu0  ;;  %v5386_v58 = vunpack.i.h.bf16 %v5384_v63 }
 0x280   : > { %4833 = vmatprep.mubr.msk.f32.mxu0 %vm1476_vm12, %v3218_v14  ;;  %v3178_v10 = vsel %vm1361_vm6, %v3162_v23, %v5380_v51  ;;  %v3179_v60 = vsel %vm1361_vm6, %v3163_v42, %v5381_v37 }
 0x281   : > { %v7487_v41 = vpop.f32.mrf.mxu0  ;;  %v5389_v50 = vpop.permute.xlu1 %5388  ;;  %v3115_v34 = vsel %vm336_vm0, %v2457_v52, %v5386_v58  ;;  %v4594_v58 = vadd.f32 %v7472_v24, %v7466_v5 }
 0x282   : > { %v5391_v53 = vunpack.i.h.bf16 %v5389_v50  ;;  %v5390_v6 = vunpack.i.l.bf16 %v5389_v50  ;;  %v7490_v17 = vpop.permute.xlu0 %3016  ;;  %v3131_v55 = vsel %vm1310_vm9, %v3115_v34, %v5396_v2 }
 0x283   : > { %v4602_v61 = vpop.f32.mrf.mxu0  ;;  %v3147_v8 = vsel %vm1327_vm10, %v3131_v55, %v5371_v32  ;;  %v4591_v32 = vadd.f32 %v7462_v30, %v7453_v54 }
 0x284   : > { %v3194_v49 = vsel %vm1378_vm7, %v3178_v10, %v5390_v6  ;;  %v3195_v20 = vsel %vm1378_vm7, %v3179_v60, %v5391_v53  ;;  %v4597_v10 = vadd.f32 %v7478_v7, %v7476_v31 }
 0x285   : > { %v4604_v39 = vpop.f32.mrf.mxu0  ;;  %v7498_v22 = vpop.permute.xlu1 %3014  ;;  %v3211_v48 = vsel %vm1395_vm8, %v3195_v20, %v7490_v17 }
 0x286   : > { %v7501_v63 = vpop.permute.xlu0 %5398  ;;  %v3210_v1 = vsel %vm1395_vm8, %v3194_v49, %v7498_v22 }
 0x287   : > { %v4605_v13 = vpop.f32.mrf.mxu0  ;;  %3446 = vmatprep.mubr.f32.mxu1 %v3210_v1  ;;  %v4603_v1 = vadd.f32 %v4602_v61, %v7487_v41  ;;  %v5401_v52 = vunpack.i.h.bf16 %v7501_v63 }
 0x288   : > { %3447 = vmatmul.mubr.f32.gmra.mxu1 %v3146_v12  ;;  %v4606_v30 = vadd.f32 %v4605_v13, %v4604_v39 }
 0x289   : > { %v7510_v51 = vpop.f32.mrf.mxu0  ;;  %v3065_v14 = vpop.permute.xlu1 %3064  ;;  %3451 = vmatprep.mubr.f32.mxu1 %v3211_v48 }
 0x28a   : > { %v3219_v9 = vsel %vm1412_vm11, %v7316_v11, %v3065_v14  ;;  %v3069_v37 = vpop.permute.xlu0 %3068 }
 0x28b   : > { %v7514_v50 = vpop.f32.mrf.mxu0  ;;  %4834 = vmatmul.mubr.msk.f32.gmra.mxu0 %vm1476_vm12, %v3219_v9  ;;  %v3221_v11 = vsel %vm1412_vm11, %v7366_v27, %v3069_v37  ;;  %v7538_v27 = vld [vmem:[%s8388_s4] ss:$0 sm:$0xff]  ;;  %v5400_v37 = vunpack.i.l.bf16 %v7501_v63 }
 0x28c   : > { %3452 = vmatmul.mubr.f32.gmra.mxu1 %v3147_v8  ;;  %v1601_v54 = vadd.f32 %v4594_v58, %v7538_v27  ;;  %v1596_v31 = vadd.f32 %v4591_v32, %v7538_v27  ;;  %v1606_v20 = vadd.f32 %v4597_v10, %v7538_v27 }
 0x28d   : > { %v4610_v23 = vpop.f32.mrf.mxu0  ;;  %v3067_v53 = vpop.permute.xlu1 %3066 }
 0x28e   : > { %v3220_v6 = vsel %vm1412_vm11, %v7389_v19, %v3067_v53  ;;  %v7520_v28 = vpop.permute.xlu0 %5413  ;;  %v4600_v19 = vadd.f32 %v4599_v3, %v7480_v56  ;;  %v1621_v53 = vadd.f32 %v4606_v30, %v7538_v27 }
 0x28f   : > { %v4611_v42 = vpop.f32.mrf.mxu0  ;;  %4836 = vmatprep.mubr.msk.f32.mxu0 %vm1476_vm12, %v3220_v6  ;;  %v5415_v7 = vunpack.i.l.bf16 %v7520_v28  ;;  %v2458_v6 = vld [vmem:[#allocation2 + $0x168] sm:$0xff]  ;;  %v5416_v58 = vunpack.i.h.bf16 %v7520_v28 }
 0x290   : > { %4837 = vmatmul.mubr.msk.f32.gmra.mxu0 %vm1476_vm12, %v3221_v11  ;;  %v1611_v60 = vadd.f32 %v4600_v19, %v7538_v27  ;;  %v4612_v11 = vadd.f32 %v4611_v42, %v4610_v23 }
 0x291   : > { %v7533_v35 = vpop.f32.mrf.mxu0  ;;  %v5404_v2 = vpop.permute.xlu1 %5403  ;;  %v3116_v19 = vsel %vm336_vm0, %v2458_v6, %v5415_v7  ;;  %v2459_v6 = vld [vmem:[#allocation2 + $0x170] sm:$0xff] }
 0x292   : > { %v7540_v5 = vpop.permute.xlu0 %5423  ;;  %v5406_v12 = vunpack.i.h.bf16 %v5404_v2  ;;  %v5405_v34 = vunpack.i.l.bf16 %v5404_v2 }
 0x293   : > { %v7542_v24 = vpop.f32.mrf.mxu0  ;;  %v5425_v8 = vunpack.i.l.bf16 %v7540_v5  ;;  %v5426_v28 = vunpack.i.h.bf16 %v7540_v5 }
 0x294   : > { %v4787_v49 = vpop.f32.mrf.mxu1  ;;  %v3164_v2 = vsel %vm1344_vm5, %v5400_v37, %v5405_v34  ;;  %v3165_v23 = vsel %vm1344_vm5, %v5401_v52, %v5406_v12  ;;  %v4609_v12 = vadd.f32 %v7514_v50, %v7510_v51  ;;  %v1631_v50 = vadd.f32 %v4612_v11, %v7538_v27 }
 0x295   : > { %v7547_v56 = vadd.f32 %v4787_v49, %v1601_v54  ;;  %v4616_v3 = vpop.f32.mrf.mxu0  ;;  %v5409_v47 = vpop.permute.xlu1 %5408 }
 0x296   : > { %v1740_v39 = vpop.f32.mrf.mxu1  ;;  %v3071_v13 = vpop.permute.xlu0 %3070  ;;  %v5410_v48 = vunpack.i.l.bf16 %v5409_v47  ;;  %v5411_v41 = vunpack.i.h.bf16 %v5409_v47 }
 0x297   : > { %5427 = vtanh.f32 %v7547_v56  ;;  %v7554_v55 = vadd.f32 %v1740_v39, %v1596_v31  ;;  %v3222_v14 = vsel %vm1412_vm11, %v7423_v45, %v3071_v13  ;;  %v4617_v9 = vpop.f32.mrf.mxu0  ;;  %v3132_v39 = vsel %vm1310_vm9, %v3116_v19, %v5425_v8 }
 0x298   : > { %v4790_v61 = vpop.f32.mrf.mxu1  ;;  %4839 = vmatprep.mubr.msk.f32.mxu0 %vm1476_vm12, %v3222_v14  ;;  %v3180_v7 = vsel %vm1361_vm6, %v3164_v2, %v5410_v48  ;;  %v3181_v13 = vsel %vm1361_vm6, %v3165_v23, %v5411_v41  ;;  %v3117_v41 = vsel %vm336_vm0, %v2459_v6, %v5416_v58  ;;  %v4618_v19 = vadd.f32 %v4617_v9, %v4616_v3 }
 0x299   : > { %v7563_v32 = vadd.f32 %v4790_v61, %v1611_v60  ;;  %v7565_v10 = vpop.f32.mrf.mxu0  ;;  %v5419_v45 = vpop.permute.xlu1 %5418  ;;  %5429 = vtanh.f32 %v7554_v55  ;;  %v1616_v61 = vadd.f32 %v4603_v1, %v7538_v27  ;;  %v3148_v1 = vsel %vm1327_vm10, %v3132_v39, %v5400_v37 }
 0x29a   : > { %v5421_v54 = vunpack.i.h.bf16 %v5419_v45  ;;  %v5420_v49 = vunpack.i.l.bf16 %v5419_v45  ;;  %v1750_v31 = vpop.f32.mrf.mxu1  ;;  %v7570_v47 = vpop.permute.xlu0 %3020  ;;  %v1626_v58 = vadd.f32 %v4609_v12, %v7538_v27  ;;  %v4615_v12 = vadd.f32 %v7542_v24, %v7533_v35 }
 0x29b   : > { %v7576_v42 = vadd.f32 %v1750_v31, %v1606_v20  ;;  %v7578_v30 = vpop.f32.mrf.mxu0  ;;  %5431 = vtanh.f32 %v7563_v32  ;;  %v3133_v31 = vsel %vm1310_vm9, %v3117_v41, %v5426_v28  ;;  %v1641_v28 = vadd.f32 %v4618_v19, %v7538_v27 }
 0x29c   : > { %v4793_v60 = vpop.f32.mrf.mxu1  ;;  %v3196_v34 = vsel %vm1378_vm7, %v3180_v7, %v5420_v49  ;;  %v3197_v48 = vsel %vm1378_vm7, %v3181_v13, %v5421_v54  ;;  %v3149_v39 = vsel %vm1327_vm10, %v3133_v31, %v5401_v52  ;;  %v1636_v41 = vadd.f32 %v4615_v12, %v7538_v27 }
 0x29d   : > { %v7587_v14 = vadd.f32 %v4793_v60, %v1621_v53  ;;  %v4622_v5 = vpop.f32.mrf.mxu0  ;;  %v3019_v20 = vpop.permute.xlu1 %3018  ;;  %5433 = vtanh.f32 %v7576_v42  ;;  %v3213_v54 = vsel %vm1395_vm8, %v3197_v48, %v7570_v47 }
 0x29e   : > { %v1760_v45 = vpop.f32.mrf.mxu1  ;;  %v3077_v2 = vpop.permute.xlu0 %3076  ;;  %v3212_v8 = vsel %vm1395_vm8, %v3196_v34, %v3019_v20 }
 0x29f   : > { %v7594_v49 = vadd.f32 %v1760_v45, %v1616_v61  ;;  %v4623_v51 = vpop.f32.mrf.mxu0  ;;  %3456 = vmatprep.mubr.f32.mxu1 %v3212_v8  ;;  %5435 = vtanh.f32 %v7587_v14 }
 0x2a0   : > { %v4796_v53 = vpop.f32.mrf.mxu1  ;;  %3457 = vmatmul.mubr.f32.gmra.mxu1 %v3148_v1  ;;  %v4624_v8 = vadd.f32 %v4623_v51, %v4622_v5 }
 0x2a1   : > { %v7602_v23 = vadd.f32 %v4796_v53, %v1631_v50  ;;  %v7604_v3 = vpop.f32.mrf.mxu0  ;;  %v3073_v9 = vpop.permute.xlu1 %3072  ;;  %3461 = vmatprep.mubr.f32.mxu1 %v3213_v54  ;;  %5437 = vtanh.f32 %v7594_v49 }
 0x2a2   : > { %v3223_v37 = vsel %vm1412_vm11, %v7408_v43, %v3073_v9  ;;  %v1770_v11 = vpop.f32.mrf.mxu1  ;;  %v3083_v7 = vpop.permute.xlu0 %3082  ;;  %v1651_v54 = vadd.f32 %v4624_v8, %v7538_v27 }
 0x2a3   : > { %v7610_v60 = vadd.f32 %v1770_v11, %v1626_v58  ;;  %v4626_v34 = vpop.f32.mrf.mxu0  ;;  %4840 = vmatmul.mubr.msk.f32.gmra.mxu0 %vm1476_vm12, %v3223_v37  ;;  %5439 = vtanh.f32 %v7602_v23  ;;  %v3228_v43 = vsel %vm1412_vm11, %v3019_v20, %v3083_v7  ;;  %v3225_v20 = vsel %vm1412_vm11, %v7437_v16, %v3077_v2 }
 0x2a4   : > { %v5428_v13 = vpop.eup %5427  ;;  %v4799_v61 = vpop.f32.mrf.mxu1  ;;  %3462 = vmatmul.mubr.f32.gmra.mxu1 %v3149_v39 }
 0x2a5   : > { %v7621_v48 = vadd.f32 %v4799_v61, %v1641_v28  ;;  %v4628_v6 = vpop.f32.mrf.mxu0  ;;  %2045 = vrot.lane.b32.xlu1 %v5428_v13, %s5850_s15  ;;  %v3075_v45 = vpop.permute.xlu1 %3074  ;;  %4848 = vmatprep.mubr.msk.f32.mxu1 %vm1476_vm12, %v3228_v43  ;;  %5441 = vtanh.f32 %v7610_v60 }
 0x2a6   : > { %v3224_v63 = vsel %vm1412_vm11, %v7446_v38, %v3075_v45  ;;  %v1780_v35 = vpop.f32.mrf.mxu1  ;;  %v3085_v24 = vpop.permute.xlu0 %3084 }
 0x2a7   : > { %v5430_v52 = vpop.eup %5429  ;;  %4842 = vmatprep.mubr.msk.f32.mxu0 %vm1476_vm12, %v3224_v63  ;;  %5443 = vtanh.f32 %v7621_v48  ;;  %v3229_v19 = vsel %vm1412_vm11, %v7570_v47, %v3085_v24  ;;  %v7638_v16 = vadd.f32 %v1780_v35, %v1636_v41  ;;  %v4629_v2 = vpop.f32.mrf.mxu0  ;;  %v4621_v47 = vadd.f32 %v7578_v30, %v7565_v10 }
 0x2a8   : > { %2043 = vrot.lane.b32.xlu0 %v5430_v52, %s5850_s15  ;;  %v4802_v50 = vpop.f32.mrf.mxu1  ;;  %4843 = vmatmul.mubr.msk.f32.gmra.mxu0 %vm1476_vm12, %v3225_v20  ;;  %v5432_v38 = vpop.eup %5431  ;;  %v4630_v9 = vadd.f32 %v4629_v2, %v4628_v6 }
 0x2a9   : > { %4849 = vmatmul.mubr.msk.f32.vlgmr.msra.gmra.mxu1 %vm1476_vm12, %v3229_v19  ;;  %v3079_v1 = vpop.permute.xlu1 %3078  ;;  %2049 = vrot.lane.b32.xlu1 %v5432_v38, %s5850_s15  ;;  %5445 = vtanh.f32 %v7638_v16  ;;  %v7649_v37 = vadd.f32 %v4802_v50, %v1651_v54  ;;  %v1646_v10 = vadd.f32 %v4621_v47, %v7538_v27  ;;  %v4631_v28 = vpop.f32.mrf.mxu0 }
 0x2aa   : > { %v3226_v5 = vsel %vm1412_vm11, %v7498_v22, %v3079_v1  ;;  %v5434_v51 = vpop.eup %5433  ;;  %v1790_v53 = vpop.f32.mrf.mxu1  ;;  %v1661_v39 = vadd.f32 %v4630_v9, %v7538_v27 }
 0x2ab   : > { %4845 = vmatprep.mubr.msk.f32.mxu0 %vm1476_vm12, %v3226_v5  ;;  %5447 = vtanh.f32 %v7649_v37  ;;  %v7659_v13 = vadd.f32 %v1790_v53, %v1646_v10  ;;  %v4632_v6 = vpop.f32.mrf.mxu0 }
 0x2ac   : > { %2047 = vrot.lane.b32.xlu0 %v5434_v51, %s5850_s15  ;;  %v5436_v31 = vpop.eup %5435  ;;  %v4805_v7 = vpop.f32.mrf.mxu1  ;;  %v4633_v24 = vadd.f32 %v4632_v6, %v4631_v28 }
 0x2ad   : > { %v3081_v58 = vpop.permute.xlu1 %3080  ;;  %2053 = vrot.lane.b32.xlu1 %v5436_v31, %s5850_s15  ;;  %v7664_v45 = vadd.f32 %v4805_v7, %v1661_v39  ;;  %5449 = vtanh.f32 %v7659_v13  ;;  %v4634_v10 = vpop.f32.mrf.mxu0 }
 0x2ae   : > { %v3227_v22 = vsel %vm1412_vm11, %v7490_v17, %v3081_v58  ;;  %v5438_v11 = vpop.eup %5437  ;;  %v4627_v17 = vadd.f32 %v4626_v34, %v7604_v3  ;;  %v1800_v43 = vpop.f32.mrf.mxu1  ;;  %v1666_v20 = vadd.f32 %v4633_v24, %v7538_v27 }
 0x2af   : > { %4846 = vmatmul.mubr.msk.f32.gmra.mxu0 %vm1476_vm12, %v3227_v22  ;;  %5451 = vtanh.f32 %v7664_v45  ;;  %v4635_v28 = vpop.f32.mrf.mxu0 }
 0x2b0   : > { %2051 = vrot.lane.b32.xlu0 %v5438_v11, %s5850_s15  ;;  %v5440_v30 = vpop.eup %5439  ;;  %v1656_v63 = vadd.f32 %v4627_v17, %v7538_v27  ;;  %v4808_v35 = vpop.f32.mrf.mxu1 }
 0x2b1   : > { %2057 = vrot.lane.b32.xlu1 %v5440_v30, %s5850_s15 }
 0x2b2   : > { %v5442_v12 = vpop.eup %5441  ;;  %v7670_v52 = vadd.f32 %v1800_v43, %v1656_v63  ;;  %v1810_v34 = vpop.f32.mrf.mxu1 }
 0x2b3   : > { %v7675_v8 = vadd.f32 %v1810_v34, %v1666_v20 }
 0x2b4   : > { %2055 = vrot.lane.b32.xlu0 %v5442_v12, %s5850_s15  ;;  %v5444_v61 = vpop.eup %5443  ;;  %5453 = vtanh.f32 %v7670_v52  ;;  %v4636_v12 = vadd.f32 %v4635_v28, %v4634_v10 }
 0x2b5   : > { %2061 = vrot.lane.b32.xlu1 %v5444_v61, %s5850_s15  ;;  %5455 = vtanh.f32 %v7675_v8 }
 0x2b6   : > { %v5446_v3 = vpop.eup %5445  ;;  %v1671_v6 = vadd.f32 %v4636_v12, %v7538_v27 }
 0x2b8   : > { %2059 = vrot.lane.b32.xlu0 %v5446_v3, %s5850_s15  ;;  %v5448_v41 = vpop.eup %5447 }
 0x2b9   : > { %2065 = vrot.lane.b32.xlu1 %v5448_v41, %s5850_s15 }
 0x2ba   : > { %v5450_v19 = vpop.eup %5449 }
 0x2bc   : > { %2063 = vrot.lane.b32.xlu0 %v5450_v19, %s5850_s15  ;;  %v5452_v50 = vpop.eup %5451 }
 0x2bd   : > { %2069 = vrot.lane.b32.xlu1 %v5452_v50, %s5850_s15 }
 0x2c1   : > { %v5454_v38 = vpop.eup %5453 }
 0x2c2   : > { %2067 = vrot.lane.b32.xlu0 %v5454_v38, %s5850_s15  ;;  %v5456_v1 = vpop.eup %5455  ;;  %v7688_v38 = vadd.f32 %v4808_v35, %v1671_v6 }
 0x2c6   : > { %2071 = vrot.lane.b32.xlu0 %v5456_v1, %s5850_s15 }
 0x2e1   : > { %v4694_v2 = vpop.f32.mrf.mxu1 }
 0x2e3   : > { %v4695_v5 = vpop.f32.mrf.mxu1 }
 0x2e4   : > { %v4696_v43 = vadd.f32 %v4695_v5, %v4694_v2 }
 0x2e5   : > { %v4697_v51 = vpop.f32.mrf.mxu1 }
 0x2e6   : > { %v3389_v41 = vadd.f32 %v4696_v43, %v7538_v27 }
 0x2e7   : > { %v4698_v53 = vpop.f32.mrf.mxu1 }
 0x2e8   : > { %v4699_v17 = vadd.f32 %v4698_v53, %v4697_v51 }
 0x2ea   : > { %v3394_v63 = vadd.f32 %v4699_v17, %v7538_v27 }
 0x2f1   : > { %v4700_v47 = vpop.f32.mrf.mxu1 }
 0x2f3   : > { %v4701_v54 = vpop.f32.mrf.mxu1 }
 0x2f4   : > { %v4702_v19 = vadd.f32 %v4701_v54, %v4700_v47 }
 0x2f5   : > { %v4703_v31 = vpop.f32.mrf.mxu1 }
 0x2f7   : > { %v4704_v9 = vpop.f32.mrf.mxu1 }
 0x2f8   : > { %v4705_v24 = vadd.f32 %v4704_v9, %v4703_v31  ;;  %v3399_v31 = vadd.f32 %v4702_v19, %v7538_v27 }
 0x2fa   : > { %v3404_v5 = vadd.f32 %v4705_v24, %v7538_v27 }
 0x300   : > { %v4706_v58 = vpop.f32.mrf.mxu1 }
 0x302   : > { %v4707_v22 = vpop.f32.mrf.mxu1 }
 0x304   : > { %v4709_v11 = vpop.f32.mrf.mxu1 }
 0x306   : > { %v4710_v7 = vpop.f32.mrf.mxu1 }
 0x307   : > { %v4711_v43 = vadd.f32 %v4710_v7, %v4709_v11 }
 0x310   : > { %v4712_v30 = vpop.f32.mrf.mxu1 }
 0x312   : > { %v4713_v39 = vpop.f32.mrf.mxu1 }
 0x314   : > { %v4715_v61 = vpop.f32.mrf.mxu1 }
 0x316   : > { %v4716_v34 = vpop.f32.mrf.mxu1 }
 0x320   : > { %v7690_v1 = vpop.f32.mrf.mxu1 }
 0x322   : > { %v4719_v47 = vpop.f32.mrf.mxu1 }
 0x324   : > { %v4721_v9 = vpop.f32.mrf.mxu1 }
 0x326   : > { %v4722_v10 = vpop.f32.mrf.mxu1 }
 0x330   : > { %v7705_v12 = vpop.f32.mrf.mxu1 }
 0x332   : > { %v7709_v24 = vpop.f32.mrf.mxu1 }
 0x333   : > { %v4829_v3 = vpop.f32.mrf.mxu0 }
 0x334   : > { %v7685_v20 = vadd.f32 %v4829_v3, %v3394_v63  ;;  %v4708_v63 = vadd.f32 %v4707_v22, %v4706_v58  ;;  %v7712_v3 = vpop.permute.xlu1 %3757  ;;  %v4714_v22 = vadd.f32 %v4713_v39, %v4712_v30 }
 0x335   : > { %v3533_v50 = vpop.f32.mrf.mxu0  ;;  %8439 = vst [vmem:[#allocation19_spill] sm:$0xff] %v7712_v3 }
 0x336   : > { %5457 = vtanh.f32 %v7685_v20  ;;  %v7693_v2 = vadd.f32 %v3533_v50, %v3389_v41  ;;  %v7714_v41 = vpop.permute.xlu0 %3759  ;;  %v3414_v50 = vadd.f32 %v4711_v43, %v7538_v27  ;;  %v3409_v58 = vadd.f32 %v4708_v63, %v7538_v27 }
 0x337   : > { %v3419_v63 = vadd.f32 %v4714_v22, %v7538_v27 }
 0x338   : > { %v4832_v51 = vpop.f32.mrf.mxu0  ;;  %5459 = vtanh.f32 %v7693_v2 }
 0x339   : > { %v7697_v53 = vadd.f32 %v4832_v51, %v3404_v5  ;;  %5461 = vtanh.f32 %v7688_v38  ;;  %v4717_v51 = vadd.f32 %v4716_v34, %v4715_v61 }
 0x33a   : > { %v3543_v35 = vpop.f32.mrf.mxu0  ;;  %v7727_v43 = vpop.permute.xlu0 %3763 }
 0x33b   : > { %v7701_v54 = vadd.f32 %v3543_v35, %v3399_v31  ;;  %5463 = vtanh.f32 %v7697_v53  ;;  %v4727_v35 = vpop.f32.mrf.mxu1  ;;  %8441 = vst [vmem:[#allocation18_spill] sm:$0xff] %v7727_v43  ;;  %v3424_v61 = vadd.f32 %v4717_v51, %v7538_v27 }
 0x33d   : > { %5465 = vtanh.f32 %v7701_v54  ;;  %v4728_v34 = vpop.f32.mrf.mxu1 }
 0x33e   : > { %v4729_v25 = vadd.f32 %v4728_v34, %v4727_v35  ;;  %v4726_v35 = vadd.f32 %v7709_v24, %v7705_v12  ;;  %v4451_v12 = vmul.f32 -1.442695, %v7594_v49 }
 0x343   : > { %v5458_v28 = vpop.eup %5457 }
 0x344   : > { %3839 = vrot.lane.b32.xlu1 %v5458_v28, %s5850_s15 }
 0x345   : > { %v5460_v17 = vpop.eup %5459 }
 0x346   : > { %v5462_v6 = vpop.eup %5461  ;;  %3837 = vrot.lane.b32.xlu0 %v5460_v17, %s5850_s15  ;;  %v7725_v17 = vpop.permute.xlu1 %3761 }
 0x347   : > { %8440 = vst [vmem:[#allocation20_spill] sm:$0xff] %v7725_v17 }
 0x348   : > { %2073 = vrot.lane.b32.xlu1 %v5462_v6, %s5850_s15  ;;  %v5464_v19 = vpop.eup %5463  ;;  %v4730_v30 = vpop.f32.mrf.mxu1 }
 0x34a   : > { %v5466_v5 = vpop.eup %5465 }
 0x34b   : > { %v4835_v31 = vpop.f32.mrf.mxu0  ;;  %3841 = vrot.lane.b32.xlu0 %v5466_v5, %s5850_s15  ;;  %v7737_v5 = vpop.permute.xlu0 %3767 }
 0x34c   : > { %v7717_v11 = vadd.f32 %v4835_v31, %v3414_v50  ;;  %3843 = vrot.lane.b32.xlu1 %v5464_v19, %s5850_s15  ;;  %8442 = vst [vmem:[#allocation21_spill] sm:$0xff] %v7737_v5  ;;  %v7739_v31 = vpop.permute.xlu1 %3765 }
 0x34d   : > { %v3553_v7 = vpop.f32.mrf.mxu0  ;;  %8443 = vst [vmem:[#allocation15_spill] sm:$0xff] %v7739_v31  ;;  %v4720_v31 = vadd.f32 %v4719_v47, %v7690_v1 }
 0x34e   : > { %5467 = vtanh.f32 %v7717_v11  ;;  %v7723_v28 = vadd.f32 %v3553_v7, %v3409_v58  ;;  %v4731_v58 = vpop.f32.mrf.mxu1 }
 0x34f   : > { %v7742_v17 = vpop.permute.xlu0 %3771  ;;  %v3429_v1 = vadd.f32 %v4720_v31, %v7538_v27  ;;  %v4449_v31 = vmul.f32 -1.442695, %v7576_v42  ;;  %v4732_v24 = vadd.f32 %v4731_v58, %v4730_v30 }
 0x350   : > { %v4838_v6 = vpop.f32.mrf.mxu0  ;;  %5469 = vtanh.f32 %v7723_v28  ;;  %v4733_v51 = vpop.f32.mrf.mxu1  ;;  %8444 = vst [vmem:[#allocation17_spill] sm:$0xff] %v7742_v17 }
 0x351   : > { %v7731_v50 = vadd.f32 %v4838_v6, %v3424_v61  ;;  %v4448_v61 = vmul.f32 -1.442695, %v7547_v56  ;;  %v7745_v22 = vpop.permute.xlu1 %3769  ;;  %v3449_v30 = vadd.f32 %v4732_v24, %v7538_v27  ;;  %v4458_v24 = vmul.f32 -1.442695, %v7649_v37 }
 0x352   : > { %v3563_v39 = vpop.f32.mrf.mxu0  ;;  %8445 = vst [vmem:[#allocation22_spill] sm:$0xff] %v7745_v22 }
 0x353   : > { %5471 = vtanh.f32 %v7731_v50  ;;  %v7735_v19 = vadd.f32 %v3563_v39, %v3419_v63  ;;  %v4723_v63 = vadd.f32 %v4722_v10, %v4721_v9  ;;  %v4734_v39 = vpop.f32.mrf.mxu1  ;;  %v7750_v3 = vpop.permute.xlu0 %3775  ;;  %v4447_v10 = vmul.f32 -1.442695, %v7554_v55 }
 0x354   : > { %v3444_v55 = vadd.f32 %v4729_v25, %v7538_v27  ;;  %v3439_v25 = vadd.f32 %v4726_v35, %v7538_v27 }
 0x355   : > { %5473 = vtanh.f32 %v7735_v19  ;;  %v7753_v17 = vpop.permute.xlu1 %3773  ;;  %v3434_v22 = vadd.f32 %v4723_v63, %v7538_v27 }
 0x356   : > { %5475 = vpow2.f32 %v4448_v61  ;;  %8446 = vst [vmem:[#allocation23_spill] sm:$0xff] %v7753_v17  ;;  %v4450_v61 = vmul.f32 -1.442695, %v7563_v32 }
 0x357   : > { %v7765_v63 = vpop.permute.xlu0 %3779 }
 0x359   : > { %v7770_v34 = vpop.permute.xlu1 %3777 }
 0x35a   : > { %8447 = vst [vmem:[#allocation24_spill] sm:$0xff] %v7770_v34 }
 0x35b   : > { %v5468_v7 = vpop.eup %5467  ;;  %v7780_v42 = vpop.permute.xlu0 %3783 }
 0x35c   : > { %3847 = vrot.lane.b32.xlu1 %v5468_v7, %s5850_s15 }
 0x35d   : > { %v5470_v6 = vpop.eup %5469 }
 0x35e   : > { %3845 = vrot.lane.b32.xlu0 %v5470_v6, %s5850_s15 }
 0x360   : > { %v5472_v5 = vpop.eup %5471  ;;  %v4736_v43 = vpop.f32.mrf.mxu1 }
 0x361   : > { %3851 = vrot.lane.b32.xlu1 %v5472_v5, %s5850_s15 }
 0x362   : > { %v4737_v56 = vpop.f32.mrf.mxu1  ;;  %v5474_v7 = vpop.eup %5473 }
 0x363   : > { %v4841_v9 = vpop.f32.mrf.mxu0  ;;  %3849 = vrot.lane.b32.xlu0 %v5474_v7, %s5850_s15  ;;  %v4738_v58 = vadd.f32 %v4737_v56, %v4736_v43 }
 0x364   : > { %v7757_v6 = vadd.f32 %v4841_v9, %v3434_v22  ;;  %v4739_v5 = vpop.f32.mrf.mxu1 }
 0x365   : > { %v3573_v47 = vpop.f32.mrf.mxu0 }
 0x366   : > { %5477 = vtanh.f32 %v7757_v6  ;;  %v7763_v17 = vadd.f32 %v3573_v47, %v3429_v1  ;;  %v4740_v7 = vpop.f32.mrf.mxu1  ;;  %v4452_v1 = vmul.f32 -1.442695, %v7587_v14  ;;  %v4735_v47 = vadd.f32 %v4734_v39, %v4733_v51 }
 0x367   : > { %5479 = vpow2.f32 %v4447_v10  ;;  %v5476_v10 = vpop.eup %5475  ;;  %v4741_v34 = vadd.f32 %v4740_v7, %v4739_v5  ;;  %v4453_v14 = vmul.f32 -1.442695, %v7610_v60  ;;  %v4456_v7 = vmul.f32 -1.442695, %v7621_v48 }
 0x368   : > { %v4844_v22 = vpop.f32.mrf.mxu0  ;;  %5481 = vtanh.f32 %v7763_v17  ;;  %v3454_v51 = vadd.f32 %v4735_v47, %v7538_v27  ;;  %v1868_v35 = vadd.f32 1.0, %v5476_v10  ;;  %v4455_v47 = vmul.f32 -1.442695, %v7638_v16 }
 0x369   : > { %v7774_v32 = vadd.f32 %v4844_v22, %v3444_v55  ;;  %5483 = vpow2.f32 %v4450_v61  ;;  %v4454_v61 = vmul.f32 -1.442695, %v7602_v23  ;;  %v7785_v22 = vpop.permute.xlu1 %3781  ;;  %v4850_v49 = vpop.f32.mrf.mxu1  ;;  %v3464_v5 = vadd.f32 %v4741_v34, %v7538_v27 }
 0x36a   : > { %v3583_v9 = vpop.f32.mrf.mxu0 }
 0x36b   : > { %5485 = vtanh.f32 %v7774_v32  ;;  %v7782_v55 = vadd.f32 %v3583_v9, %v3439_v25  ;;  %v7795_v9 = vpop.permute.xlu0 %3787  ;;  %v3603_v56 = vpop.f32.mrf.mxu1  ;;  %v7803_v25 = vadd.f32 %v4850_v49, %v3464_v5  ;;  %v4460_v49 = vmul.f32 -1.442695, %v7664_v45 }
 0x36c   : > { %5487 = vpow2.f32 %v4449_v31 }
 0x36d   : > { %5489 = vpow2.f32 %v4452_v1  ;;  %v7800_v43 = vpop.permute.xlu1 %3785 }
 0x36e   : > { %5491 = vpow2.f32 %v4451_v12  ;;  %v3459_v12 = vadd.f32 %v4738_v58, %v7538_v27  ;;  %v4459_v58 = vmul.f32 -1.442695, %v7670_v52  ;;  %v4461_v52 = vmul.f32 -1.442695, %v7675_v8 }
 0x36f   : > { %v4847_v39 = vpop.f32.mrf.mxu0  ;;  %5493 = vtanh.f32 %v7782_v55 }
 0x370   : > { %v7792_v31 = vadd.f32 %v4847_v39, %v3454_v51  ;;  %5495 = vpow2.f32 %v4454_v61  ;;  %v7808_v61 = vadd.f32 %v3603_v56, %v3459_v12  ;;  %v4457_v51 = vmul.f32 -1.442695, %v7659_v13 }
 0x371   : > { %v3593_v23 = vpop.f32.mrf.mxu0  ;;  %5497 = vpow2.f32 %v4453_v14  ;;  %v2046_v37 = vpop.permute.xlu1 %2045 }
 0x372   : > { %v7797_v1 = vadd.f32 %v3593_v23, %v3449_v30  ;;  %5499 = vrcp.f32 %v1868_v35  ;;  %v2044_v35 = vpop.permute.xlu0 %2043 }
 0x373   : > { %v5478_v60 = vpop.eup %5477  ;;  %5501 = vtanh.f32 %v7792_v31 }
 0x374   : > { %3855 = vrot.lane.b32.xlu1 %v5478_v60, %s5850_s15  ;;  %v5480_v34 = vpop.eup %5479  ;;  %5503 = vpow2.f32 %v4456_v7 }
 0x375   : > { %v5482_v48 = vpop.eup %5481  ;;  %5505 = vtanh.f32 %v7797_v1  ;;  %v1867_v14 = vadd.f32 1.0, %v5480_v34  ;;  %v2050_v45 = vpop.permute.xlu1 %2049 }
 0x376   : > { %v5484_v10 = vpop.eup %5483  ;;  %3853 = vrot.lane.b32.xlu0 %v5482_v48, %s5850_s15  ;;  %5507 = vpow2.f32 %v4455_v47  ;;  %v2048_v34 = vpop.permute.xlu0 %2047 }
 0x377   : > { %5509 = vtanh.f32 %v7803_v25  ;;  %v1870_v39 = vadd.f32 1.0, %v5484_v10 }
 0x378   : > { %v5486_v16 = vpop.eup %5485  ;;  %5511 = vpow2.f32 %v4458_v24 }
 0x379   : > { %3859 = vrot.lane.b32.xlu1 %v5486_v16, %s5850_s15  ;;  %v5488_v27 = vpop.eup %5487  ;;  %5513 = vtanh.f32 %v7808_v61 }
 0x37a   : > { %v5490_v30 = vpop.eup %5489  ;;  %5515 = vrcp.f32 %v1867_v14  ;;  %v1869_v23 = vadd.f32 1.0, %v5488_v27 }
 0x37b   : > { %v5492_v5 = vpop.eup %5491  ;;  %5517 = vpow2.f32 %v4457_v51  ;;  %v1872_v60 = vadd.f32 1.0, %v5490_v30 }
 0x37c   : > { %v5494_v13 = vpop.eup %5493  ;;  %5519 = vrcp.f32 %v1870_v39  ;;  %v1871_v56 = vadd.f32 1.0, %v5492_v5  ;;  %v2054_v39 = vpop.permute.xlu1 %2053 }
 0x37d   : > { %v5496_v7 = vpop.eup %5495  ;;  %5521 = vpow2.f32 %v4460_v49  ;;  %3857 = vrot.lane.b32.xlu0 %v5494_v13, %s5850_s15  ;;  %v2052_v49 = vpop.permute.xlu0 %2051 }
 0x37e   : > { %v5498_v47 = vpop.eup %5497  ;;  %5523 = vpow2.f32 %v4459_v58  ;;  %v1874_v10 = vadd.f32 1.0, %v5496_v7 }
 0x37f   : > { %v7819_v12 = vpop.eup %5499  ;;  %5525 = vrcp.f32 %v1869_v23  ;;  %v1873_v51 = vadd.f32 1.0, %v5498_v47 }
 0x380   : > { %v5502_v48 = vpop.eup %5501  ;;  %5527 = vrcp.f32 %v1872_v60  ;;  %v2092_v13 = vmul.f32 %v7819_v12, %v2046_v37 }
 0x381   : > { %v5504_v24 = vpop.eup %5503  ;;  %3863 = vrot.lane.b32.xlu1 %v5502_v48, %s5850_s15  ;;  %5529 = vrcp.f32 %v1871_v56  ;;  %v2058_v48 = vpop.permute.xlu1 %2057 }
 0x382   : > { %v5506_v16 = vpop.eup %5505  ;;  %5531 = vpow2.f32 %v4461_v52  ;;  %v1876_v58 = vadd.f32 1.0, %v5504_v24  ;;  %v2056_v24 = vpop.permute.xlu0 %2055 }
 0x383   : > { %v5508_v14 = vpop.eup %5507  ;;  %3861 = vrot.lane.b32.xlu0 %v5506_v16, %s5850_s15  ;;  %5533 = vrcp.f32 %v1874_v10 }
 0x384   : > { %v5510_v27 = vpop.eup %5509  ;;  %5535 = vrcp.f32 %v1873_v51  ;;  %v1875_v23 = vadd.f32 1.0, %v5508_v14 }
 0x385   : > { %v5512_v30 = vpop.eup %5511  ;;  %3867 = vrot.lane.b32.xlu1 %v5510_v27, %s5850_s15  ;;  %5537 = vrcp.f32 %v1876_v58 }
 0x386   : > { %v5514_v8 = vpop.eup %5513  ;;  %v1878_v47 = vadd.f32 1.0, %v5512_v30  ;;  %5539 = vrcp.f32 %v1875_v23 }
 0x387   : > { %v7825_v5 = vpop.eup %5515  ;;  %3865 = vrot.lane.b32.xlu0 %v5514_v8, %s5850_s15 }
 0x388   : > { %v5518_v7 = vpop.eup %5517  ;;  %v2091_v56 = vmul.f32 %v7825_v5, %v2044_v35  ;;  %5541 = vrcp.f32 %v1878_v47 }
 0x389   : > { %v7829_v60 = vpop.eup %5519  ;;  %2125 = vrot.lane.b32.xlu1 %v2092_v13, %s5850_s15  ;;  %v1877_v16 = vadd.f32 1.0, %v5518_v7  ;;  %v2062_v13 = vpop.permute.xlu1 %2061 }
 0x38a   : > { %v5522_v52 = vpop.eup %5521  ;;  %v2094_v14 = vmul.f32 %v7829_v60, %v2050_v45  ;;  %v4481_v45 = vmul.f32 -1.442695, %v7685_v20  ;;  %v2060_v7 = vpop.permute.xlu0 %2059 }
 0x38b   : > { %v5524_v10 = vpop.eup %5523  ;;  %2123 = vrot.lane.b32.xlu0 %v2091_v56, %s5850_s15  ;;  %v1880_v51 = vadd.f32 1.0, %v5522_v52  ;;  %5543 = vrcp.f32 %v1877_v16  ;;  %v4462_v56 = vmul.f32 -1.442695, %v7688_v38  ;;  %v4480_v16 = vmul.f32 -1.442695, %v7693_v2 }
 0x38c   : > { %v7835_v37 = vpop.eup %5525  ;;  %v1879_v30 = vadd.f32 1.0, %v5524_v10 }
 0x38d   : > { %v2093_v27 = vmul.f32 %v7835_v37, %v2048_v34  ;;  %2129 = vrot.lane.b32.xlu1 %v2094_v14, %s5850_s15  ;;  %v7839_v35 = vpop.eup %5527  ;;  %5545 = vrcp.f32 %v1880_v51  ;;  %v2066_v14 = vpop.permute.xlu1 %2065 }
 0x38e   : > { %v7841_v58 = vpop.eup %5529  ;;  %v2096_v8 = vmul.f32 %v7839_v35, %v2054_v39  ;;  %5547 = vrcp.f32 %v1879_v30  ;;  %v2064_v51 = vpop.permute.xlu0 %2063  ;;  %v4482_v30 = vmul.f32 -1.442695, %v7701_v54 }
 0x38f   : > { %2127 = vrot.lane.b32.xlu0 %v2093_v27, %s5850_s15  ;;  %v5532_v23 = vpop.eup %5531  ;;  %v2095_v34 = vmul.f32 %v7841_v58, %v2052_v49  ;;  %5549 = vpow2.f32 %v4481_v45 }
 0x390   : > { %v7848_v47 = vpop.eup %5533  ;;  %v1881_v52 = vadd.f32 1.0, %v5532_v23  ;;  %5551 = vpow2.f32 %v4462_v56 }
 0x391   : > { %2133 = vrot.lane.b32.xlu1 %v2096_v8, %s5850_s15  ;;  %v2098_v39 = vmul.f32 %v7848_v47, %v2058_v48  ;;  %v7853_v20 = vpop.eup %5535  ;;  %v4483_v48 = vmul.f32 -1.442695, %v7697_v53  ;;  %v2070_v53 = vpop.permute.xlu1 %2069 }
 0x392   : > { %v2097_v10 = vmul.f32 %v7853_v20, %v2056_v24  ;;  %v7858_v49 = vpop.eup %5537  ;;  %5553 = vrcp.f32 %v1881_v52  ;;  %v2068_v23 = vpop.permute.xlu0 %2067 }
 0x393   : > { %2131 = vrot.lane.b32.xlu0 %v2095_v34, %s5850_s15  ;;  %v2100_v38 = vmul.f32 %v7858_v49, %v2062_v13  ;;  %v7863_v27 = vpop.eup %5539  ;;  %5555 = vpow2.f32 %v4480_v16 }
 0x394   : > { %v2099_v24 = vmul.f32 %v7863_v27, %v2060_v7  ;;  %5557 = vpow2.f32 %v4483_v48 }
 0x395   : > { %2137 = vrot.lane.b32.xlu1 %v2098_v39, %s5850_s15  ;;  %v7867_v2 = vpop.eup %5541  ;;  %5559 = vpow2.f32 %v4482_v30 }
 0x396   : > { %v2102_v8 = vmul.f32 %v7867_v2, %v2066_v14  ;;  %v2072_v39 = vpop.permute.xlu0 %2071 }
 0x397   : > { %2135 = vrot.lane.b32.xlu0 %v2097_v10, %s5850_s15 }
 0x398   : > { %v7872_v45 = vpop.eup %5543 }
 0x399   : > { %2141 = vrot.lane.b32.xlu1 %v2100_v38, %s5850_s15  ;;  %v2101_v13 = vmul.f32 %v7872_v45, %v2064_v51 }
 0x39a   : > { %v7876_v7 = vpop.eup %5545 }
 0x39b   : > { %2139 = vrot.lane.b32.xlu0 %v2099_v24, %s5850_s15  ;;  %v7878_v34 = vpop.eup %5547  ;;  %v2104_v54 = vmul.f32 %v7876_v7, %v2070_v53  ;;  %v4485_v24 = vmul.f32 -1.442695, %v7717_v11  ;;  %v4484_v53 = vmul.f32 -1.442695, %v7723_v28 }
 0x39c   : > { %v5550_v56 = vpop.eup %5549  ;;  %v2103_v52 = vmul.f32 %v7878_v34, %v2068_v23 }
 0x39d   : > { %2145 = vrot.lane.b32.xlu1 %v2102_v8, %s5850_s15  ;;  %v5552_v10 = vpop.eup %5551  ;;  %v3661_v16 = vadd.f32 1.0, %v5550_v56 }
 0x39e   : > { %v1882_v48 = vadd.f32 1.0, %v5552_v10 }
 0x39f   : > { %2143 = vrot.lane.b32.xlu0 %v2101_v13, %s5850_s15  ;;  %v7885_v14 = vpop.eup %5553  ;;  %5561 = vrcp.f32 %v3661_v16 }
 0x3a0   : > { %v2105_v51 = vmul.f32 %v7885_v14, %v2072_v39  ;;  %v5556_v38 = vpop.eup %5555  ;;  %5563 = vrcp.f32 %v1882_v48 }
 0x3a1   : > { %2149 = vrot.lane.b32.xlu1 %v2104_v54, %s5850_s15  ;;  %v5558_v30 = vpop.eup %5557  ;;  %v3660_v8 = vadd.f32 1.0, %v5556_v38  ;;  %5565 = vpow2.f32 %v4485_v24  ;;  %v4487_v54 = vmul.f32 -1.442695, %v7731_v50 }
 0x3a2   : > { %v5560_v23 = vpop.eup %5559  ;;  %v3663_v13 = vadd.f32 1.0, %v5558_v30 }
 0x3a3   : > { %2147 = vrot.lane.b32.xlu0 %v2103_v52, %s5850_s15  ;;  %5567 = vrcp.f32 %v3660_v8  ;;  %v3662_v56 = vadd.f32 1.0, %v5560_v23  ;;  %v4486_v52 = vmul.f32 -1.442695, %v7735_v19 }
 0x3a4   : > { %5569 = vpow2.f32 %v4484_v53 }
 0x3a5   : > { %5571 = vrcp.f32 %v3663_v13 }
 0x3a6   : > { %5573 = vpow2.f32 %v4487_v54 }
 0x3a7   : > { %2151 = vrot.lane.b32.xlu0 %v2105_v51, %s5850_s15  ;;  %5575 = vrcp.f32 %v3662_v56 }
 0x3a8   : > { %5577 = vpow2.f32 %v4486_v52 }
 0x3ac   : > { %v7893_v11 = vpop.eup %5561 }
 0x3ad   : > { %v7896_v28 = vpop.eup %5563 }
 0x3ae   : > { %v5566_v16 = vpop.eup %5565 }
 0x3af   : > { %v3665_v24 = vadd.f32 1.0, %v5566_v16 }
 0x3b0   : > { %v7900_v48 = vpop.eup %5567 }
 0x3b1   : > { %v5570_v19 = vpop.eup %5569  ;;  %5579 = vrcp.f32 %v3665_v24 }
 0x3b2   : > { %v7903_v30 = vpop.eup %5571  ;;  %v3664_v54 = vadd.f32 1.0, %v5570_v19  ;;  %v4491_v19 = vmul.f32 -1.442695, %v7774_v32  ;;  %v4492_v32 = vmul.f32 -1.442695, %v7797_v1 }
 0x3b3   : > { %v5574_v53 = vpop.eup %5573 }
 0x3b4   : > { %v7907_v52 = vpop.eup %5575  ;;  %v3667_v16 = vadd.f32 1.0, %v5574_v53  ;;  %5581 = vrcp.f32 %v3664_v54 }
 0x3b6   : > { %v3840_v39 = vpop.permute.xlu1 %3839 }
 0x3b7   : > { %v3886_v10 = vmul.f32 %v7893_v11, %v3840_v39  ;;  %v4489_v39 = vmul.f32 -1.442695, %v7757_v6  ;;  %v4490_v6 = vmul.f32 -1.442695, %v7782_v55 }
 0x3b8   : > { %v3838_v50 = vpop.permute.xlu0 %3837 }
 0x3b9   : > { %3919 = vrot.lane.b32.xlu0 %v3886_v10, %s5850_s15  ;;  %v3885_v23 = vmul.f32 %v7900_v48, %v3838_v50  ;;  %v5578_v10 = vpop.eup %5577  ;;  %v4488_v50 = vmul.f32 -1.442695, %v7763_v17  ;;  %5583 = vpow2.f32 %v4489_v39  ;;  %v4493_v17 = vmul.f32 -1.442695, %v7792_v31 }
 0x3ba   : > { %v2074_v51 = vpop.permute.xlu1 %2073  ;;  %5585 = vrcp.f32 %v3667_v16 }
 0x3bb   : > { %v2106_v38 = vmul.f32 %v7896_v28, %v2074_v51  ;;  %5587 = vpow2.f32 %v4488_v50 }
 0x3bd   : > { %2153 = vrot.lane.b32.xlu1 %v2106_v38, %s5850_s15  ;;  %v3842_v56 = vpop.permute.xlu0 %3841  ;;  %v3666_v38 = vadd.f32 1.0, %v5578_v10  ;;  %v4495_v10 = vmul.f32 -1.442695, %v7803_v25 }
 0x3be   : > { %v3844_v8 = vpop.permute.xlu1 %3843  ;;  %v3887_v51 = vmul.f32 %v7907_v52, %v3842_v56  ;;  %v7917_v24 = vpop.eup %5579 }
 0x3bf   : > { %v3888_v13 = vmul.f32 %v7903_v30, %v3844_v8  ;;  %5589 = vrcp.f32 %v3666_v38  ;;  %v4494_v38 = vmul.f32 -1.442695, %v7808_v61 }
 0x3c0   : > { %5591 = vpow2.f32 %v4491_v19 }
 0x3c1   : > { %3917 = vrot.lane.b32.xlu1 %v3885_v23, %s5850_s15  ;;  %3923 = vrot.lane.b32.xlu0 %v3888_v13, %s5850_s15  ;;  %5593 = vpow2.f32 %v4490_v6  ;;  %v7921_v23 = vpop.eup %5581 }
 0x3c2   : > { %5595 = vpow2.f32 %v4493_v17 }
 0x3c3   : > { %5597 = vpow2.f32 %v4492_v32 }
 0x3c4   : > { %5599 = vpow2.f32 %v4495_v10 }
 0x3c5   : > { %3921 = vrot.lane.b32.xlu1 %v3887_v51, %s5850_s15 }
 0x3c6   : > { %v5584_v54 = vpop.eup %5583 }
 0x3c7   : > { %v7926_v39 = vpop.eup %5585  ;;  %v3669_v51 = vadd.f32 1.0, %v5584_v54 }
 0x3c8   : > { %v5588_v31 = vpop.eup %5587 }
 0x3c9   : > { %5601 = vrcp.f32 %v3669_v51 }
 0x3ca   : > { %5603 = vpow2.f32 %v4494_v38 }
 0x3cc   : > { %v7931_v50 = vpop.eup %5589 }
 0x3cd   : > { %v5592_v19 = vpop.eup %5591 }
 0x3ce   : > { %v3848_v8 = vpop.permute.xlu1 %3847  ;;  %v3671_v25 = vadd.f32 1.0, %v5592_v19 }
 0x3cf   : > { %v3890_v53 = vmul.f32 %v7917_v24, %v3848_v8  ;;  %v3668_v8 = vadd.f32 1.0, %v5588_v31 }
 0x3d0   : > { %v3846_v13 = vpop.permute.xlu0 %3845 }
 0x3d1   : > { %3927 = vrot.lane.b32.xlu0 %v3890_v53, %s5850_s15  ;;  %v3889_v56 = vmul.f32 %v7921_v23, %v3846_v13  ;;  %5605 = vrcp.f32 %v3668_v8  ;;  %v5594_v53 = vpop.eup %5593 }
 0x3d2   : > { %5607 = vrcp.f32 %v3671_v25  ;;  %v3670_v17 = vadd.f32 1.0, %v5594_v53  ;;  %v5596_v13 = vpop.eup %5595 }
 0x3d3   : > { %v3852_v55 = vpop.permute.xlu1 %3851  ;;  %3925 = vrot.lane.b32.xlu1 %v3889_v56, %s5850_s15  ;;  %v5598_v61 = vpop.eup %5597  ;;  %v3673_v54 = vadd.f32 1.0, %v5596_v13 }
 0x3d4   : > { %v3892_v16 = vmul.f32 %v7926_v39, %v3852_v55  ;;  %5609 = vrcp.f32 %v3670_v17  ;;  %v5600_v32 = vpop.eup %5599  ;;  %v3672_v55 = vadd.f32 1.0, %v5598_v61 }
 0x3d5   : > { %v3850_v1 = vpop.permute.xlu0 %3849  ;;  %v3675_v51 = vadd.f32 1.0, %v5600_v32  ;;  %5611 = vrcp.f32 %v3673_v54 }
 0x3d6   : > { %3931 = vrot.lane.b32.xlu0 %v3892_v16, %s5850_s15  ;;  %v3891_v6 = vmul.f32 %v7931_v50, %v3850_v1  ;;  %v7937_v56 = vpop.eup %5601  ;;  %5613 = vrcp.f32 %v3672_v55 }
 0x3d7   : > { %v5604_v31 = vpop.eup %5603  ;;  %5615 = vrcp.f32 %v3675_v51 }
 0x3d8   : > { %3929 = vrot.lane.b32.xlu1 %v3891_v6, %s5850_s15  ;;  %v3674_v19 = vadd.f32 1.0, %v5604_v31 }
 0x3da   : > { %5617 = vrcp.f32 %v3674_v19 }
 0x3de   : > { %v7940_v1 = vpop.eup %5605 }
 0x3df   : > { %v7944_v8 = vpop.eup %5607 }
 0x3e1   : > { %v7949_v17 = vpop.eup %5609 }
 0x3e2   : > { %v7953_v54 = vpop.eup %5611 }
 0x3e6   : > { %v3856_v16 = vpop.permute.xlu1 %3855 }
 0x3e7   : > { %v3894_v10 = vmul.f32 %v7937_v56, %v3856_v16  ;;  %v7956_v16 = vpop.eup %5613 }
 0x3e8   : > { %v3854_v38 = vpop.permute.xlu0 %3853  ;;  %v7960_v51 = vpop.eup %5615 }
 0x3e9   : > { %3935 = vrot.lane.b32.xlu0 %v3894_v10, %s5850_s15  ;;  %v3893_v6 = vmul.f32 %v7940_v1, %v3854_v38 }
 0x3eb   : > { %v3860_v25 = vpop.permute.xlu1 %3859  ;;  %3933 = vrot.lane.b32.xlu1 %v3893_v6, %s5850_s15  ;;  %v7964_v6 = vpop.eup %5617 }
 0x3ec   : > { %v3896_v53 = vmul.f32 %v7944_v8, %v3860_v25 }
 0x3ee   : > { %3939 = vrot.lane.b32.xlu0 %v3896_v53, %s5850_s15 }
 0x3ef   : > { %v3858_v13 = vpop.permute.xlu0 %3857 }
 0x3f0   : > { %v3895_v61 = vmul.f32 %v7949_v17, %v3858_v13  ;;  %v2012_v13 = vmul.f32 %v7819_v12, %v7126_v0  ;;  %v2013_v0 = vmul.f32 %v7835_v37, %v7111_v59 }
 0x3f2   : > { %3937 = vrot.lane.b32.xlu1 %v3895_v61, %s5850_s15 }
 0x3f3   : > { %v3864_v32 = vpop.permute.xlu1 %3863 }
 0x3f4   : > { %v3898_v55 = vmul.f32 %v7953_v54, %v3864_v32 }
 0x3f5   : > { %v3862_v31 = vpop.permute.xlu0 %3861 }
 0x3f6   : > { %v3897_v10 = vmul.f32 %v7956_v16, %v3862_v31  ;;  %3943 = vrot.lane.b32.xlu0 %v3898_v55, %s5850_s15  ;;  %v2011_v55 = vmul.f32 %v7825_v5, %v7093_v4 }
 0x3f7   : > { %v3868_v38 = vpop.permute.xlu1 %3867 }
 0x3f8   : > { %v3900_v19 = vmul.f32 %v7960_v51, %v3868_v38  ;;  %3941 = vrot.lane.b32.xlu1 %v3897_v10, %s5850_s15 }
 0x3f9   : > { %v3866_v25 = vpop.permute.xlu0 %3865 }
 0x3fa   : > { %v3899_v53 = vmul.f32 %v7964_v6, %v3866_v25  ;;  %3947 = vrot.lane.b32.xlu0 %v3900_v19, %s5850_s15  ;;  %v2014_v25 = vmul.f32 %v7829_v60, %v7143_v29  ;;  %v2016_v29 = vmul.f32 %v7839_v35, %v7156_v40 }
 0x3fb   : > { %v2126_v61 = vpop.permute.xlu1 %2125 }
 0x3fc   : > { %v2172_v32 = vadd.f32 %v2126_v61, %v2012_v13  ;;  %3945 = vrot.lane.b32.xlu1 %v3899_v53, %s5850_s15 }
 0x3fd   : > { %v2124_v31 = vpop.permute.xlu0 %2123 }
 0x3fe   : > { %5619 = vtanh.f32 %v2172_v32  ;;  %v2171_v10 = vadd.f32 %v2124_v31, %v2011_v55  ;;  %v2015_v55 = vmul.f32 %v7841_v58, %v7128_v57  ;;  %v2017_v57 = vmul.f32 %v7853_v20, %v7145_v15 }
 0x3ff   : > { %v2130_v38 = vpop.permute.xlu1 %2129  ;;  %v2019_v15 = vmul.f32 %v7863_v27, %v7158_v26  ;;  %v2021_v26 = vmul.f32 %v7872_v45, %v7169_v46  ;;  %v2024_v46 = vmul.f32 %v7876_v7, %v7198_v36  ;;  %v3806_v36 = vmul.f32 %v7893_v11, %v7714_v41 }
 0x400   : > { %5621 = vtanh.f32 %v2171_v10  ;;  %2301 = vrot.lane.b32.xlu1 %v2172_v32, %s5851_s7  ;;  %2299 = vrot.lane.b32.xlu0 %v2171_v10, %s5851_s7  ;;  %v2174_v53 = vadd.f32 %v2130_v38, %v2014_v25  ;;  %v2018_v25 = vmul.f32 %v7848_v47, %v7167_v44  ;;  %v2020_v44 = vmul.f32 %v7858_v49, %v7177_v18 }
 0x401   : > { %v2128_v19 = vpop.permute.xlu0 %2127  ;;  %v2022_v18 = vmul.f32 %v7867_v2, %v7185_v33 }
 0x402   : > { %v2173_v13 = vadd.f32 %v2128_v19, %v2013_v0  ;;  %5623 = vtanh.f32 %v2174_v53 }
 0x403   : > { %v2134_v4 = vpop.permute.xlu1 %2133 }
 0x404   : > { %2305 = vrot.lane.b32.xlu1 %v2174_v53, %s5851_s7  ;;  %2303 = vrot.lane.b32.xlu0 %v2173_v13, %s5851_s7  ;;  %5625 = vtanh.f32 %v2173_v13  ;;  %v2176_v32 = vadd.f32 %v2134_v4, %v2016_v29 }
 0x405   : > { %v2132_v61 = vpop.permute.xlu0 %2131 }
 0x406   : > { %v2175_v59 = vadd.f32 %v2132_v61, %v2015_v55  ;;  %5627 = vtanh.f32 %v2176_v32 }
 0x407   : > { %v2138_v38 = vpop.permute.xlu1 %2137 }
 0x408   : > { %5629 = vtanh.f32 %v2175_v59  ;;  %v2178_v0 = vadd.f32 %v2138_v38, %v2018_v25 }
 0x409   : > { %v2136_v40 = vpop.permute.xlu0 %2135 }
 0x40a   : > { %v2177_v53 = vadd.f32 %v2136_v40, %v2017_v57  ;;  %5631 = vtanh.f32 %v2178_v0 }
 0x40b   : > { %v5620_v31 = vpop.eup %5619  ;;  %v2142_v4 = vpop.permute.xlu1 %2141 }
 0x40c   : > { %2221 = vrot.lane.b32.xlu1 %v5620_v31, %s5850_s15  ;;  %5633 = vtanh.f32 %v2177_v53  ;;  %v2180_v61 = vadd.f32 %v2142_v4, %v2020_v44  ;;  %v2023_v4 = vmul.f32 %v7878_v34, %v7179_v62  ;;  %v2025_v62 = vmul.f32 %v7885_v14, %v7187_v21 }
 0x40d   : > { %v5622_v10 = vpop.eup %5621  ;;  %v2140_v29 = vpop.permute.xlu0 %2139 }
 0x40e   : > { %2219 = vrot.lane.b32.xlu0 %v5622_v10, %s5850_s15  ;;  %v2179_v55 = vadd.f32 %v2140_v29, %v2019_v15  ;;  %5635 = vtanh.f32 %v2180_v61 }
 0x40f   : > { %v5624_v19 = vpop.eup %5623 }
 0x410   : > { %2309 = vrot.lane.b32.xlu1 %v2176_v32, %s5851_s7  ;;  %5637 = vtanh.f32 %v2179_v55 }
 0x411   : > { %v5626_v13 = vpop.eup %5625  ;;  %v2144_v10 = vpop.permute.xlu0 %2143 }
 0x412   : > { %2307 = vrot.lane.b32.xlu0 %v2175_v59, %s5851_s7  ;;  %v2146_v59 = vpop.permute.xlu1 %2145  ;;  %v2181_v40 = vadd.f32 %v2144_v10, %v2021_v26 }
 0x413   : > { %v5628_v32 = vpop.eup %5627  ;;  %v2182_v38 = vadd.f32 %v2146_v59, %v2022_v18  ;;  %v8448_v18 = vld [vmem:[#allocation16_spill] sm:$0xff] }
 0x414   : > { %2225 = vrot.lane.b32.xlu1 %v5624_v19, %s5850_s15  ;;  %v2026_v10 = vmul.f32 %v7896_v28, %v8448_v18  ;;  %v8454_v18 = vld [vmem:[#allocation17_spill] sm:$0xff] }
 0x415   : > { %v5630_v31 = vpop.eup %5629  ;;  %5639 = vtanh.f32 %v2182_v38  ;;  %v2148_v33 = vpop.permute.xlu0 %2147 }
 0x416   : > { %2223 = vrot.lane.b32.xlu0 %v5626_v13, %s5850_s15  ;;  %5641 = vtanh.f32 %v2181_v40  ;;  %v2150_v19 = vpop.permute.xlu1 %2149  ;;  %v2183_v29 = vadd.f32 %v2148_v33, %v2023_v4  ;;  %v8450_v33 = vld [vmem:[#allocation18_spill] sm:$0xff] }
 0x417   : > { %v5632_v25 = vpop.eup %5631  ;;  %v2184_v13 = vadd.f32 %v2150_v19, %v2024_v46  ;;  %v3808_v21 = vmul.f32 %v7903_v30, %v8450_v33 }
 0x418   : > { %2313 = vrot.lane.b32.xlu1 %v2178_v0, %s5851_s7  ;;  %5643 = vtanh.f32 %v2183_v29 }
 0x419   : > { %v5634_v0 = vpop.eup %5633  ;;  %v2152_v44 = vpop.permute.xlu0 %2151  ;;  %5645 = vtanh.f32 %v2184_v13 }
 0x41a   : > { %2311 = vrot.lane.b32.xlu0 %v2177_v53, %s5851_s7  ;;  %v2185_v59 = vadd.f32 %v2152_v44, %v2025_v62  ;;  %v8452_v44 = vld [vmem:[#allocation21_spill] sm:$0xff] }
 0x41b   : > { %v5636_v57 = vpop.eup %5635 }
 0x41c   : > { %2229 = vrot.lane.b32.xlu1 %v5628_v32, %s5850_s15  ;;  %5647 = vtanh.f32 %v2185_v59 }
 0x41d   : > { %v5638_v53 = vpop.eup %5637 }
 0x41e   : > { %2227 = vrot.lane.b32.xlu0 %v5630_v31, %s5850_s15 }
 0x420   : > { %2317 = vrot.lane.b32.xlu1 %v2180_v61, %s5851_s7 }
 0x422   : > { %2315 = vrot.lane.b32.xlu0 %v2179_v55, %s5851_s7  ;;  %v5640_v61 = vpop.eup %5639 }
 0x423   : > { %v5642_v55 = vpop.eup %5641 }
 0x424   : > { %2233 = vrot.lane.b32.xlu1 %v5632_v25, %s5850_s15  ;;  %v8449_v25 = vld [vmem:[#allocation19_spill] sm:$0xff] }
 0x425   : > { %v3805_v41 = vmul.f32 %v7900_v48, %v8449_v25  ;;  %v5644_v46 = vpop.eup %5643 }
 0x426   : > { %2231 = vrot.lane.b32.xlu0 %v5634_v0, %s5850_s15 }
 0x428   : > { %2321 = vrot.lane.b32.xlu1 %v2182_v38, %s5851_s7 }
 0x42a   : > { %2319 = vrot.lane.b32.xlu0 %v2181_v40, %s5851_s7 }
 0x42b   : > { %v3920_v15 = vpop.permute.xlu0 %3919 }
 0x42c   : > { %2237 = vrot.lane.b32.xlu1 %v5636_v57, %s5850_s15  ;;  %v3966_v31 = vadd.f32 %v3920_v15, %v3806_v36  ;;  %v8453_v36 = vld [vmem:[#allocation15_spill] sm:$0xff] }
 0x42e   : > { %2235 = vrot.lane.b32.xlu0 %v5638_v53, %s5850_s15 }
 0x42f   : > { %v2154_v32 = vpop.permute.xlu1 %2153 }
 0x430   : > { %2325 = vrot.lane.b32.xlu1 %v2184_v13, %s5851_s7  ;;  %v2186_v26 = vadd.f32 %v2154_v32, %v2026_v10  ;;  %v8451_v13 = vld [vmem:[#allocation20_spill] sm:$0xff]  ;;  %v3812_v10 = vmul.f32 %v7926_v39, %v8454_v18 }
 0x431   : > { %v3807_v4 = vmul.f32 %v7907_v52, %v8451_v13 }
 0x432   : > { %2323 = vrot.lane.b32.xlu0 %v2183_v29, %s5851_s7  ;;  %5649 = vtanh.f32 %v2186_v26  ;;  %v3810_v29 = vmul.f32 %v7917_v24, %v8452_v44 }
 0x433   : > { %v3918_v38 = vpop.permute.xlu1 %3917  ;;  %v3924_v40 = vpop.permute.xlu0 %3923  ;;  %5651 = vtanh.f32 %v3966_v31 }
 0x434   : > { %2241 = vrot.lane.b32.xlu1 %v5640_v61, %s5850_s15  ;;  %v3965_v0 = vadd.f32 %v3918_v38, %v3805_v41  ;;  %v3968_v57 = vadd.f32 %v3924_v40, %v3808_v21  ;;  %v5646_v61 = vpop.eup %5645 }
 0x436   : > { %2239 = vrot.lane.b32.xlu0 %v5642_v55, %s5850_s15  ;;  %v3809_v55 = vmul.f32 %v7921_v23, %v8453_v36  ;;  %5653 = vtanh.f32 %v3965_v0 }
 0x437   : > { %v3922_v19 = vpop.permute.xlu1 %3921  ;;  %5655 = vtanh.f32 %v3968_v57 }
 0x438   : > { %4095 = vrot.lane.b32.xlu1 %v3966_v31, %s5851_s7  ;;  %v3967_v15 = vadd.f32 %v3922_v19, %v3807_v4  ;;  %v5648_v31 = vpop.eup %5647  ;;  %v8456_v4 = vld [vmem:[#allocation23_spill] sm:$0xff] }
 0x439   : > { %v3813_v44 = vmul.f32 %v7940_v1, %v8456_v4 }
 0x43a   : > { %2327 = vrot.lane.b32.xlu0 %v2185_v59, %s5851_s7  ;;  %5657 = vtanh.f32 %v3967_v15 }
 0x43c   : > { %2329 = vrot.lane.b32.xlu1 %v2186_v26, %s5851_s7 }
 0x43e   : > { %4093 = vrot.lane.b32.xlu0 %v3965_v0, %s5851_s7  ;;  %v8455_v0 = vld [vmem:[#allocation22_spill] sm:$0xff] }
 0x43f   : > { %v5650_v25 = vpop.eup %5649  ;;  %v3811_v33 = vmul.f32 %v7931_v50, %v8455_v0 }
 0x440   : > { %4099 = vrot.lane.b32.xlu1 %v3968_v57, %s5851_s7  ;;  %v5652_v41 = vpop.eup %5651  ;;  %v3814_v57 = vmul.f32 %v7937_v56, %v7750_v3  ;;  %v3816_v3 = vmul.f32 %v7944_v8, %v7765_v63  ;;  %v3818_v63 = vmul.f32 %v7953_v54, %v7780_v42 }
 0x442   : > { %2243 = vrot.lane.b32.xlu0 %v5644_v46, %s5850_s15 }
 0x443   : > { %v3928_v53 = vpop.permute.xlu0 %3927  ;;  %v5654_v21 = vpop.eup %5653 }
 0x444   : > { %2245 = vrot.lane.b32.xlu1 %v5646_v61, %s5850_s15  ;;  %v3970_v32 = vadd.f32 %v3928_v53, %v3810_v29  ;;  %v5656_v46 = vpop.eup %5655 }
 0x445   : > { %v3926_v62 = vpop.permute.xlu1 %3925 }
 0x446   : > { %v3969_v59 = vadd.f32 %v3926_v62, %v3809_v55  ;;  %4097 = vrot.lane.b32.xlu0 %v3967_v15, %s5851_s7  ;;  %5659 = vtanh.f32 %v3970_v32  ;;  %v8457_v62 = vld [vmem:[#allocation24_spill] sm:$0xff] }
 0x447   : > { %v5658_v15 = vpop.eup %5657 }
 0x448   : > { %v3932_v38 = vpop.permute.xlu0 %3931  ;;  %4103 = vrot.lane.b32.xlu1 %v3970_v32, %s5851_s7  ;;  %5661 = vtanh.f32 %v3969_v59 }
 0x449   : > { %v3972_v26 = vadd.f32 %v3932_v38, %v3812_v10 }
 0x44a   : > { %4101 = vrot.lane.b32.xlu0 %v3969_v59, %s5851_s7  ;;  %v3930_v40 = vpop.permute.xlu1 %3929  ;;  %v3815_v59 = vmul.f32 %v7949_v17, %v8457_v62 }
 0x44b   : > { %v3971_v19 = vadd.f32 %v3930_v40, %v3811_v33  ;;  %5663 = vtanh.f32 %v3972_v26  ;;  %v3817_v40 = vmul.f32 %v7956_v16, %v7785_v22 }
 0x44c   : > { %4107 = vrot.lane.b32.xlu1 %v3972_v26, %s5851_s7 }
 0x44d   : > { %5665 = vtanh.f32 %v3971_v19 }
 0x44e   : > { %2247 = vrot.lane.b32.xlu0 %v5648_v31, %s5850_s15 }
 0x450   : > { %2249 = vrot.lane.b32.xlu1 %v5650_v25, %s5850_s15 }
 0x452   : > { %4015 = vrot.lane.b32.xlu0 %v5652_v41, %s5850_s15 }
 0x453   : > { %v5660_v36 = vpop.eup %5659 }
 0x454   : > { %4013 = vrot.lane.b32.xlu1 %v5654_v21, %s5850_s15 }
 0x455   : > { %v5662_v38 = vpop.eup %5661 }
 0x456   : > { %4105 = vrot.lane.b32.xlu0 %v3971_v19, %s5851_s7  ;;  %v3820_v19 = vmul.f32 %v7960_v51, %v7795_v9 }
 0x458   : > { %v5664_v31 = vpop.eup %5663 }
 0x45a   : > { %4019 = vrot.lane.b32.xlu0 %v5656_v46, %s5850_s15  ;;  %v5666_v21 = vpop.eup %5665 }
 0x45b   : > { %v3936_v53 = vpop.permute.xlu0 %3935 }
 0x45c   : > { %v3974_v13 = vadd.f32 %v3936_v53, %v3814_v57  ;;  %v3819_v57 = vmul.f32 %v7964_v6, %v7800_v43 }
 0x45d   : > { %v3934_v29 = vpop.permute.xlu1 %3933 }
 0x45e   : > { %4111 = vrot.lane.b32.xlu1 %v3974_v13, %s5851_s7  ;;  %v3973_v61 = vadd.f32 %v3934_v29, %v3813_v44  ;;  %5667 = vtanh.f32 %v3974_v13 }
 0x460   : > { %v3940_v32 = vpop.permute.xlu0 %3939  ;;  %4109 = vrot.lane.b32.xlu0 %v3973_v61, %s5851_s7  ;;  %5669 = vtanh.f32 %v3973_v61 }
 0x461   : > { %v3976_v55 = vadd.f32 %v3940_v32, %v3816_v3 }
 0x462   : > { %4017 = vrot.lane.b32.xlu1 %v5658_v15, %s5850_s15 }
 0x463   : > { %5671 = vtanh.f32 %v3976_v55 }
 0x464   : > { %4023 = vrot.lane.b32.xlu0 %v5660_v36, %s5850_s15  ;;  %v3938_v18 = vpop.permute.xlu1 %3937 }
 0x465   : > { %v3975_v10 = vadd.f32 %v3938_v18, %v3815_v59 }
 0x466   : > { %4115 = vrot.lane.b32.xlu1 %v3976_v55, %s5851_s7 }
 0x467   : > { %5673 = vtanh.f32 %v3975_v10 }
 0x468   : > { %4113 = vrot.lane.b32.xlu0 %v3975_v10, %s5851_s7  ;;  %v3944_v26 = vpop.permute.xlu0 %3943 }
 0x469   : > { %v3978_v25 = vadd.f32 %v3944_v26, %v3818_v63 }
 0x46a   : > { %4021 = vrot.lane.b32.xlu1 %v5662_v38, %s5850_s15  ;;  %v3942_v41 = vpop.permute.xlu1 %3941 }
 0x46b   : > { %v3977_v0 = vadd.f32 %v3942_v41, %v3817_v40  ;;  %5675 = vtanh.f32 %v3978_v25  ;;  %v5668_v46 = vpop.eup %5667 }
 0x46c   : > { %4027 = vrot.lane.b32.xlu0 %v5664_v31, %s5850_s15  ;;  %v3948_v33 = vpop.permute.xlu0 %3947 }
 0x46d   : > { %v3980_v22 = vadd.f32 %v3948_v33, %v3820_v19  ;;  %5677 = vtanh.f32 %v3977_v0  ;;  %v5670_v44 = vpop.eup %5669 }
 0x46e   : > { %4119 = vrot.lane.b32.xlu1 %v3978_v25, %s5851_s7  ;;  %v3946_v42 = vpop.permute.xlu1 %3945 }
 0x46f   : > { %v3979_v53 = vadd.f32 %v3946_v42, %v3819_v57  ;;  %5679 = vtanh.f32 %v3980_v22 }
 0x470   : > { %4117 = vrot.lane.b32.xlu0 %v3977_v0, %s5851_s7  ;;  %v5672_v29 = vpop.eup %5671 }
 0x471   : > { %5681 = vtanh.f32 %v3979_v53 }
 0x472   : > { %4025 = vrot.lane.b32.xlu1 %v5666_v21, %s5850_s15  ;;  %v2302_v13 = vpop.permute.xlu1 %2301  ;;  %v2300_v4 = vpop.permute.xlu0 %2299 }
 0x473   : > { %2348 = vst.msk [vmem:[%s8088_s19 + $0x8] sm:$0xff] %vm1412_vm11, %v2302_v13  ;;  %2347 = vst.msk [vmem:[%s8088_s19] sm:$0xff] %vm1412_vm11, %v2300_v4 }
 0x474   : > { %4031 = vrot.lane.b32.xlu0 %v5668_v46, %s5850_s15  ;;  %v5674_v61 = vpop.eup %5673 }
 0x476   : > { %4123 = vrot.lane.b32.xlu1 %v3980_v22, %s5851_s7  ;;  %v2306_v9 = vpop.permute.xlu1 %2305  ;;  %v2304_v43 = vpop.permute.xlu0 %2303 }
 0x477   : > { %2350 = vst.msk [vmem:[%s8088_s19 + $0x18] sm:$0xff] %vm1412_vm11, %v2306_v9  ;;  %2349 = vst.msk [vmem:[%s8088_s19 + $0x10] sm:$0xff] %vm1412_vm11, %v2304_v43 }
 0x478   : > { %4121 = vrot.lane.b32.xlu0 %v3979_v53, %s5851_s7  ;;  %v5676_v15 = vpop.eup %5675 }
 0x47a   : > { %4029 = vrot.lane.b32.xlu1 %v5670_v44, %s5850_s15  ;;  %v5678_v3 = vpop.eup %5677 }
 0x47c   : > { %4035 = vrot.lane.b32.xlu0 %v5672_v29, %s5850_s15  ;;  %v5680_v55 = vpop.eup %5679 }
 0x47e   : > { %4033 = vrot.lane.b32.xlu1 %v5674_v61, %s5850_s15  ;;  %v2222_v32 = vpop.permute.xlu1 %2221  ;;  %v5682_v59 = vpop.eup %5681 }
 0x47f   : > { %v2268_v38 = vmul.f32 %v7819_v12, %v2222_v32 }
 0x480   : > { %4039 = vrot.lane.b32.xlu0 %v5676_v15, %s5850_s15  ;;  %v2220_v36 = vpop.permute.xlu0 %2219 }
 0x481   : > { %v2267_v10 = vmul.f32 %v7825_v5, %v2220_v36 }
 0x482   : > { %4037 = vrot.lane.b32.xlu1 %v5678_v3, %s5850_s15  ;;  %v2310_v62 = vpop.permute.xlu1 %2309 }
 0x483   : > { %2352 = vst.msk [vmem:[%s8088_s19 + $0x28] sm:$0xff] %vm1412_vm11, %v2310_v62 }
 0x484   : > { %4043 = vrot.lane.b32.xlu0 %v5680_v55, %s5850_s15  ;;  %v2308_v18 = vpop.permute.xlu0 %2307 }
 0x485   : > { %2351 = vst.msk [vmem:[%s8088_s19 + $0x20] sm:$0xff] %vm1412_vm11, %v2308_v18 }
 0x486   : > { %4041 = vrot.lane.b32.xlu1 %v5682_v59, %s5850_s15  ;;  %v2226_v63 = vpop.permute.xlu1 %2225  ;;  %s5853_s15 = smov [#allocation9]  }
 0x487   : > { %v2270_v25 = vmul.f32 %v7829_v60, %v2226_v63  ;;  %s5741_s26 = sshll.u32 %s5853_s15, 4  ;;  %s5742_s26 = int_to_ptr.vmem [resolvable:$false] %s5741_s26 }
 0x488   : > { %2379 = vrot.lane.b32.xlu0 %v2267_v10, %s5852_s20  ;;  %v2224_v26 = vpop.permute.xlu0 %2223  ;;  %s5743_s8 = scalar_lea.vmem %s5742_s26, 8192  ;;  %p5744_p12 = scmp.lt.s32.totalorder %s8229_s27, %s5742_s26 }
 0x489   : > { %v2269_v31 = vmul.f32 %v7835_v37, %v2224_v26  ;;  %p5745_p13 = scmp.lt.s32.totalorder %s5743_s8, %s5737_s10 }
 0x48a   : > { %2381 = vrot.lane.b32.xlu1 %v2268_v38, %s5852_s20  ;;  %v2314_v41 = vpop.permute.xlu1 %2313 }
 0x48b   : > { %2354 = vst.msk [vmem:[%s8088_s19 + $0x38] sm:$0xff] %vm1412_vm11, %v2314_v41  ;;  %p5746_p0 = por %p5745_p13, %p5744_p12 }
 0x48c   : > { %2383 = vrot.lane.b32.xlu0 %v2269_v31, %s5852_s20  ;;  %v2312_v5 = vpop.permute.xlu0 %2311 }
 0x48d   : > { %2353 = vst.msk [vmem:[%s8088_s19 + $0x30] sm:$0xff] %vm1412_vm11, %v2312_v5  ;;  %p5747_p5 = pnand %p5746_p0, %p5740_p10 }
 0x48e   : > { %2385 = vrot.lane.b32.xlu1 %v2270_v25, %s5852_s20  ;;  %v2230_v12 = vpop.permute.xlu1 %2229 }
 0x48f   : > { %v2272_v40 = vmul.f32 %v7839_v35, %v2230_v12 }
 0x490   : > { %v2228_v0 = vpop.permute.xlu0 %2227 }
 0x491   : > { %v2271_v37 = vmul.f32 %v7841_v58, %v2228_v0 }
 0x492   : > { %2389 = vrot.lane.b32.xlu1 %v2272_v40, %s5852_s20  ;;  %v2318_v60 = vpop.permute.xlu1 %2317 }
 0x493   : > { %2356 = vst.msk [vmem:[%s8088_s19 + $0x48] sm:$0xff] %vm1412_vm11, %v2318_v60  ;;  %2387 = vrot.lane.b32.xlu0 %v2271_v37, %s5852_s20 }
 0x494   : > { %v2316_v33 = vpop.permute.xlu0 %2315 }
 0x495   : > { %2355 = vst.msk [vmem:[%s8088_s19 + $0x40] sm:$0xff] %vm1412_vm11, %v2316_v33 }
 0x496   : > { %v2234_v42 = vpop.permute.xlu1 %2233 }
 0x497   : > { %v2274_v21 = vmul.f32 %v7848_v47, %v2234_v42 }
 0x498   : > { %v2232_v19 = vpop.permute.xlu0 %2231 }
 0x499   : > { %v2273_v35 = vmul.f32 %v7853_v20, %v2232_v19  ;;  %2393 = vrot.lane.b32.xlu1 %v2274_v21, %s5852_s20 }
 0x49a   : > { %v2322_v58 = vpop.permute.xlu1 %2321 }
 0x49b   : > { %2358 = vst.msk [vmem:[%s8088_s19 + $0x58] sm:$0xff] %vm1412_vm11, %v2322_v58  ;;  %2391 = vrot.lane.b32.xlu0 %v2273_v35, %s5852_s20 }
 0x49c   : > { %v2320_v57 = vpop.permute.xlu0 %2319 }
 0x49d   : > { %2357 = vst.msk [vmem:[%s8088_s19 + $0x50] sm:$0xff] %vm1412_vm11, %v2320_v57 }
 0x49e   : > { %v2238_v22 = vpop.permute.xlu1 %2237 }
 0x49f   : > { %v2276_v46 = vmul.f32 %v7858_v49, %v2238_v22 }
 0x4a0   : > { %v2236_v53 = vpop.permute.xlu0 %2235 }
 0x4a1   : > { %v2275_v47 = vmul.f32 %v7863_v27, %v2236_v53  ;;  %2397 = vrot.lane.b32.xlu1 %v2276_v46, %s5852_s20 }
 0x4a2   : > { %v2326_v20 = vpop.permute.xlu1 %2325 }
 0x4a3   : > { %2360 = vst.msk [vmem:[%s8088_s19 + $0x68] sm:$0xff] %vm1412_vm11, %v2326_v20  ;;  %2395 = vrot.lane.b32.xlu0 %v2275_v47, %s5852_s20 }
 0x4a4   : > { %v2324_v13 = vpop.permute.xlu0 %2323 }
 0x4a5   : > { %2359 = vst.msk [vmem:[%s8088_s19 + $0x60] sm:$0xff] %vm1412_vm11, %v2324_v13 }
 0x4a6   : > { %v2242_v4 = vpop.permute.xlu1 %2241 }
 0x4a7   : > { %v2278_v49 = vmul.f32 %v7867_v2, %v2242_v4 }
 0x4a8   : > { %v2240_v9 = vpop.permute.xlu0 %2239 }
 0x4a9   : > { %v2277_v27 = vmul.f32 %v7872_v45, %v2240_v9  ;;  %2401 = vrot.lane.b32.xlu1 %v2278_v49, %s5852_s20 }
 0x4aa   : > { %v4096_v43 = vpop.permute.xlu1 %4095 }
 0x4ab   : > { %4513 = vst.msk [vmem:[%s8088_s19 + $0x88] sm:$0xff] %vm1412_vm11, %v4096_v43  ;;  %2399 = vrot.lane.b32.xlu0 %v2277_v27, %s5852_s20 }
 0x4ac   : > { %v2328_v44 = vpop.permute.xlu0 %2327 }
 0x4ad   : > { %2361 = vst.msk [vmem:[%s8088_s19 + $0x70] sm:$0xff] %vm1412_vm11, %v2328_v44 }
 0x4ae   : > { %v2330_v29 = vpop.permute.xlu1 %2329 }
 0x4af   : > { %2362 = vst.msk [vmem:[%s8088_s19 + $0x78] sm:$0xff] %vm1412_vm11, %v2330_v29 }
 0x4b0   : > { %v4094_v2 = vpop.permute.xlu0 %4093 }
 0x4b1   : > { %4512 = vst.msk [vmem:[%s8088_s19 + $0x80] sm:$0xff] %vm1412_vm11, %v4094_v2 }
 0x4b2   : > { %v4100_v45 = vpop.permute.xlu1 %4099 }
 0x4b3   : > { %4515 = vst.msk [vmem:[%s8088_s19 + $0x98] sm:$0xff] %vm1412_vm11, %v4100_v45 }
 0x4b4   : > { %v2244_v61 = vpop.permute.xlu0 %2243 }
 0x4b5   : > { %v2279_v15 = vmul.f32 %v7878_v34, %v2244_v61 }
 0x4b6   : > { %v2246_v32 = vpop.permute.xlu1 %2245 }
 0x4b7   : > { %v2280_v3 = vmul.f32 %v7876_v7, %v2246_v32  ;;  %2403 = vrot.lane.b32.xlu0 %v2279_v15, %s5852_s20 }
 0x4b8   : > { %v4098_v36 = vpop.permute.xlu0 %4097 }
 0x4b9   : > { %4514 = vst.msk [vmem:[%s8088_s19 + $0x90] sm:$0xff] %vm1412_vm11, %v4098_v36  ;;  %2405 = vrot.lane.b32.xlu1 %v2280_v3, %s5852_s20 }
 0x4ba   : > { %v4104_v55 = vpop.permute.xlu1 %4103 }
 0x4bb   : > { %4517 = vst.msk [vmem:[%s8088_s19 + $0xa8] sm:$0xff] %vm1412_vm11, %v4104_v55 }
 0x4bc   : > { %v4102_v62 = vpop.permute.xlu0 %4101 }
 0x4bd   : > { %4516 = vst.msk [vmem:[%s8088_s19 + $0xa0] sm:$0xff] %vm1412_vm11, %v4102_v62 }
 0x4be   : > { %v4108_v59 = vpop.permute.xlu1 %4107 }
 0x4bf   : > { %4519 = vst.msk [vmem:[%s8088_s19 + $0xb8] sm:$0xff] %vm1412_vm11, %v4108_v59 }
 0x4c0   : > { %v2248_v34 = vpop.permute.xlu0 %2247 }
 0x4c1   : > { %v2281_v7 = vmul.f32 %v7885_v14, %v2248_v34 }
 0x4c2   : > { %v2250_v18 = vpop.permute.xlu1 %2249 }
 0x4c3   : > { %2407 = vrot.lane.b32.xlu0 %v2281_v7, %s5852_s20  ;;  %v2282_v25 = vmul.f32 %v7896_v28, %v2250_v18 }
 0x4c4   : > { %v4016_v10 = vpop.permute.xlu0 %4015 }
 0x4c5   : > { %v4062_v38 = vmul.f32 %v7893_v11, %v4016_v10 }
 0x4c6   : > { %v4014_v63 = vpop.permute.xlu1 %4013 }
 0x4c7   : > { %v4061_v26 = vmul.f32 %v7900_v48, %v4014_v63  ;;  %4176 = vrot.lane.b32.xlu1 %v4062_v38, %s5852_s20 }
 0x4c8   : > { %v4106_v31 = vpop.permute.xlu0 %4105 }
 0x4c9   : > { %4518 = vst.msk [vmem:[%s8088_s19 + $0xb0] sm:$0xff] %vm1412_vm11, %v4106_v31  ;;  %4174 = vrot.lane.b32.xlu0 %v4061_v26, %s5852_s20 }
 0x4cb   : > { %2409 = vrot.lane.b32.xlu1 %v2282_v25, %s5852_s20 }
 0x4cc   : > { %v4020_v14 = vpop.permute.xlu0 %4019 }
 0x4cd   : > { %v4064_v41 = vmul.f32 %v7903_v30, %v4020_v14 }
 0x4cf   : > { %4180 = vrot.lane.b32.xlu1 %v4064_v41, %s5852_s20 }
 0x4d0   : > { %v4112_v11 = vpop.permute.xlu1 %4111 }
 0x4d1   : > { %4521 = vst.msk [vmem:[%s8088_s19 + $0xc8] sm:$0xff] %vm1412_vm11, %v4112_v11 }
 0x4d2   : > { %v4110_v48 = vpop.permute.xlu0 %4109 }
 0x4d3   : > { %4520 = vst.msk [vmem:[%s8088_s19 + $0xc0] sm:$0xff] %vm1412_vm11, %v4110_v48 }
 0x4d4   : > { %v4018_v28 = vpop.permute.xlu1 %4017 }
 0x4d5   : > { %v4063_v5 = vmul.f32 %v7907_v52, %v4018_v28 }
 0x4d6   : > { %v4024_v12 = vpop.permute.xlu0 %4023 }
 0x4d7   : > { %4178 = vrot.lane.b32.xlu0 %v4063_v5, %s5852_s20  ;;  %v4066_v40 = vmul.f32 %v7917_v24, %v4024_v12 }
 0x4d8   : > { %v4116_v0 = vpop.permute.xlu1 %4115 }
 0x4d9   : > { %4523 = vst.msk [vmem:[%s8088_s19 + $0xd8] sm:$0xff] %vm1412_vm11, %v4116_v0  ;;  %4184 = vrot.lane.b32.xlu1 %v4066_v40, %s5852_s20 }
 0x4da   : > { %v4114_v30 = vpop.permute.xlu0 %4113 }
 0x4db   : > { %4522 = vst.msk [vmem:[%s8088_s19 + $0xd0] sm:$0xff] %vm1412_vm11, %v4114_v30 }
 0x4dc   : > { %v4022_v37 = vpop.permute.xlu1 %4021 }
 0x4dd   : > { %v4065_v60 = vmul.f32 %v7921_v23, %v4022_v37 }
 0x4de   : > { %v4028_v33 = vpop.permute.xlu0 %4027 }
 0x4df   : > { %4182 = vrot.lane.b32.xlu0 %v4065_v60, %s5852_s20  ;;  %v4068_v52 = vmul.f32 %v7926_v39, %v4028_v33 }
 0x4e0   : > { %v4120_v42 = vpop.permute.xlu1 %4119 }
 0x4e1   : > { %4525 = vst.msk [vmem:[%s8088_s19 + $0xe8] sm:$0xff] %vm1412_vm11, %v4120_v42  ;;  %4188 = vrot.lane.b32.xlu1 %v4068_v52, %s5852_s20 }
 0x4e2   : > { %v4118_v24 = vpop.permute.xlu0 %4117 }
 0x4e3   : > { %4524 = vst.msk [vmem:[%s8088_s19 + $0xe0] sm:$0xff] %vm1412_vm11, %v4118_v24 }
 0x4e4   : > { %v4026_v21 = vpop.permute.xlu1 %4025 }
 0x4e5   : > { %v4067_v19 = vmul.f32 %v7931_v50, %v4026_v21 }
 0x4e6   : > { %v4032_v35 = vpop.permute.xlu0 %4031 }
 0x4e7   : > { %4186 = vrot.lane.b32.xlu0 %v4067_v19, %s5852_s20  ;;  %v4070_v23 = vmul.f32 %v7937_v56, %v4032_v35 }
 0x4e8   : > { %v4124_v39 = vpop.permute.xlu1 %4123 }
 0x4e9   : > { %4527 = vst.msk [vmem:[%s8088_s19 + $0xf8] sm:$0xff] %vm1412_vm11, %v4124_v39  ;;  %4192 = vrot.lane.b32.xlu1 %v4070_v23, %s5852_s20 }
 0x4ea   : > { %v4122_v58 = vpop.permute.xlu0 %4121 }
 0x4eb   : > { %4526 = vst.msk [vmem:[%s8088_s19 + $0xf0] sm:$0xff] %vm1412_vm11, %v4122_v58 }
 0x4ec   : > { %v4030_v57 = vpop.permute.xlu1 %4029 }
 0x4ed   : > { %v4069_v22 = vmul.f32 %v7940_v1, %v4030_v57 }
 0x4ee   : > { %v4036_v50 = vpop.permute.xlu0 %4035 }
 0x4ef   : > { %4190 = vrot.lane.b32.xlu0 %v4069_v22, %s5852_s20  ;;  %v4072_v56 = vmul.f32 %v7944_v8, %v4036_v50 }
 0x4f0   : > { %v4034_v46 = vpop.permute.xlu1 %4033 }
 0x4f1   : > { %v4071_v53 = vmul.f32 %v7949_v17, %v4034_v46  ;;  %4196 = vrot.lane.b32.xlu1 %v4072_v56, %s5852_s20 }
 0x4f2   : > { %v4040_v1 = vpop.permute.xlu0 %4039 }
 0x4f3   : > { %4194 = vrot.lane.b32.xlu0 %v4071_v53, %s5852_s20  ;;  %v4074_v8 = vmul.f32 %v7953_v54, %v4040_v1 }
 0x4f4   : > { %v4038_v17 = vpop.permute.xlu1 %4037 }
 0x4f5   : > { %5750 = shalt.err (!%p5747_p5)
}
 0x4f6   : > { %s5751_s7 = scalar_lea.hbm %s8225_s29, 4096  ;;  %s5755_s11 = scalar_lea.hbm %s8390_s6, 8192 }
 0x4f7   : > { %p5752_p2 = scmp.ne.s32.totalorder %s8225_s29, %s5751_s7  ;;  %p5756_p6 = scmp.lt.s32.totalorder %s8225_s29, %s8390_s6 }
 0x4f8   : > { %p5757_p8 = scmp.lt.s32.totalorder %s5755_s11, %s5751_s7 }
 0x4f9   : > { %p5753_p1 = pnand %p5752_p2, %p8458_p7 }
 0x4fa   : > { %p5758_p3 = por %p5757_p8, %p5756_p6 }
 0x4fb   : > { %p5754_p4 = pneg %p5753_p1 }
 0x4fd   : > { %p5759_p11 = pnand %p5758_p3, %p5754_p4 }
 0x4ff   : > { %5762 = shalt.err (!%p5759_p11)
}
 0x500   : > { %s5854_s10 = smov 128   ;;  %s5855_s26 = smov 8   ;;  %v4073_v54 = vmul.f32 %v7956_v16, %v4038_v17  ;;  %4200 = vrot.lane.b32.xlu1 %v4074_v8, %s5852_s20  ;;  %v4044_v47 = vpop.permute.xlu0 %4043  ;;  %v4042_v13 = vpop.permute.xlu1 %4041 }
 0x501   : > { %4876 = dma.vmem_to_hbm [thread:$0]  (%p8458_p7), %s8229_s27, 4096, %s8225_s29, %s4245_s12, %s5854_s10, %s5854_s10, %s5855_s26   ;;  %v4076_v20 = vmul.f32 %v7960_v51, %v4044_v47  ;;  %v4075_v4 = vmul.f32 %v7964_v6, %v4042_v13 }
 0x502   : > { %4198 = vrot.lane.b32.xlu0 %v4073_v54, %s5852_s20  ;;  %s8266_s16 = scalar_lea.vmem [#allocation8], %s6017_s14  ;;  %s4240_s8 = scalar_lea.sflag [#allocation5], %s6014_s13 }
 0x503   : > { %s4258_s14 = sshll.u32 %s8266_s16, 4  ;;  %s8336_s14 = int_to_ptr.vmem [resolvable:$true] %s4258_s14 }
 0x504   : > { %4204 = vrot.lane.b32.xlu1 %v4076_v20, %s5852_s20  ;;  %v2380_v49 = vpop.permute.xlu0 %2379  ;;  %v2382_v16 = vpop.permute.xlu1 %2381  ;;  %s5763_s7 = scalar_lea.vmem %s8336_s14, 4096 }
 0x505   : > { %2427 = vst.msk [vmem:[%s8266_s16] sm:$0xff] %vm1412_vm11, %v2380_v49  ;;  %2428 = vst.msk [vmem:[%s8266_s16 + $0x8] sm:$0xff] %vm1412_vm11, %v2382_v16  ;;  %p5764_p9 = scmp.ne.s32.totalorder %s8336_s14, %s5763_s7 }
 0x506   : > { %4202 = vrot.lane.b32.xlu0 %v4075_v4, %s5852_s20  ;;  %s8459_s20 = sshll.u32 %s5913_s25, 12  ;;  %s5856_s25 = smov [#allocation8]  }
 0x507   : > { %s8334_s12 = scalar_lea.hbm %s8389_s5, %s8459_s20  ;;  %p5765_p10 = pnand %p5764_p9, %p8458_p7 }
 0x508   : > { %v2384_v51 = vpop.permute.xlu0 %2383  ;;  %v2386_v6 = vpop.permute.xlu1 %2385  ;;  %s5767_s19 = sshll.u32 %s5856_s25, 4  ;;  %s5768_s19 = int_to_ptr.vmem [resolvable:$false] %s5767_s19 }
 0x509   : > { %2429 = vst.msk [vmem:[%s8266_s16 + $0x10] sm:$0xff] %vm1412_vm11, %v2384_v51  ;;  %2430 = vst.msk [vmem:[%s8266_s16 + $0x18] sm:$0xff] %vm1412_vm11, %v2386_v6  ;;  %p5766_p12 = pneg %p5765_p10  ;;  %s5769_s30 = scalar_lea.vmem %s5768_s19, 8192 }
 0x50a   : > { %p5770_p13 = scmp.lt.s32.totalorder %s8336_s14, %s5768_s19  ;;  %p5771_p0 = scmp.lt.s32.totalorder %s5769_s30, %s5763_s7 }
 0x50c   : > { %v2390_v9 = vpop.permute.xlu1 %2389  ;;  %v2388_v27 = vpop.permute.xlu0 %2387  ;;  %p5772_p5 = por %p5771_p0, %p5770_p13 }
 0x50d   : > { %2432 = vst.msk [vmem:[%s8266_s16 + $0x28] sm:$0xff] %vm1412_vm11, %v2390_v9  ;;  %2431 = vst.msk [vmem:[%s8266_s16 + $0x20] sm:$0xff] %vm1412_vm11, %v2388_v27 }
 0x50e   : > { %p5773_p2 = pnand %p5772_p5, %p5766_p12 }
 0x510   : > { %v2394_v43 = vpop.permute.xlu1 %2393  ;;  %v2392_v44 = vpop.permute.xlu0 %2391 }
 0x511   : > { %2434 = vst.msk [vmem:[%s8266_s16 + $0x38] sm:$0xff] %vm1412_vm11, %v2394_v43  ;;  %2433 = vst.msk [vmem:[%s8266_s16 + $0x30] sm:$0xff] %vm1412_vm11, %v2392_v44 }
 0x514   : > { %v2398_v29 = vpop.permute.xlu1 %2397 }
 0x515   : > { %2436 = vst.msk [vmem:[%s8266_s16 + $0x48] sm:$0xff] %vm1412_vm11, %v2398_v29  ;;  %v2396_v2 = vpop.permute.xlu0 %2395 }
 0x516   : > { %2435 = vst.msk [vmem:[%s8266_s16 + $0x40] sm:$0xff] %vm1412_vm11, %v2396_v2 }
 0x51b   : > { %v2402_v45 = vpop.permute.xlu1 %2401 }
 0x51c   : > { %2438 = vst.msk [vmem:[%s8266_s16 + $0x58] sm:$0xff] %vm1412_vm11, %v2402_v45 }
 0x51d   : > { %v2400_v61 = vpop.permute.xlu0 %2399 }
 0x51e   : > { %2437 = vst.msk [vmem:[%s8266_s16 + $0x50] sm:$0xff] %vm1412_vm11, %v2400_v61 }
 0x529   : > { %v2404_v15 = vpop.permute.xlu0 %2403 }
 0x52a   : > { %2439 = vst.msk [vmem:[%s8266_s16 + $0x60] sm:$0xff] %vm1412_vm11, %v2404_v15 }
 0x52b   : > { %v2406_v32 = vpop.permute.xlu1 %2405 }
 0x52c   : > { %2440 = vst.msk [vmem:[%s8266_s16 + $0x68] sm:$0xff] %vm1412_vm11, %v2406_v32 }
 0x535   : > { %v2408_v3 = vpop.permute.xlu0 %2407 }
 0x536   : > { %2441 = vst.msk [vmem:[%s8266_s16 + $0x70] sm:$0xff] %vm1412_vm11, %v2408_v3 }
 0x539   : > { %v4177_v36 = vpop.permute.xlu1 %4176 }
 0x53a   : > { %4529 = vst.msk [vmem:[%s8266_s16 + $0x88] sm:$0xff] %vm1412_vm11, %v4177_v36 }
 0x53b   : > { %v4175_v55 = vpop.permute.xlu0 %4174 }
 0x53c   : > { %4528 = vst.msk [vmem:[%s8266_s16 + $0x80] sm:$0xff] %vm1412_vm11, %v4175_v55 }
 0x53d   : > { %v2410_v62 = vpop.permute.xlu1 %2409 }
 0x53e   : > { %2442 = vst.msk [vmem:[%s8266_s16 + $0x78] sm:$0xff] %vm1412_vm11, %v2410_v62 }
 0x541   : > { %v4181_v59 = vpop.permute.xlu1 %4180 }
 0x542   : > { %4531 = vst.msk [vmem:[%s8266_s16 + $0x98] sm:$0xff] %vm1412_vm11, %v4181_v59 }
 0x549   : > { %v4179_v34 = vpop.permute.xlu0 %4178 }
 0x54a   : > { %4530 = vst.msk [vmem:[%s8266_s16 + $0x90] sm:$0xff] %vm1412_vm11, %v4179_v34 }
 0x54b   : > { %v4185_v7 = vpop.permute.xlu1 %4184 }
 0x54c   : > { %4533 = vst.msk [vmem:[%s8266_s16 + $0xa8] sm:$0xff] %vm1412_vm11, %v4185_v7 }
 0x551   : > { %v4183_v18 = vpop.permute.xlu0 %4182 }
 0x552   : > { %4532 = vst.msk [vmem:[%s8266_s16 + $0xa0] sm:$0xff] %vm1412_vm11, %v4183_v18 }
 0x553   : > { %v4189_v10 = vpop.permute.xlu1 %4188 }
 0x554   : > { %4535 = vst.msk [vmem:[%s8266_s16 + $0xb8] sm:$0xff] %vm1412_vm11, %v4189_v10 }
 0x559   : > { %v4187_v38 = vpop.permute.xlu0 %4186 }
 0x55a   : > { %4534 = vst.msk [vmem:[%s8266_s16 + $0xb0] sm:$0xff] %vm1412_vm11, %v4187_v38 }
 0x55b   : > { %v4193_v63 = vpop.permute.xlu1 %4192 }
 0x55c   : > { %4537 = vst.msk [vmem:[%s8266_s16 + $0xc8] sm:$0xff] %vm1412_vm11, %v4193_v63 }
 0x561   : > { %v4191_v26 = vpop.permute.xlu0 %4190 }
 0x562   : > { %4536 = vst.msk [vmem:[%s8266_s16 + $0xc0] sm:$0xff] %vm1412_vm11, %v4191_v26 }
 0x563   : > { %v4197_v31 = vpop.permute.xlu1 %4196 }
 0x564   : > { %4539 = vst.msk [vmem:[%s8266_s16 + $0xd8] sm:$0xff] %vm1412_vm11, %v4197_v31 }
 0x565   : > { %v4195_v25 = vpop.permute.xlu0 %4194 }
 0x566   : > { %4538 = vst.msk [vmem:[%s8266_s16 + $0xd0] sm:$0xff] %vm1412_vm11, %v4195_v25 }
 0x572   : > { %v4201_v14 = vpop.permute.xlu1 %4200 }
 0x573   : > { %4541 = vst.msk [vmem:[%s8266_s16 + $0xe8] sm:$0xff] %vm1412_vm11, %v4201_v14 }
 0x574   : > { %v4199_v41 = vpop.permute.xlu0 %4198 }
 0x575   : > { %4540 = vst.msk [vmem:[%s8266_s16 + $0xe0] sm:$0xff] %vm1412_vm11, %v4199_v41 }
 0x576   : > { %v4205_v11 = vpop.permute.xlu1 %4204 }
 0x577   : > { %4543 = vst.msk [vmem:[%s8266_s16 + $0xf8] sm:$0xff] %vm1412_vm11, %v4205_v11 }
 0x578   : > { %v4203_v48 = vpop.permute.xlu0 %4202 }
 0x579   : > { %4542 = vst.msk [vmem:[%s8266_s16 + $0xf0] sm:$0xff] %vm1412_vm11, %v4203_v48 }
 0x57a   : > { %5776 = shalt.err (!%p5773_p2)
}
 0x57b   : > { %s5777_s11 = scalar_lea.hbm %s8334_s12, 4096  ;;  %s5781_s16 = scalar_lea.hbm %s8389_s5, 8192 }
 0x57c   : > { %p5778_p1 = scmp.ne.s32.totalorder %s8334_s12, %s5777_s11  ;;  %p5782_p8 = scmp.lt.s32.totalorder %s8334_s12, %s8389_s5 }
 0x57d   : > { %p5783_p3 = scmp.lt.s32.totalorder %s5781_s16, %s5777_s11 }
 0x57e   : > { %p5779_p4 = pnand %p5778_p1, %p8458_p7 }
 0x57f   : > { %p5784_p11 = por %p5783_p3, %p5782_p8 }
 0x580   : > { %p5780_p6 = pneg %p5779_p4 }
 0x582   : > { %p5785_p9 = pnand %p5784_p11, %p5780_p6 }
 0x584   : > { %5788 = shalt.err (!%p5785_p9)
}
 0x585   : > { %4875 = dma.vmem_to_hbm [thread:$0]  (%p8458_p7), %s8336_s14, 4096, %s8334_s12, %s4240_s8, %s5854_s10, %s5854_s10, %s5855_s26  }
 0x586 PF: > { %s4289_s27 = sand.u32 1, %s5823_s21   ;;  %p8460_p10 = scmp.ne.s32.totalorder %s8408_s28, 0 }
 0x587   : > { %p8461_p12 = scmp.ge.s32.totalorder %s5835_s24, 2  ;;  %s4290_s7 = scalar_lea.sflag [#allocation5], %s4289_s27 }
 0x589   : > { %p4888_p13 = pnand %p8461_p12, %p8460_p10 }
 0x58b   : > { %p4889_p0 = pneg %p4888_p13 }
 0x58d   : > { %5814 = dma.done.wait (%p4889_p0), %s4290_s7, 4096  }
 0x58e   : > { %5816 = vsyncadd (%p4889_p0), %s4290_s7, 4294963200  ;;  %s4299_s25 = scalar_lea.sflag [#allocation10], %s4289_s27 }
 0x58f   : > { %5818 = dma.done.wait (%p4889_p0), %s4299_s25, 4096  }
 0x590   : > { %5820 = vsyncadd (%p4889_p0), %s4299_s25, 4294963200  ;;  %p24_p7 = scmp.ge.s32.totalorder %s5946_s9, 4   ;;  %s8462_s21 = smov %s5827_s22 }
 0x591   : > { %s8463_s22 = smov %s5831_s23  ;;  %s8464_s23 = smov %s5966_s17 }
 0x592   : > { %s8465_s24 = smov %s5946_s9  ;;  %26 = sbr.rel (!%p24_p7) target bundleno = 8 (0x8), region = 121 }
 0x597   :  { %4304 = vsyncpa [#allocation4], 1 }
 0x598   :  { %4306 = vsyncpa [#allocation4 + $0x1], 1 }
 0x599   :  { %4307 = vsyncpa [#allocation7], 1 }
 0x59a   :  { %4308 = vsyncpa [#allocation5], 1 }
 0x59b   :  { %4310 = vsyncpa [#allocation5 + $0x1], 1 }
 0x59c   :  { %4311 = vsyncpa [#allocation10], 1 }
 0x59d   :  { %4313 = vsyncpa [#allocation10 + $0x1], 1 }

</bundles_post_ra>
